<compile_context>
chip_gen: v7x
topology: tpu7x:2x2x1
jax: 0.10.0
libtpu: 0.0.40
codegen_flags: <defaults>
</compile_context>

<pallas_src>
import math
import functools

import jax
import jax.numpy as jnp
from jax.experimental import pallas as pl
from jax.experimental.pallas import tpu as pltpu


# -----------------------------------------------------------------------------
# Parameter packing (all params stacked with a leading num_layers axis)
# -----------------------------------------------------------------------------
ATTN_MODS = ("sa1", "sa2", "ca1")     # self_attn1, self_attn2, cross_attn1
FFN_MODS = ("ffn1", "ffn2")
# row index of each LayerNorm inside the packed (L, 6, D) gamma/beta tensors
LN_IDX = dict(n11=0, n21=1, n12=2, n13=3, n22=4, n23=5)

PARAM_ORDER = tuple(
    [f"{m}_{t}" for m in ATTN_MODS for t in ("wqkv", "bqkv", "wo", "bo")]
    + [f"{m}_{t}" for m in FFN_MODS for t in ("w1", "b1", "w2", "b2")]
    + ["ln_g", "ln_b"]
)


# -----------------------------------------------------------------------------
# Fused kernel: one grid step = one encoder layer (whole batch in VMEM)
# -----------------------------------------------------------------------------
def fused_encoder_kernel(x1_ref, x2_ref, *refs, nhead, eps, batch):
    n = len(PARAM_ORDER)
    p = dict(zip(PARAM_ORDER, refs[:n]))
    out1_ref, out2_ref = refs[n], refs[n + 1]

    layer = pl.program_id(0)

    # Layer 0: load the inputs into the VMEM-resident output blocks, which are
    # then used as the layer-to-layer carry (their block index is constant
    # across the grid, so they stay in VMEM and hit HBM only once at the end).
    @pl.when(layer == 0)
    def _():
        out1_ref[...] = x1_ref[...]
        out2_ref[...] = x2_ref[...]

    t1 = out1_ref[...]          # (B*S, D)
    t2 = out2_ref[...]
    BS, D = t1.shape
    S = BS // batch
    dh = D // nhead

    ln_g = p["ln_g"][0]         # (6, D)
    ln_b = p["ln_b"][0]         # (6, D)

    def layer_norm(z, name):
        i = LN_IDX[name]
        g = ln_g[i:i + 1, :]    # (1, D)
        b = ln_b[i:i + 1, :]
        mean = jnp.mean(z, axis=-1, keepdims=True)
        var = jnp.mean((z - mean) ** 2, axis=-1, keepdims=True)
        return (z - mean) * jax.lax.rsqrt(var + eps) * g + b

    def mha(q_in, kv_in, name, is_self):
        wqkv = p[f"{name}_wqkv"][0]    # (D, 3D) (1/sqrt(dh) folded into Q cols)
        bqkv = p[f"{name}_bqkv"][0]    # (1, 3D)
        wo = p[f"{name}_wo"][0]        # (D, D)
        bo = p[f"{name}_bo"][0]        # (1, D)

        if is_self:
            # Single packed projection matmul, M = B*S.
            qkv = jnp.dot(q_in, wqkv, preferred_element_type=jnp.float32) + bqkv
            qp = qkv[:, :D]
            kp = qkv[:, D:2 * D]
            vp = qkv[:, 2 * D:]
        else:
            qp = jnp.dot(q_in, wqkv[:, :D],
                         preferred_element_type=jnp.float32) + bqkv[:, :D]
            # Fused K+V projection (one N=2D matmul), then split.
            kv = jnp.dot(kv_in, wqkv[:, D:],
                         preferred_element_type=jnp.float32) + bqkv[:, D:]
            kp = kv[:, :D]
            vp = kv[:, D:]

        # Attention proper is per batch element / per head (unrolled; B, nhead
        # are tiny and static).  Head contexts are concatenated so the output
        # projection is ONE (B*S, D) @ (D, D) matmul.
        ctx_rows = []
        for b in range(batch):
            rs = slice(b * S, (b + 1) * S)
            heads = []
            for h in range(nhead):
                cs = slice(h * dh, (h + 1) * dh)
                qh = qp[rs, cs]
                kh = kp[rs, cs]
                vh = vp[rs, cs]
                # scores = Qh @ Kh^T (scale already folded into Q projection)
                s = jax.lax.dot_general(qh, kh, (((1,), (1,)), ((), ())),
                                        preferred_element_type=jnp.float32)
                s = s - jnp.max(s, axis=-1, keepdims=True)
                e = jnp.exp(s)
                inv = 1.0 / jnp.sum(e, axis=-1, keepdims=True)
                heads.append(jnp.dot(e, vh,
                                     preferred_element_type=jnp.float32) * inv)
            ctx_rows.append(jnp.concatenate(heads, axis=-1))   # (S, D)
        ctx = jnp.concatenate(ctx_rows, axis=0)                # (B*S, D)
        return jnp.dot(ctx, wo, preferred_element_type=jnp.float32) + bo

    def ffn(x, name):
        w1 = p[f"{name}_w1"][0]
        b1 = p[f"{name}_b1"][0]
        w2 = p[f"{name}_w2"][0]
        b2 = p[f"{name}_b2"][0]
        h = jnp.dot(x, w1, preferred_element_type=jnp.float32) + b1
        h = jnp.maximum(h, 0.0)
        return jnp.dot(h, w2, preferred_element_type=jnp.float32) + b2

    # ---- FeatureFusionLayer.forward_post (dropout = identity) ----
    a11 = mha(t1, t1, "sa1", is_self=True)
    t1 = layer_norm(t1 + a11, "n11")

    a21 = mha(t2, t2, "sa2", is_self=True)
    t2 = layer_norm(t2 + a21, "n21")

    a12 = mha(t1, t2, "ca1", is_self=False)    # cross_attn1(src1, src2, src2)
    t1 = layer_norm(t1 + a12, "n12")
    t1 = layer_norm(t1 + ffn(t1, "ffn1"), "n13")

    # NOTE: the reference module computes cross_attn2(src2, src1, src1) but then
    # adds a12 (src1's cross-attention output) to src2, so cross_attn2's result
    # is discarded.  Skipping that attention is numerically identical.
    # TODO(synk): if the real checkpoint's FeatureFusionLayer adds src22 (not
    # a12) to src2, re-enable a second mha(t2, t1, ...) call here.
    t2 = layer_norm(t2 + a12, "n22")
    t2 = layer_norm(t2 + ffn(t2, "ffn2"), "n23")

    # Carry for the next layer (VMEM-resident; HBM writeback happens once,
    # after the last layer).
    out1_ref[...] = t1
    out2_ref[...] = t2


# -----------------------------------------------------------------------------
# Wrapper: whole Encoder in one pallas_call, grid over layers only
# -----------------------------------------------------------------------------
def encoder_forward(src1, src2, params, nhead, eps=1e-5):
    S, B, D = src1.shape
    L = params["ln_g"].shape[0]

    # seq-first (S, B, D) -> batch-major slab (B*S, D)
    x1 = jnp.transpose(src1, (1, 0, 2)).reshape(B * S, D)
    x2 = jnp.transpose(src2, (1, 0, 2)).reshape(B * S, D)

    act_spec = pl.BlockSpec((B * S, D), lambda l: (0, 0))

    def param_spec(arr):
        zeros = (0,) * (arr.ndim - 1)
        return pl.BlockSpec((1,) + arr.shape[1:], lambda l: (l,) + zeros)

    in_specs = [act_spec, act_spec] + [param_spec(params[k]) for k in PARAM_ORDER]

    kernel = functools.partial(fused_encoder_kernel, nhead=nhead, eps=eps,
                               batch=B)

    out1, out2 = pl.pallas_call(
        kernel,
        grid=(L,),
        in_specs=in_specs,
        out_specs=(act_spec, act_spec),
        out_shape=(jax.ShapeDtypeStruct((B * S, D), jnp.float32),
                   jax.ShapeDtypeStruct((B * S, D), jnp.float32)),
        compiler_params=pltpu.CompilerParams(
            dimension_semantics=("arbitrary",)),
    )(x1, x2, *[params[k] for k in PARAM_ORDER])

    out1 = jnp.transpose(out1.reshape(B, S, D), (1, 0, 2))
    out2 = jnp.transpose(out2.reshape(B, S, D), (1, 0, 2))
    return out1, out2


# -----------------------------------------------------------------------------
# Deterministic parameter init (per-layer stacked; 1/sqrt(dh) folded into Q)
# -----------------------------------------------------------------------------
def init_params(key, num_layers, d_model, nhead, dim_ff):
    L, D, F = num_layers, d_model, dim_ff
    q_scale = 1.0 / math.sqrt(D // nhead)

    keys = jax.random.split(key, len(PARAM_ORDER))
    kmap = dict(zip(PARAM_ORDER, keys))
    params = {}

    for m in ATTN_MODS:
        w = jax.random.normal(kmap[f"{m}_wqkv"], (L, D, 3 * D),
                              jnp.float32) / math.sqrt(D)
        b = 0.02 * jax.random.normal(kmap[f"{m}_bqkv"], (L, 1, 3 * D), jnp.float32)
        # fold the attention score scale into the Q projection (weights + bias)
        w = w.at[:, :, :D].multiply(q_scale)
        b = b.at[:, :, :D].multiply(q_scale)
        params[f"{m}_wqkv"] = w
        params[f"{m}_bqkv"] = b
        params[f"{m}_wo"] = jax.random.normal(kmap[f"{m}_wo"], (L, D, D),
                                              jnp.float32) / math.sqrt(D)
        params[f"{m}_bo"] = 0.02 * jax.random.normal(kmap[f"{m}_bo"], (L, 1, D),
                                                     jnp.float32)

    for m in FFN_MODS:
        params[f"{m}_w1"] = jax.random.normal(kmap[f"{m}_w1"], (L, D, F),
                                              jnp.float32) / math.sqrt(D)
        params[f"{m}_b1"] = 0.02 * jax.random.normal(kmap[f"{m}_b1"], (L, 1, F),
                                                     jnp.float32)
        params[f"{m}_w2"] = jax.random.normal(kmap[f"{m}_w2"], (L, F, D),
                                              jnp.float32) / math.sqrt(F)
        params[f"{m}_b2"] = 0.02 * jax.random.normal(kmap[f"{m}_b2"], (L, 1, D),
                                                     jnp.float32)

    params["ln_g"] = 1.0 + 0.1 * jax.random.normal(kmap["ln_g"], (L, 6, D),
                                                   jnp.float32)
    params["ln_b"] = 0.1 * jax.random.normal(kmap["ln_b"], (L, 6, D), jnp.float32)
    return params


# -----------------------------------------------------------------------------
# Pure-JAX reference (for sanity check)
# -----------------------------------------------------------------------------
def encoder_ref(src1, src2, params, nhead, eps=1e-5):
    L = params["ln_g"].shape[0]
    D = src1.shape[-1]
    dh = D // nhead

    def ln(x, g, b):
        m = jnp.mean(x, -1, keepdims=True)
        v = jnp.mean((x - m) ** 2, -1, keepdims=True)
        return (x - m) / jnp.sqrt(v + eps) * g + b

    def mha(q, kv, wqkv, bqkv, wo, bo):
        S_, B_, _ = q.shape
        qp = q @ wqkv[:, :D] + bqkv[0, :D]          # scale already folded in
        kp = kv @ wqkv[:, D:2 * D] + bqkv[0, D:2 * D]
        vp = kv @ wqkv[:, 2 * D:] + bqkv[0, 2 * D:]
        split = lambda x: x.reshape(S_, B_, nhead, dh).transpose(1, 2, 0, 3)
        qh, kh, vh = split(qp), split(kp), split(vp)
        s = jnp.einsum('bhsd,bhtd->bhst', qh, kh)
        w = jax.nn.softmax(s, axis=-1)
        ctx = jnp.einsum('bhst,bhtd->bhsd', w, vh)
        ctx = ctx.transpose(2, 0, 1, 3).reshape(S_, B_, D)
        return ctx @ wo + bo[0]

    def ffn(x, w1, b1, w2, b2):
        return jnp.maximum(x @ w1 + b1[0], 0.0) @ w2 + b2[0]

    t1, t2 = src1, src2
    for l in range(L):
        g = lambda name: params[name][l]
        lng, lnb = params["ln_g"][l], params["ln_b"][l]
        norm = lambda x, n: ln(x, lng[LN_IDX[n]], lnb[LN_IDX[n]])

        a11 = mha(t1, t1, g("sa1_wqkv"), g("sa1_bqkv"), g("sa1_wo"), g("sa1_bo"))
        t1 = norm(t1 + a11, "n11")
        a21 = mha(t2, t2, g("sa2_wqkv"), g("sa2_bqkv"), g("sa2_wo"), g("sa2_bo"))
        t2 = norm(t2 + a21, "n21")
        a12 = mha(t1, t2, g("ca1_wqkv"), g("ca1_bqkv"), g("ca1_wo"), g("ca1_bo"))
        t1 = norm(t1 + a12, "n12")
        f1 = ffn(t1, g("ffn1_w1"), g("ffn1_b1"), g("ffn1_w2"), g("ffn1_b2"))
        t1 = norm(t1 + f1, "n13")
        t2 = norm(t2 + a12, "n22")   # reference adds a12 (cross_attn2 discarded)
        f2 = ffn(t2, g("ffn2_w1"), g("ffn2_b1"), g("ffn2_w2"), g("ffn2_b2"))
        t2 = norm(t2 + f2, "n23")
    return t1, t2


# -----------------------------------------------------------------------------
if __name__ == "__main__":
    d_model, nhead, dim_ff = 32, 4, 64
    S, B, num_layers = 8, 2, 2

    key = jax.random.PRNGKey(0)
    kp, k1, k2 = jax.random.split(key, 3)
    params = init_params(kp, num_layers, d_model, nhead, dim_ff)
    src1 = jax.random.normal(k1, (S, B, d_model), jnp.float32)
    src2 = jax.random.normal(k2, (S, B, d_model), jnp.float32)

    fwd = jax.jit(functools.partial(encoder_forward, nhead=nhead))
    out1, out2 = fwd(src1, src2, params)
    jax.block_until_ready((out1, out2))

    ref1, ref2 = encoder_ref(src1, src2, params, nhead)
    assert out1.shape == (S, B, d_model) and out2.shape == (S, B, d_model)
    assert jnp.allclose(out1, ref1, atol=1e-3, rtol=1e-3), \
        float(jnp.max(jnp.abs(out1 - ref1)))
    assert jnp.allclose(out2, ref2, atol=1e-3, rtol=1e-3), \
        float(jnp.max(jnp.abs(out2 - ref2)))

    print("KERNEL_OK")
</pallas_src>

<mosaic_0001>
module attributes {stable_mosaic.version = 11 : i64} {
  func.func @fused_encoder_kernel(%arg0: i32, %arg1: memref<16x32xf32, #tpu.memory_space<vmem>>, %arg2: memref<16x32xf32, #tpu.memory_space<vmem>>, %arg3: memref<1x32x96xf32, #tpu.memory_space<vmem>>, %arg4: memref<1x1x96xf32, #tpu.memory_space<vmem>>, %arg5: memref<1x32x32xf32, #tpu.memory_space<vmem>>, %arg6: memref<1x1x32xf32, #tpu.memory_space<vmem>>, %arg7: memref<1x32x96xf32, #tpu.memory_space<vmem>>, %arg8: memref<1x1x96xf32, #tpu.memory_space<vmem>>, %arg9: memref<1x32x32xf32, #tpu.memory_space<vmem>>, %arg10: memref<1x1x32xf32, #tpu.memory_space<vmem>>, %arg11: memref<1x32x96xf32, #tpu.memory_space<vmem>>, %arg12: memref<1x1x96xf32, #tpu.memory_space<vmem>>, %arg13: memref<1x32x32xf32, #tpu.memory_space<vmem>>, %arg14: memref<1x1x32xf32, #tpu.memory_space<vmem>>, %arg15: memref<1x32x64xf32, #tpu.memory_space<vmem>>, %arg16: memref<1x1x64xf32, #tpu.memory_space<vmem>>, %arg17: memref<1x64x32xf32, #tpu.memory_space<vmem>>, %arg18: memref<1x1x32xf32, #tpu.memory_space<vmem>>, %arg19: memref<1x32x64xf32, #tpu.memory_space<vmem>>, %arg20: memref<1x1x64xf32, #tpu.memory_space<vmem>>, %arg21: memref<1x64x32xf32, #tpu.memory_space<vmem>>, %arg22: memref<1x1x32xf32, #tpu.memory_space<vmem>>, %arg23: memref<1x6x32xf32, #tpu.memory_space<vmem>>, %arg24: memref<1x6x32xf32, #tpu.memory_space<vmem>>, %arg25: memref<16x32xf32, #tpu.memory_space<vmem>>, %arg26: memref<16x32xf32, #tpu.memory_space<vmem>>) attributes {dimension_semantics = [#tpu.dimension_semantics<arbitrary>], iteration_bounds = array<i64: 2>, scalar_prefetch = 0 : i64, scratch_operands = 0 : i64, tpu.core_type = #tpu.core_type<tc>, window_params = [{pipeline_mode = #tpu.pipeline_mode<synchronous>, transform_indices = @transform_0, window_bounds = array<i64: 16, 32>}, {pipeline_mode = #tpu.pipeline_mode<synchronous>, transform_indices = @transform_1, window_bounds = array<i64: 16, 32>}, {transform_indices = @transform_2, window_bounds = array<i64: 1, 32, 96>}, {transform_indices = @transform_3, window_bounds = array<i64: 1, 1, 96>}, {transform_indices = @transform_4, window_bounds = array<i64: 1, 32, 32>}, {transform_indices = @transform_5, window_bounds = array<i64: 1, 1, 32>}, {transform_indices = @transform_6, window_bounds = array<i64: 1, 32, 96>}, {transform_indices = @transform_7, window_bounds = array<i64: 1, 1, 96>}, {transform_indices = @transform_8, window_bounds = array<i64: 1, 32, 32>}, {transform_indices = @transform_9, window_bounds = array<i64: 1, 1, 32>}, {transform_indices = @transform_10, window_bounds = array<i64: 1, 32, 96>}, {transform_indices = @transform_11, window_bounds = array<i64: 1, 1, 96>}, {transform_indices = @transform_12, window_bounds = array<i64: 1, 32, 32>}, {transform_indices = @transform_13, window_bounds = array<i64: 1, 1, 32>}, {transform_indices = @transform_14, window_bounds = array<i64: 1, 32, 64>}, {transform_indices = @transform_15, window_bounds = array<i64: 1, 1, 64>}, {transform_indices = @transform_16, window_bounds = array<i64: 1, 64, 32>}, {transform_indices = @transform_17, window_bounds = array<i64: 1, 1, 32>}, {transform_indices = @transform_18, window_bounds = array<i64: 1, 32, 64>}, {transform_indices = @transform_19, window_bounds = array<i64: 1, 1, 64>}, {transform_indices = @transform_20, window_bounds = array<i64: 1, 64, 32>}, {transform_indices = @transform_21, window_bounds = array<i64: 1, 1, 32>}, {transform_indices = @transform_22, window_bounds = array<i64: 1, 6, 32>}, {transform_indices = @transform_23, window_bounds = array<i64: 1, 6, 32>}, {pipeline_mode = #tpu.pipeline_mode<synchronous>, transform_indices = @transform_24, window_bounds = array<i64: 16, 32>}, {pipeline_mode = #tpu.pipeline_mode<synchronous>, transform_indices = @transform_25, window_bounds = array<i64: 16, 32>}]} {
    %c0_i32 = arith.constant 0 : i32
    %0 = arith.cmpi eq, %arg0, %c0_i32 : i32
    %1 = arith.extui %0 : i1 to i32
    %c0_i32_0 = arith.constant 0 : i32
    %2 = arith.cmpi ne, %1, %c0_i32_0 : i32
    scf.if %2 {
      %c0_236 = arith.constant 0 : index
      %c0_237 = arith.constant 0 : index
      %643 = vector.load %arg1[%c0_236, %c0_237] : memref<16x32xf32, #tpu.memory_space<vmem>>, vector<16x32xf32>
      %c0_238 = arith.constant 0 : index
      %c0_239 = arith.constant 0 : index
      %644 = vector.load %arg25[%c0_238, %c0_239] : memref<16x32xf32, #tpu.memory_space<vmem>>, vector<16x32xf32>
      tpu.vector_store %arg25[%c0_238, %c0_239], %643 {strides = array<i32>} : memref<16x32xf32, #tpu.memory_space<vmem>>, vector<16x32xf32>,
      %c0_240 = arith.constant 0 : index
      %c0_241 = arith.constant 0 : index
      %645 = vector.load %arg2[%c0_240, %c0_241] : memref<16x32xf32, #tpu.memory_space<vmem>>, vector<16x32xf32>
      %c0_242 = arith.constant 0 : index
      %c0_243 = arith.constant 0 : index
      %646 = vector.load %arg26[%c0_242, %c0_243] : memref<16x32xf32, #tpu.memory_space<vmem>>, vector<16x32xf32>
      tpu.vector_store %arg26[%c0_242, %c0_243], %645 {strides = array<i32>} : memref<16x32xf32, #tpu.memory_space<vmem>>, vector<16x32xf32>,
    } else {
    }
    %c0 = arith.constant 0 : index
    %c0_1 = arith.constant 0 : index
    %3 = vector.load %arg25[%c0, %c0_1] : memref<16x32xf32, #tpu.memory_space<vmem>>, vector<16x32xf32>
    %c0_2 = arith.constant 0 : index
    %c0_3 = arith.constant 0 : index
    %4 = vector.load %arg26[%c0_2, %c0_3] : memref<16x32xf32, #tpu.memory_space<vmem>>, vector<16x32xf32>
    %c0_4 = arith.constant 0 : index
    %c0_5 = arith.constant 0 : index
    %c0_6 = arith.constant 0 : index
    %5 = vector.load %arg23[%c0_4, %c0_5, %c0_6] : memref<1x6x32xf32, #tpu.memory_space<vmem>>, vector<1x6x32xf32>
    %6 = vector.shape_cast %5 : vector<1x6x32xf32> to vector<6x32xf32>
    %c0_7 = arith.constant 0 : index
    %c0_8 = arith.constant 0 : index
    %c0_9 = arith.constant 0 : index
    %7 = vector.load %arg24[%c0_7, %c0_8, %c0_9] : memref<1x6x32xf32, #tpu.memory_space<vmem>>, vector<1x6x32xf32>
    %8 = vector.shape_cast %7 : vector<1x6x32xf32> to vector<6x32xf32>
    %c0_10 = arith.constant 0 : index
    %c0_11 = arith.constant 0 : index
    %c0_12 = arith.constant 0 : index
    %9 = vector.load %arg3[%c0_10, %c0_11, %c0_12] : memref<1x32x96xf32, #tpu.memory_space<vmem>>, vector<1x32x96xf32>
    %10 = vector.shape_cast %9 : vector<1x32x96xf32> to vector<32x96xf32>
    %c0_13 = arith.constant 0 : index
    %c0_14 = arith.constant 0 : index
    %c0_15 = arith.constant 0 : index
    %11 = vector.load %arg4[%c0_13, %c0_14, %c0_15] : memref<1x1x96xf32, #tpu.memory_space<vmem>>, vector<1x1x96xf32>
    %12 = vector.shape_cast %11 : vector<1x1x96xf32> to vector<1x96xf32>
    %c0_16 = arith.constant 0 : index
    %c0_17 = arith.constant 0 : index
    %c0_18 = arith.constant 0 : index
    %13 = vector.load %arg5[%c0_16, %c0_17, %c0_18] : memref<1x32x32xf32, #tpu.memory_space<vmem>>, vector<1x32x32xf32>
    %14 = vector.shape_cast %13 : vector<1x32x32xf32> to vector<32x32xf32>
    %c0_19 = arith.constant 0 : index
    %c0_20 = arith.constant 0 : index
    %c0_21 = arith.constant 0 : index
    %15 = vector.load %arg6[%c0_19, %c0_20, %c0_21] : memref<1x1x32xf32, #tpu.memory_space<vmem>>, vector<1x1x32xf32>
    %16 = vector.shape_cast %15 : vector<1x1x32xf32> to vector<1x32xf32>
    %cst = arith.constant dense<0.000000e+00> : vector<16x96xf32>
    %17 = tpu.matmul %3, %10, %cst {dimension_numbers = #tpu.dot_dimension_numbers<[1], [0], [0], [1], [0, 0, 1, 1], [], []>} : vector<16x32xf32>, vector<32x96xf32>, vector<16x96xf32> -> vector<16x96xf32>
    %18 = vector.broadcast %12 : vector<1x96xf32> to vector<16x96xf32>
    %19 = arith.addf %17, %18 : vector<16x96xf32>
    %20 = vector.extract_strided_slice %19 {offsets = [0, 0], sizes = [16, 32], strides = [1, 1]} : vector<16x96xf32> to vector<16x32xf32>
    %21 = vector.extract_strided_slice %19 {offsets = [0, 32], sizes = [16, 32], strides = [1, 1]} : vector<16x96xf32> to vector<16x32xf32>
    %22 = vector.extract_strided_slice %19 {offsets = [0, 64], sizes = [16, 32], strides = [1, 1]} : vector<16x96xf32> to vector<16x32xf32>
    %23 = vector.extract_strided_slice %20 {offsets = [0, 0], sizes = [8, 8], strides = [1, 1]} : vector<16x32xf32> to vector<8x8xf32>
    %24 = vector.extract_strided_slice %21 {offsets = [0, 0], sizes = [8, 8], strides = [1, 1]} : vector<16x32xf32> to vector<8x8xf32>
    %25 = vector.extract_strided_slice %22 {offsets = [0, 0], sizes = [8, 8], strides = [1, 1]} : vector<16x32xf32> to vector<8x8xf32>
    %cst_22 = arith.constant dense<0.000000e+00> : vector<8x8xf32>
    %26 = tpu.matmul %23, %24, %cst_22 {dimension_numbers = #tpu.dot_dimension_numbers<[1], [1], [0], [0], [0, 0, 1, 0], [], []>} : vector<8x8xf32>, vector<8x8xf32>, vector<8x8xf32> -> vector<8x8xf32>
    %cst_23 = arith.constant dense<0xFF800000> : vector<8xf32>
    %27 = vector.multi_reduction <maximumf>, %26, %cst_23 [1] : vector<8x8xf32> to vector<8xf32>
    %28 = vector.shape_cast %27 : vector<8xf32> to vector<8x1xf32>
    %29 = vector.broadcast %28 : vector<8x1xf32> to vector<8x8xf32>
    %30 = arith.subf %26, %29 : vector<8x8xf32>
    %31 = math.exp %30 : vector<8x8xf32>
    %cst_24 = arith.constant dense<0.000000e+00> : vector<8xf32>
    %32 = vector.multi_reduction <add>, %31, %cst_24 [1] : vector<8x8xf32> to vector<8xf32>
    %33 = vector.shape_cast %32 : vector<8xf32> to vector<8x1xf32>
    %cst_25 = arith.constant 1.000000e+00 : f32
    %34 = vector.broadcast %cst_25 : f32 to vector<8x1xf32>
    %35 = arith.divf %34, %33 : vector<8x1xf32>
    %cst_26 = arith.constant dense<0.000000e+00> : vector<8x8xf32>
    %36 = tpu.matmul %31, %25, %cst_26 {dimension_numbers = #tpu.dot_dimension_numbers<[1], [0], [0], [1], [0, 0, 1, 1], [], []>} : vector<8x8xf32>, vector<8x8xf32>, vector<8x8xf32> -> vector<8x8xf32>
    %37 = vector.broadcast %35 : vector<8x1xf32> to vector<8x8xf32>
    %38 = arith.mulf %36, %37 : vector<8x8xf32>
    %39 = vector.extract_strided_slice %20 {offsets = [0, 8], sizes = [8, 8], strides = [1, 1]} : vector<16x32xf32> to vector<8x8xf32>
    %40 = vector.extract_strided_slice %21 {offsets = [0, 8], sizes = [8, 8], strides = [1, 1]} : vector<16x32xf32> to vector<8x8xf32>
    %41 = vector.extract_strided_slice %22 {offsets = [0, 8], sizes = [8, 8], strides = [1, 1]} : vector<16x32xf32> to vector<8x8xf32>
    %cst_27 = arith.constant dense<0.000000e+00> : vector<8x8xf32>
    %42 = tpu.matmul %39, %40, %cst_27 {dimension_numbers = #tpu.dot_dimension_numbers<[1], [1], [0], [0], [0, 0, 1, 0], [], []>} : vector<8x8xf32>, vector<8x8xf32>, vector<8x8xf32> -> vector<8x8xf32>
    %cst_28 = arith.constant dense<0xFF800000> : vector<8xf32>
    %43 = vector.multi_reduction <maximumf>, %42, %cst_28 [1] : vector<8x8xf32> to vector<8xf32>
    %44 = vector.shape_cast %43 : vector<8xf32> to vector<8x1xf32>
    %45 = vector.broadcast %44 : vector<8x1xf32> to vector<8x8xf32>
    %46 = arith.subf %42, %45 : vector<8x8xf32>
    %47 = math.exp %46 : vector<8x8xf32>
    %cst_29 = arith.constant dense<0.000000e+00> : vector<8xf32>
    %48 = vector.multi_reduction <add>, %47, %cst_29 [1] : vector<8x8xf32> to vector<8xf32>
    %49 = vector.shape_cast %48 : vector<8xf32> to vector<8x1xf32>
    %cst_30 = arith.constant 1.000000e+00 : f32
    %50 = vector.broadcast %cst_30 : f32 to vector<8x1xf32>
    %51 = arith.divf %50, %49 : vector<8x1xf32>
    %cst_31 = arith.constant dense<0.000000e+00> : vector<8x8xf32>
    %52 = tpu.matmul %47, %41, %cst_31 {dimension_numbers = #tpu.dot_dimension_numbers<[1], [0], [0], [1], [0, 0, 1, 1], [], []>} : vector<8x8xf32>, vector<8x8xf32>, vector<8x8xf32> -> vector<8x8xf32>
    %53 = vector.broadcast %51 : vector<8x1xf32> to vector<8x8xf32>
    %54 = arith.mulf %52, %53 : vector<8x8xf32>
    %55 = vector.extract_strided_slice %20 {offsets = [0, 16], sizes = [8, 8], strides = [1, 1]} : vector<16x32xf32> to vector<8x8xf32>
    %56 = vector.extract_strided_slice %21 {offsets = [0, 16], sizes = [8, 8], strides = [1, 1]} : vector<16x32xf32> to vector<8x8xf32>
    %57 = vector.extract_strided_slice %22 {offsets = [0, 16], sizes = [8, 8], strides = [1, 1]} : vector<16x32xf32> to vector<8x8xf32>
    %cst_32 = arith.constant dense<0.000000e+00> : vector<8x8xf32>
    %58 = tpu.matmul %55, %56, %cst_32 {dimension_numbers = #tpu.dot_dimension_numbers<[1], [1], [0], [0], [0, 0, 1, 0], [], []>} : vector<8x8xf32>, vector<8x8xf32>, vector<8x8xf32> -> vector<8x8xf32>
    %cst_33 = arith.constant dense<0xFF800000> : vector<8xf32>
    %59 = vector.multi_reduction <maximumf>, %58, %cst_33 [1] : vector<8x8xf32> to vector<8xf32>
    %60 = vector.shape_cast %59 : vector<8xf32> to vector<8x1xf32>
    %61 = vector.broadcast %60 : vector<8x1xf32> to vector<8x8xf32>
    %62 = arith.subf %58, %61 : vector<8x8xf32>
    %63 = math.exp %62 : vector<8x8xf32>
    %cst_34 = arith.constant dense<0.000000e+00> : vector<8xf32>
    %64 = vector.multi_reduction <add>, %63, %cst_34 [1] : vector<8x8xf32> to vector<8xf32>
    %65 = vector.shape_cast %64 : vector<8xf32> to vector<8x1xf32>
    %cst_35 = arith.constant 1.000000e+00 : f32
    %66 = vector.broadcast %cst_35 : f32 to vector<8x1xf32>
    %67 = arith.divf %66, %65 : vector<8x1xf32>
    %cst_36 = arith.constant dense<0.000000e+00> : vector<8x8xf32>
    %68 = tpu.matmul %63, %57, %cst_36 {dimension_numbers = #tpu.dot_dimension_numbers<[1], [0], [0], [1], [0, 0, 1, 1], [], []>} : vector<8x8xf32>, vector<8x8xf32>, vector<8x8xf32> -> vector<8x8xf32>
    %69 = vector.broadcast %67 : vector<8x1xf32> to vector<8x8xf32>
    %70 = arith.mulf %68, %69 : vector<8x8xf32>
    %71 = vector.extract_strided_slice %20 {offsets = [0, 24], sizes = [8, 8], strides = [1, 1]} : vector<16x32xf32> to vector<8x8xf32>
    %72 = vector.extract_strided_slice %21 {offsets = [0, 24], sizes = [8, 8], strides = [1, 1]} : vector<16x32xf32> to vector<8x8xf32>
    %73 = vector.extract_strided_slice %22 {offsets = [0, 24], sizes = [8, 8], strides = [1, 1]} : vector<16x32xf32> to vector<8x8xf32>
    %cst_37 = arith.constant dense<0.000000e+00> : vector<8x8xf32>
    %74 = tpu.matmul %71, %72, %cst_37 {dimension_numbers = #tpu.dot_dimension_numbers<[1], [1], [0], [0], [0, 0, 1, 0], [], []>} : vector<8x8xf32>, vector<8x8xf32>, vector<8x8xf32> -> vector<8x8xf32>
    %cst_38 = arith.constant dense<0xFF800000> : vector<8xf32>
    %75 = vector.multi_reduction <maximumf>, %74, %cst_38 [1] : vector<8x8xf32> to vector<8xf32>
    %76 = vector.shape_cast %75 : vector<8xf32> to vector<8x1xf32>
    %77 = vector.broadcast %76 : vector<8x1xf32> to vector<8x8xf32>
    %78 = arith.subf %74, %77 : vector<8x8xf32>
    %79 = math.exp %78 : vector<8x8xf32>
    %cst_39 = arith.constant dense<0.000000e+00> : vector<8xf32>
    %80 = vector.multi_reduction <add>, %79, %cst_39 [1] : vector<8x8xf32> to vector<8xf32>
    %81 = vector.shape_cast %80 : vector<8xf32> to vector<8x1xf32>
    %cst_40 = arith.constant 1.000000e+00 : f32
    %82 = vector.broadcast %cst_40 : f32 to vector<8x1xf32>
    %83 = arith.divf %82, %81 : vector<8x1xf32>
    %cst_41 = arith.constant dense<0.000000e+00> : vector<8x8xf32>
    %84 = tpu.matmul %79, %73, %cst_41 {dimension_numbers = #tpu.dot_dimension_numbers<[1], [0], [0], [1], [0, 0, 1, 1], [], []>} : vector<8x8xf32>, vector<8x8xf32>, vector<8x8xf32> -> vector<8x8xf32>
    %85 = vector.broadcast %83 : vector<8x1xf32> to vector<8x8xf32>
    %86 = arith.mulf %84, %85 : vector<8x8xf32>
    %87 = tpu.concatenate %38, %54, %70, %86 in 1 : vector<8x8xf32>, vector<8x8xf32>, vector<8x8xf32>, vector<8x8xf32> -> vector<8x32xf32>
    %88 = vector.extract_strided_slice %20 {offsets = [8, 0], sizes = [8, 8], strides = [1, 1]} : vector<16x32xf32> to vector<8x8xf32>
    %89 = vector.extract_strided_slice %21 {offsets = [8, 0], sizes = [8, 8], strides = [1, 1]} : vector<16x32xf32> to vector<8x8xf32>
    %90 = vector.extract_strided_slice %22 {offsets = [8, 0], sizes = [8, 8], strides = [1, 1]} : vector<16x32xf32> to vector<8x8xf32>
    %cst_42 = arith.constant dense<0.000000e+00> : vector<8x8xf32>
    %91 = tpu.matmul %88, %89, %cst_42 {dimension_numbers = #tpu.dot_dimension_numbers<[1], [1], [0], [0], [0, 0, 1, 0], [], []>} : vector<8x8xf32>, vector<8x8xf32>, vector<8x8xf32> -> vector<8x8xf32>
    %cst_43 = arith.constant dense<0xFF800000> : vector<8xf32>
    %92 = vector.multi_reduction <maximumf>, %91, %cst_43 [1] : vector<8x8xf32> to vector<8xf32>
    %93 = vector.shape_cast %92 : vector<8xf32> to vector<8x1xf32>
    %94 = vector.broadcast %93 : vector<8x1xf32> to vector<8x8xf32>
    %95 = arith.subf %91, %94 : vector<8x8xf32>
    %96 = math.exp %95 : vector<8x8xf32>
    %cst_44 = arith.constant dense<0.000000e+00> : vector<8xf32>
    %97 = vector.multi_reduction <add>, %96, %cst_44 [1] : vector<8x8xf32> to vector<8xf32>
    %98 = vector.shape_cast %97 : vector<8xf32> to vector<8x1xf32>
    %cst_45 = arith.constant 1.000000e+00 : f32
    %99 = vector.broadcast %cst_45 : f32 to vector<8x1xf32>
    %100 = arith.divf %99, %98 : vector<8x1xf32>
    %cst_46 = arith.constant dense<0.000000e+00> : vector<8x8xf32>
    %101 = tpu.matmul %96, %90, %cst_46 {dimension_numbers = #tpu.dot_dimension_numbers<[1], [0], [0], [1], [0, 0, 1, 1], [], []>} : vector<8x8xf32>, vector<8x8xf32>, vector<8x8xf32> -> vector<8x8xf32>
    %102 = vector.broadcast %100 : vector<8x1xf32> to vector<8x8xf32>
    %103 = arith.mulf %101, %102 : vector<8x8xf32>
    %104 = vector.extract_strided_slice %20 {offsets = [8, 8], sizes = [8, 8], strides = [1, 1]} : vector<16x32xf32> to vector<8x8xf32>
    %105 = vector.extract_strided_slice %21 {offsets = [8, 8], sizes = [8, 8], strides = [1, 1]} : vector<16x32xf32> to vector<8x8xf32>
    %106 = vector.extract_strided_slice %22 {offsets = [8, 8], sizes = [8, 8], strides = [1, 1]} : vector<16x32xf32> to vector<8x8xf32>
    %cst_47 = arith.constant dense<0.000000e+00> : vector<8x8xf32>
    %107 = tpu.matmul %104, %105, %cst_47 {dimension_numbers = #tpu.dot_dimension_numbers<[1], [1], [0], [0], [0, 0, 1, 0], [], []>} : vector<8x8xf32>, vector<8x8xf32>, vector<8x8xf32> -> vector<8x8xf32>
    %cst_48 = arith.constant dense<0xFF800000> : vector<8xf32>
    %108 = vector.multi_reduction <maximumf>, %107, %cst_48 [1] : vector<8x8xf32> to vector<8xf32>
    %109 = vector.shape_cast %108 : vector<8xf32> to vector<8x1xf32>
    %110 = vector.broadcast %109 : vector<8x1xf32> to vector<8x8xf32>
    %111 = arith.subf %107, %110 : vector<8x8xf32>
    %112 = math.exp %111 : vector<8x8xf32>
    %cst_49 = arith.constant dense<0.000000e+00> : vector<8xf32>
    %113 = vector.multi_reduction <add>, %112, %cst_49 [1] : vector<8x8xf32> to vector<8xf32>
    %114 = vector.shape_cast %113 : vector<8xf32> to vector<8x1xf32>
    %cst_50 = arith.constant 1.000000e+00 : f32
    %115 = vector.broadcast %cst_50 : f32 to vector<8x1xf32>
    %116 = arith.divf %115, %114 : vector<8x1xf32>
    %cst_51 = arith.constant dense<0.000000e+00> : vector<8x8xf32>
    %117 = tpu.matmul %112, %106, %cst_51 {dimension_numbers = #tpu.dot_dimension_numbers<[1], [0], [0], [1], [0, 0, 1, 1], [], []>} : vector<8x8xf32>, vector<8x8xf32>, vector<8x8xf32> -> vector<8x8xf32>
    %118 = vector.broadcast %116 : vector<8x1xf32> to vector<8x8xf32>
    %119 = arith.mulf %117, %118 : vector<8x8xf32>
    %120 = vector.extract_strided_slice %20 {offsets = [8, 16], sizes = [8, 8], strides = [1, 1]} : vector<16x32xf32> to vector<8x8xf32>
    %121 = vector.extract_strided_slice %21 {offsets = [8, 16], sizes = [8, 8], strides = [1, 1]} : vector<16x32xf32> to vector<8x8xf32>
    %122 = vector.extract_strided_slice %22 {offsets = [8, 16], sizes = [8, 8], strides = [1, 1]} : vector<16x32xf32> to vector<8x8xf32>
    %cst_52 = arith.constant dense<0.000000e+00> : vector<8x8xf32>
    %123 = tpu.matmul %120, %121, %cst_52 {dimension_numbers = #tpu.dot_dimension_numbers<[1], [1], [0], [0], [0, 0, 1, 0], [], []>} : vector<8x8xf32>, vector<8x8xf32>, vector<8x8xf32> -> vector<8x8xf32>
    %cst_53 = arith.constant dense<0xFF800000> : vector<8xf32>
    %124 = vector.multi_reduction <maximumf>, %123, %cst_53 [1] : vector<8x8xf32> to vector<8xf32>
    %125 = vector.shape_cast %124 : vector<8xf32> to vector<8x1xf32>
    %126 = vector.broadcast %125 : vector<8x1xf32> to vector<8x8xf32>
    %127 = arith.subf %123, %126 : vector<8x8xf32>
    %128 = math.exp %127 : vector<8x8xf32>
    %cst_54 = arith.constant dense<0.000000e+00> : vector<8xf32>
    %129 = vector.multi_reduction <add>, %128, %cst_54 [1] : vector<8x8xf32> to vector<8xf32>
    %130 = vector.shape_cast %129 : vector<8xf32> to vector<8x1xf32>
    %cst_55 = arith.constant 1.000000e+00 : f32
    %131 = vector.broadcast %cst_55 : f32 to vector<8x1xf32>
    %132 = arith.divf %131, %130 : vector<8x1xf32>
    %cst_56 = arith.constant dense<0.000000e+00> : vector<8x8xf32>
    %133 = tpu.matmul %128, %122, %cst_56 {dimension_numbers = #tpu.dot_dimension_numbers<[1], [0], [0], [1], [0, 0, 1, 1], [], []>} : vector<8x8xf32>, vector<8x8xf32>, vector<8x8xf32> -> vector<8x8xf32>
    %134 = vector.broadcast %132 : vector<8x1xf32> to vector<8x8xf32>
    %135 = arith.mulf %133, %134 : vector<8x8xf32>
    %136 = vector.extract_strided_slice %20 {offsets = [8, 24], sizes = [8, 8], strides = [1, 1]} : vector<16x32xf32> to vector<8x8xf32>
    %137 = vector.extract_strided_slice %21 {offsets = [8, 24], sizes = [8, 8], strides = [1, 1]} : vector<16x32xf32> to vector<8x8xf32>
    %138 = vector.extract_strided_slice %22 {offsets = [8, 24], sizes = [8, 8], strides = [1, 1]} : vector<16x32xf32> to vector<8x8xf32>
    %cst_57 = arith.constant dense<0.000000e+00> : vector<8x8xf32>
    %139 = tpu.matmul %136, %137, %cst_57 {dimension_numbers = #tpu.dot_dimension_numbers<[1], [1], [0], [0], [0, 0, 1, 0], [], []>} : vector<8x8xf32>, vector<8x8xf32>, vector<8x8xf32> -> vector<8x8xf32>
    %cst_58 = arith.constant dense<0xFF800000> : vector<8xf32>
    %140 = vector.multi_reduction <maximumf>, %139, %cst_58 [1] : vector<8x8xf32> to vector<8xf32>
    %141 = vector.shape_cast %140 : vector<8xf32> to vector<8x1xf32>
    %142 = vector.broadcast %141 : vector<8x1xf32> to vector<8x8xf32>
    %143 = arith.subf %139, %142 : vector<8x8xf32>
    %144 = math.exp %143 : vector<8x8xf32>
    %cst_59 = arith.constant dense<0.000000e+00> : vector<8xf32>
    %145 = vector.multi_reduction <add>, %144, %cst_59 [1] : vector<8x8xf32> to vector<8xf32>
    %146 = vector.shape_cast %145 : vector<8xf32> to vector<8x1xf32>
    %cst_60 = arith.constant 1.000000e+00 : f32
    %147 = vector.broadcast %cst_60 : f32 to vector<8x1xf32>
    %148 = arith.divf %147, %146 : vector<8x1xf32>
    %cst_61 = arith.constant dense<0.000000e+00> : vector<8x8xf32>
    %149 = tpu.matmul %144, %138, %cst_61 {dimension_numbers = #tpu.dot_dimension_numbers<[1], [0], [0], [1], [0, 0, 1, 1], [], []>} : vector<8x8xf32>, vector<8x8xf32>, vector<8x8xf32> -> vector<8x8xf32>
    %150 = vector.broadcast %148 : vector<8x1xf32> to vector<8x8xf32>
    %151 = arith.mulf %149, %150 : vector<8x8xf32>
    %152 = tpu.concatenate %103, %119, %135, %151 in 1 : vector<8x8xf32>, vector<8x8xf32>, vector<8x8xf32>, vector<8x8xf32> -> vector<8x32xf32>
    %153 = tpu.concatenate %87, %152 in 0 : vector<8x32xf32>, vector<8x32xf32> -> vector<16x32xf32>
    %cst_62 = arith.constant dense<0.000000e+00> : vector<16x32xf32>
    %154 = tpu.matmul %153, %14, %cst_62 {dimension_numbers = #tpu.dot_dimension_numbers<[1], [0], [0], [1], [0, 0, 1, 1], [], []>} : vector<16x32xf32>, vector<32x32xf32>, vector<16x32xf32> -> vector<16x32xf32>
    %155 = vector.broadcast %16 : vector<1x32xf32> to vector<16x32xf32>
    %156 = arith.addf %154, %155 : vector<16x32xf32>
    %157 = arith.addf %3, %156 : vector<16x32xf32>
    %158 = vector.extract_strided_slice %6 {offsets = [0, 0], sizes = [1, 32], strides = [1, 1]} : vector<6x32xf32> to vector<1x32xf32>
    %159 = vector.extract_strided_slice %8 {offsets = [0, 0], sizes = [1, 32], strides = [1, 1]} : vector<6x32xf32> to vector<1x32xf32>
    %cst_63 = arith.constant dense<0.000000e+00> : vector<16xf32>
    %160 = vector.multi_reduction <add>, %157, %cst_63 [1] : vector<16x32xf32> to vector<16xf32>
    %161 = vector.shape_cast %160 : vector<16xf32> to vector<16x1xf32>
    %cst_64 = arith.constant 3.200000e+01 : f32
    %162 = vector.broadcast %cst_64 : f32 to vector<16x1xf32>
    %163 = arith.divf %161, %162 : vector<16x1xf32>
    %164 = vector.broadcast %163 : vector<16x1xf32> to vector<16x32xf32>
    %165 = arith.subf %157, %164 : vector<16x32xf32>
    %166 = arith.mulf %165, %165 : vector<16x32xf32>
    %cst_65 = arith.constant dense<0.000000e+00> : vector<16xf32>
    %167 = vector.multi_reduction <add>, %166, %cst_65 [1] : vector<16x32xf32> to vector<16xf32>
    %168 = vector.shape_cast %167 : vector<16xf32> to vector<16x1xf32>
    %cst_66 = arith.constant 3.200000e+01 : f32
    %169 = vector.broadcast %cst_66 : f32 to vector<16x1xf32>
    %170 = arith.divf %168, %169 : vector<16x1xf32>
    %171 = vector.broadcast %163 : vector<16x1xf32> to vector<16x32xf32>
    %172 = arith.subf %157, %171 : vector<16x32xf32>
    %cst_67 = arith.constant 9.99999974E-6 : f32
    %173 = vector.broadcast %cst_67 : f32 to vector<16x1xf32>
    %174 = arith.addf %170, %173 : vector<16x1xf32>
    %175 = math.rsqrt %174 : vector<16x1xf32>
    %176 = vector.broadcast %175 : vector<16x1xf32> to vector<16x32xf32>
    %177 = arith.mulf %172, %176 : vector<16x32xf32>
    %178 = vector.broadcast %158 : vector<1x32xf32> to vector<16x32xf32>
    %179 = arith.mulf %177, %178 : vector<16x32xf32>
    %180 = vector.broadcast %159 : vector<1x32xf32> to vector<16x32xf32>
    %181 = arith.addf %179, %180 : vector<16x32xf32>
    %c0_68 = arith.constant 0 : index
    %c0_69 = arith.constant 0 : index
    %c0_70 = arith.constant 0 : index
    %182 = vector.load %arg7[%c0_68, %c0_69, %c0_70] : memref<1x32x96xf32, #tpu.memory_space<vmem>>, vector<1x32x96xf32>
    %183 = vector.shape_cast %182 : vector<1x32x96xf32> to vector<32x96xf32>
    %c0_71 = arith.constant 0 : index
    %c0_72 = arith.constant 0 : index
    %c0_73 = arith.constant 0 : index
    %184 = vector.load %arg8[%c0_71, %c0_72, %c0_73] : memref<1x1x96xf32, #tpu.memory_space<vmem>>, vector<1x1x96xf32>
    %185 = vector.shape_cast %184 : vector<1x1x96xf32> to vector<1x96xf32>
    %c0_74 = arith.constant 0 : index
    %c0_75 = arith.constant 0 : index
    %c0_76 = arith.constant 0 : index
    %186 = vector.load %arg9[%c0_74, %c0_75, %c0_76] : memref<1x32x32xf32, #tpu.memory_space<vmem>>, vector<1x32x32xf32>
    %187 = vector.shape_cast %186 : vector<1x32x32xf32> to vector<32x32xf32>
    %c0_77 = arith.constant 0 : index
    %c0_78 = arith.constant 0 : index
    %c0_79 = arith.constant 0 : index
    %188 = vector.load %arg10[%c0_77, %c0_78, %c0_79] : memref<1x1x32xf32, #tpu.memory_space<vmem>>, vector<1x1x32xf32>
    %189 = vector.shape_cast %188 : vector<1x1x32xf32> to vector<1x32xf32>
    %cst_80 = arith.constant dense<0.000000e+00> : vector<16x96xf32>
    %190 = tpu.matmul %4, %183, %cst_80 {dimension_numbers = #tpu.dot_dimension_numbers<[1], [0], [0], [1], [0, 0, 1, 1], [], []>} : vector<16x32xf32>, vector<32x96xf32>, vector<16x96xf32> -> vector<16x96xf32>
    %191 = vector.broadcast %185 : vector<1x96xf32> to vector<16x96xf32>
    %192 = arith.addf %190, %191 : vector<16x96xf32>
    %193 = vector.extract_strided_slice %192 {offsets = [0, 0], sizes = [16, 32], strides = [1, 1]} : vector<16x96xf32> to vector<16x32xf32>
    %194 = vector.extract_strided_slice %192 {offsets = [0, 32], sizes = [16, 32], strides = [1, 1]} : vector<16x96xf32> to vector<16x32xf32>
    %195 = vector.extract_strided_slice %192 {offsets = [0, 64], sizes = [16, 32], strides = [1, 1]} : vector<16x96xf32> to vector<16x32xf32>
    %196 = vector.extract_strided_slice %193 {offsets = [0, 0], sizes = [8, 8], strides = [1, 1]} : vector<16x32xf32> to vector<8x8xf32>
    %197 = vector.extract_strided_slice %194 {offsets = [0, 0], sizes = [8, 8], strides = [1, 1]} : vector<16x32xf32> to vector<8x8xf32>
    %198 = vector.extract_strided_slice %195 {offsets = [0, 0], sizes = [8, 8], strides = [1, 1]} : vector<16x32xf32> to vector<8x8xf32>
    %cst_81 = arith.constant dense<0.000000e+00> : vector<8x8xf32>
    %199 = tpu.matmul %196, %197, %cst_81 {dimension_numbers = #tpu.dot_dimension_numbers<[1], [1], [0], [0], [0, 0, 1, 0], [], []>} : vector<8x8xf32>, vector<8x8xf32>, vector<8x8xf32> -> vector<8x8xf32>
    %cst_82 = arith.constant dense<0xFF800000> : vector<8xf32>
    %200 = vector.multi_reduction <maximumf>, %199, %cst_82 [1] : vector<8x8xf32> to vector<8xf32>
    %201 = vector.shape_cast %200 : vector<8xf32> to vector<8x1xf32>
    %202 = vector.broadcast %201 : vector<8x1xf32> to vector<8x8xf32>
    %203 = arith.subf %199, %202 : vector<8x8xf32>
    %204 = math.exp %203 : vector<8x8xf32>
    %cst_83 = arith.constant dense<0.000000e+00> : vector<8xf32>
    %205 = vector.multi_reduction <add>, %204, %cst_83 [1] : vector<8x8xf32> to vector<8xf32>
    %206 = vector.shape_cast %205 : vector<8xf32> to vector<8x1xf32>
    %cst_84 = arith.constant 1.000000e+00 : f32
    %207 = vector.broadcast %cst_84 : f32 to vector<8x1xf32>
    %208 = arith.divf %207, %206 : vector<8x1xf32>
    %cst_85 = arith.constant dense<0.000000e+00> : vector<8x8xf32>
    %209 = tpu.matmul %204, %198, %cst_85 {dimension_numbers = #tpu.dot_dimension_numbers<[1], [0], [0], [1], [0, 0, 1, 1], [], []>} : vector<8x8xf32>, vector<8x8xf32>, vector<8x8xf32> -> vector<8x8xf32>
    %210 = vector.broadcast %208 : vector<8x1xf32> to vector<8x8xf32>
    %211 = arith.mulf %209, %210 : vector<8x8xf32>
    %212 = vector.extract_strided_slice %193 {offsets = [0, 8], sizes = [8, 8], strides = [1, 1]} : vector<16x32xf32> to vector<8x8xf32>
    %213 = vector.extract_strided_slice %194 {offsets = [0, 8], sizes = [8, 8], strides = [1, 1]} : vector<16x32xf32> to vector<8x8xf32>
    %214 = vector.extract_strided_slice %195 {offsets = [0, 8], sizes = [8, 8], strides = [1, 1]} : vector<16x32xf32> to vector<8x8xf32>
    %cst_86 = arith.constant dense<0.000000e+00> : vector<8x8xf32>
    %215 = tpu.matmul %212, %213, %cst_86 {dimension_numbers = #tpu.dot_dimension_numbers<[1], [1], [0], [0], [0, 0, 1, 0], [], []>} : vector<8x8xf32>, vector<8x8xf32>, vector<8x8xf32> -> vector<8x8xf32>
    %cst_87 = arith.constant dense<0xFF800000> : vector<8xf32>
    %216 = vector.multi_reduction <maximumf>, %215, %cst_87 [1] : vector<8x8xf32> to vector<8xf32>
    %217 = vector.shape_cast %216 : vector<8xf32> to vector<8x1xf32>
    %218 = vector.broadcast %217 : vector<8x1xf32> to vector<8x8xf32>
    %219 = arith.subf %215, %218 : vector<8x8xf32>
    %220 = math.exp %219 : vector<8x8xf32>
    %cst_88 = arith.constant dense<0.000000e+00> : vector<8xf32>
    %221 = vector.multi_reduction <add>, %220, %cst_88 [1] : vector<8x8xf32> to vector<8xf32>
    %222 = vector.shape_cast %221 : vector<8xf32> to vector<8x1xf32>
    %cst_89 = arith.constant 1.000000e+00 : f32
    %223 = vector.broadcast %cst_89 : f32 to vector<8x1xf32>
    %224 = arith.divf %223, %222 : vector<8x1xf32>
    %cst_90 = arith.constant dense<0.000000e+00> : vector<8x8xf32>
    %225 = tpu.matmul %220, %214, %cst_90 {dimension_numbers = #tpu.dot_dimension_numbers<[1], [0], [0], [1], [0, 0, 1, 1], [], []>} : vector<8x8xf32>, vector<8x8xf32>, vector<8x8xf32> -> vector<8x8xf32>
    %226 = vector.broadcast %224 : vector<8x1xf32> to vector<8x8xf32>
    %227 = arith.mulf %225, %226 : vector<8x8xf32>
    %228 = vector.extract_strided_slice %193 {offsets = [0, 16], sizes = [8, 8], strides = [1, 1]} : vector<16x32xf32> to vector<8x8xf32>
    %229 = vector.extract_strided_slice %194 {offsets = [0, 16], sizes = [8, 8], strides = [1, 1]} : vector<16x32xf32> to vector<8x8xf32>
    %230 = vector.extract_strided_slice %195 {offsets = [0, 16], sizes = [8, 8], strides = [1, 1]} : vector<16x32xf32> to vector<8x8xf32>
    %cst_91 = arith.constant dense<0.000000e+00> : vector<8x8xf32>
    %231 = tpu.matmul %228, %229, %cst_91 {dimension_numbers = #tpu.dot_dimension_numbers<[1], [1], [0], [0], [0, 0, 1, 0], [], []>} : vector<8x8xf32>, vector<8x8xf32>, vector<8x8xf32> -> vector<8x8xf32>
    %cst_92 = arith.constant dense<0xFF800000> : vector<8xf32>
    %232 = vector.multi_reduction <maximumf>, %231, %cst_92 [1] : vector<8x8xf32> to vector<8xf32>
    %233 = vector.shape_cast %232 : vector<8xf32> to vector<8x1xf32>
    %234 = vector.broadcast %233 : vector<8x1xf32> to vector<8x8xf32>
    %235 = arith.subf %231, %234 : vector<8x8xf32>
    %236 = math.exp %235 : vector<8x8xf32>
    %cst_93 = arith.constant dense<0.000000e+00> : vector<8xf32>
    %237 = vector.multi_reduction <add>, %236, %cst_93 [1] : vector<8x8xf32> to vector<8xf32>
    %238 = vector.shape_cast %237 : vector<8xf32> to vector<8x1xf32>
    %cst_94 = arith.constant 1.000000e+00 : f32
    %239 = vector.broadcast %cst_94 : f32 to vector<8x1xf32>
    %240 = arith.divf %239, %238 : vector<8x1xf32>
    %cst_95 = arith.constant dense<0.000000e+00> : vector<8x8xf32>
    %241 = tpu.matmul %236, %230, %cst_95 {dimension_numbers = #tpu.dot_dimension_numbers<[1], [0], [0], [1], [0, 0, 1, 1], [], []>} : vector<8x8xf32>, vector<8x8xf32>, vector<8x8xf32> -> vector<8x8xf32>
    %242 = vector.broadcast %240 : vector<8x1xf32> to vector<8x8xf32>
    %243 = arith.mulf %241, %242 : vector<8x8xf32>
    %244 = vector.extract_strided_slice %193 {offsets = [0, 24], sizes = [8, 8], strides = [1, 1]} : vector<16x32xf32> to vector<8x8xf32>
    %245 = vector.extract_strided_slice %194 {offsets = [0, 24], sizes = [8, 8], strides = [1, 1]} : vector<16x32xf32> to vector<8x8xf32>
    %246 = vector.extract_strided_slice %195 {offsets = [0, 24], sizes = [8, 8], strides = [1, 1]} : vector<16x32xf32> to vector<8x8xf32>
    %cst_96 = arith.constant dense<0.000000e+00> : vector<8x8xf32>
    %247 = tpu.matmul %244, %245, %cst_96 {dimension_numbers = #tpu.dot_dimension_numbers<[1], [1], [0], [0], [0, 0, 1, 0], [], []>} : vector<8x8xf32>, vector<8x8xf32>, vector<8x8xf32> -> vector<8x8xf32>
    %cst_97 = arith.constant dense<0xFF800000> : vector<8xf32>
    %248 = vector.multi_reduction <maximumf>, %247, %cst_97 [1] : vector<8x8xf32> to vector<8xf32>
    %249 = vector.shape_cast %248 : vector<8xf32> to vector<8x1xf32>
    %250 = vector.broadcast %249 : vector<8x1xf32> to vector<8x8xf32>
    %251 = arith.subf %247, %250 : vector<8x8xf32>
    %252 = math.exp %251 : vector<8x8xf32>
    %cst_98 = arith.constant dense<0.000000e+00> : vector<8xf32>
    %253 = vector.multi_reduction <add>, %252, %cst_98 [1] : vector<8x8xf32> to vector<8xf32>
    %254 = vector.shape_cast %253 : vector<8xf32> to vector<8x1xf32>
    %cst_99 = arith.constant 1.000000e+00 : f32
    %255 = vector.broadcast %cst_99 : f32 to vector<8x1xf32>
    %256 = arith.divf %255, %254 : vector<8x1xf32>
    %cst_100 = arith.constant dense<0.000000e+00> : vector<8x8xf32>
    %257 = tpu.matmul %252, %246, %cst_100 {dimension_numbers = #tpu.dot_dimension_numbers<[1], [0], [0], [1], [0, 0, 1, 1], [], []>} : vector<8x8xf32>, vector<8x8xf32>, vector<8x8xf32> -> vector<8x8xf32>
    %258 = vector.broadcast %256 : vector<8x1xf32> to vector<8x8xf32>
    %259 = arith.mulf %257, %258 : vector<8x8xf32>
    %260 = tpu.concatenate %211, %227, %243, %259 in 1 : vector<8x8xf32>, vector<8x8xf32>, vector<8x8xf32>, vector<8x8xf32> -> vector<8x32xf32>
    %261 = vector.extract_strided_slice %193 {offsets = [8, 0], sizes = [8, 8], strides = [1, 1]} : vector<16x32xf32> to vector<8x8xf32>
    %262 = vector.extract_strided_slice %194 {offsets = [8, 0], sizes = [8, 8], strides = [1, 1]} : vector<16x32xf32> to vector<8x8xf32>
    %263 = vector.extract_strided_slice %195 {offsets = [8, 0], sizes = [8, 8], strides = [1, 1]} : vector<16x32xf32> to vector<8x8xf32>
    %cst_101 = arith.constant dense<0.000000e+00> : vector<8x8xf32>
    %264 = tpu.matmul %261, %262, %cst_101 {dimension_numbers = #tpu.dot_dimension_numbers<[1], [1], [0], [0], [0, 0, 1, 0], [], []>} : vector<8x8xf32>, vector<8x8xf32>, vector<8x8xf32> -> vector<8x8xf32>
    %cst_102 = arith.constant dense<0xFF800000> : vector<8xf32>
    %265 = vector.multi_reduction <maximumf>, %264, %cst_102 [1] : vector<8x8xf32> to vector<8xf32>
    %266 = vector.shape_cast %265 : vector<8xf32> to vector<8x1xf32>
    %267 = vector.broadcast %266 : vector<8x1xf32> to vector<8x8xf32>
    %268 = arith.subf %264, %267 : vector<8x8xf32>
    %269 = math.exp %268 : vector<8x8xf32>
    %cst_103 = arith.constant dense<0.000000e+00> : vector<8xf32>
    %270 = vector.multi_reduction <add>, %269, %cst_103 [1] : vector<8x8xf32> to vector<8xf32>
    %271 = vector.shape_cast %270 : vector<8xf32> to vector<8x1xf32>
    %cst_104 = arith.constant 1.000000e+00 : f32
    %272 = vector.broadcast %cst_104 : f32 to vector<8x1xf32>
    %273 = arith.divf %272, %271 : vector<8x1xf32>
    %cst_105 = arith.constant dense<0.000000e+00> : vector<8x8xf32>
    %274 = tpu.matmul %269, %263, %cst_105 {dimension_numbers = #tpu.dot_dimension_numbers<[1], [0], [0], [1], [0, 0, 1, 1], [], []>} : vector<8x8xf32>, vector<8x8xf32>, vector<8x8xf32> -> vector<8x8xf32>
    %275 = vector.broadcast %273 : vector<8x1xf32> to vector<8x8xf32>
    %276 = arith.mulf %274, %275 : vector<8x8xf32>
    %277 = vector.extract_strided_slice %193 {offsets = [8, 8], sizes = [8, 8], strides = [1, 1]} : vector<16x32xf32> to vector<8x8xf32>
    %278 = vector.extract_strided_slice %194 {offsets = [8, 8], sizes = [8, 8], strides = [1, 1]} : vector<16x32xf32> to vector<8x8xf32>
    %279 = vector.extract_strided_slice %195 {offsets = [8, 8], sizes = [8, 8], strides = [1, 1]} : vector<16x32xf32> to vector<8x8xf32>
    %cst_106 = arith.constant dense<0.000000e+00> : vector<8x8xf32>
    %280 = tpu.matmul %277, %278, %cst_106 {dimension_numbers = #tpu.dot_dimension_numbers<[1], [1], [0], [0], [0, 0, 1, 0], [], []>} : vector<8x8xf32>, vector<8x8xf32>, vector<8x8xf32> -> vector<8x8xf32>
    %cst_107 = arith.constant dense<0xFF800000> : vector<8xf32>
    %281 = vector.multi_reduction <maximumf>, %280, %cst_107 [1] : vector<8x8xf32> to vector<8xf32>
    %282 = vector.shape_cast %281 : vector<8xf32> to vector<8x1xf32>
    %283 = vector.broadcast %282 : vector<8x1xf32> to vector<8x8xf32>
    %284 = arith.subf %280, %283 : vector<8x8xf32>
    %285 = math.exp %284 : vector<8x8xf32>
    %cst_108 = arith.constant dense<0.000000e+00> : vector<8xf32>
    %286 = vector.multi_reduction <add>, %285, %cst_108 [1] : vector<8x8xf32> to vector<8xf32>
    %287 = vector.shape_cast %286 : vector<8xf32> to vector<8x1xf32>
    %cst_109 = arith.constant 1.000000e+00 : f32
    %288 = vector.broadcast %cst_109 : f32 to vector<8x1xf32>
    %289 = arith.divf %288, %287 : vector<8x1xf32>
    %cst_110 = arith.constant dense<0.000000e+00> : vector<8x8xf32>
    %290 = tpu.matmul %285, %279, %cst_110 {dimension_numbers = #tpu.dot_dimension_numbers<[1], [0], [0], [1], [0, 0, 1, 1], [], []>} : vector<8x8xf32>, vector<8x8xf32>, vector<8x8xf32> -> vector<8x8xf32>
    %291 = vector.broadcast %289 : vector<8x1xf32> to vector<8x8xf32>
    %292 = arith.mulf %290, %291 : vector<8x8xf32>
    %293 = vector.extract_strided_slice %193 {offsets = [8, 16], sizes = [8, 8], strides = [1, 1]} : vector<16x32xf32> to vector<8x8xf32>
    %294 = vector.extract_strided_slice %194 {offsets = [8, 16], sizes = [8, 8], strides = [1, 1]} : vector<16x32xf32> to vector<8x8xf32>
    %295 = vector.extract_strided_slice %195 {offsets = [8, 16], sizes = [8, 8], strides = [1, 1]} : vector<16x32xf32> to vector<8x8xf32>
    %cst_111 = arith.constant dense<0.000000e+00> : vector<8x8xf32>
    %296 = tpu.matmul %293, %294, %cst_111 {dimension_numbers = #tpu.dot_dimension_numbers<[1], [1], [0], [0], [0, 0, 1, 0], [], []>} : vector<8x8xf32>, vector<8x8xf32>, vector<8x8xf32> -> vector<8x8xf32>
    %cst_112 = arith.constant dense<0xFF800000> : vector<8xf32>
    %297 = vector.multi_reduction <maximumf>, %296, %cst_112 [1] : vector<8x8xf32> to vector<8xf32>
    %298 = vector.shape_cast %297 : vector<8xf32> to vector<8x1xf32>
    %299 = vector.broadcast %298 : vector<8x1xf32> to vector<8x8xf32>
    %300 = arith.subf %296, %299 : vector<8x8xf32>
    %301 = math.exp %300 : vector<8x8xf32>
    %cst_113 = arith.constant dense<0.000000e+00> : vector<8xf32>
    %302 = vector.multi_reduction <add>, %301, %cst_113 [1] : vector<8x8xf32> to vector<8xf32>
    %303 = vector.shape_cast %302 : vector<8xf32> to vector<8x1xf32>
    %cst_114 = arith.constant 1.000000e+00 : f32
    %304 = vector.broadcast %cst_114 : f32 to vector<8x1xf32>
    %305 = arith.divf %304, %303 : vector<8x1xf32>
    %cst_115 = arith.constant dense<0.000000e+00> : vector<8x8xf32>
    %306 = tpu.matmul %301, %295, %cst_115 {dimension_numbers = #tpu.dot_dimension_numbers<[1], [0], [0], [1], [0, 0, 1, 1], [], []>} : vector<8x8xf32>, vector<8x8xf32>, vector<8x8xf32> -> vector<8x8xf32>
    %307 = vector.broadcast %305 : vector<8x1xf32> to vector<8x8xf32>
    %308 = arith.mulf %306, %307 : vector<8x8xf32>
    %309 = vector.extract_strided_slice %193 {offsets = [8, 24], sizes = [8, 8], strides = [1, 1]} : vector<16x32xf32> to vector<8x8xf32>
    %310 = vector.extract_strided_slice %194 {offsets = [8, 24], sizes = [8, 8], strides = [1, 1]} : vector<16x32xf32> to vector<8x8xf32>
    %311 = vector.extract_strided_slice %195 {offsets = [8, 24], sizes = [8, 8], strides = [1, 1]} : vector<16x32xf32> to vector<8x8xf32>
    %cst_116 = arith.constant dense<0.000000e+00> : vector<8x8xf32>
    %312 = tpu.matmul %309, %310, %cst_116 {dimension_numbers = #tpu.dot_dimension_numbers<[1], [1], [0], [0], [0, 0, 1, 0], [], []>} : vector<8x8xf32>, vector<8x8xf32>, vector<8x8xf32> -> vector<8x8xf32>
    %cst_117 = arith.constant dense<0xFF800000> : vector<8xf32>
    %313 = vector.multi_reduction <maximumf>, %312, %cst_117 [1] : vector<8x8xf32> to vector<8xf32>
    %314 = vector.shape_cast %313 : vector<8xf32> to vector<8x1xf32>
    %315 = vector.broadcast %314 : vector<8x1xf32> to vector<8x8xf32>
    %316 = arith.subf %312, %315 : vector<8x8xf32>
    %317 = math.exp %316 : vector<8x8xf32>
    %cst_118 = arith.constant dense<0.000000e+00> : vector<8xf32>
    %318 = vector.multi_reduction <add>, %317, %cst_118 [1] : vector<8x8xf32> to vector<8xf32>
    %319 = vector.shape_cast %318 : vector<8xf32> to vector<8x1xf32>
    %cst_119 = arith.constant 1.000000e+00 : f32
    %320 = vector.broadcast %cst_119 : f32 to vector<8x1xf32>
    %321 = arith.divf %320, %319 : vector<8x1xf32>
    %cst_120 = arith.constant dense<0.000000e+00> : vector<8x8xf32>
    %322 = tpu.matmul %317, %311, %cst_120 {dimension_numbers = #tpu.dot_dimension_numbers<[1], [0], [0], [1], [0, 0, 1, 1], [], []>} : vector<8x8xf32>, vector<8x8xf32>, vector<8x8xf32> -> vector<8x8xf32>
    %323 = vector.broadcast %321 : vector<8x1xf32> to vector<8x8xf32>
    %324 = arith.mulf %322, %323 : vector<8x8xf32>
    %325 = tpu.concatenate %276, %292, %308, %324 in 1 : vector<8x8xf32>, vector<8x8xf32>, vector<8x8xf32>, vector<8x8xf32> -> vector<8x32xf32>
    %326 = tpu.concatenate %260, %325 in 0 : vector<8x32xf32>, vector<8x32xf32> -> vector<16x32xf32>
    %cst_121 = arith.constant dense<0.000000e+00> : vector<16x32xf32>
    %327 = tpu.matmul %326, %187, %cst_121 {dimension_numbers = #tpu.dot_dimension_numbers<[1], [0], [0], [1], [0, 0, 1, 1], [], []>} : vector<16x32xf32>, vector<32x32xf32>, vector<16x32xf32> -> vector<16x32xf32>
    %328 = vector.broadcast %189 : vector<1x32xf32> to vector<16x32xf32>
    %329 = arith.addf %327, %328 : vector<16x32xf32>
    %330 = arith.addf %4, %329 : vector<16x32xf32>
    %331 = vector.extract_strided_slice %6 {offsets = [1, 0], sizes = [1, 32], strides = [1, 1]} : vector<6x32xf32> to vector<1x32xf32>
    %332 = vector.extract_strided_slice %8 {offsets = [1, 0], sizes = [1, 32], strides = [1, 1]} : vector<6x32xf32> to vector<1x32xf32>
    %cst_122 = arith.constant dense<0.000000e+00> : vector<16xf32>
    %333 = vector.multi_reduction <add>, %330, %cst_122 [1] : vector<16x32xf32> to vector<16xf32>
    %334 = vector.shape_cast %333 : vector<16xf32> to vector<16x1xf32>
    %cst_123 = arith.constant 3.200000e+01 : f32
    %335 = vector.broadcast %cst_123 : f32 to vector<16x1xf32>
    %336 = arith.divf %334, %335 : vector<16x1xf32>
    %337 = vector.broadcast %336 : vector<16x1xf32> to vector<16x32xf32>
    %338 = arith.subf %330, %337 : vector<16x32xf32>
    %339 = arith.mulf %338, %338 : vector<16x32xf32>
    %cst_124 = arith.constant dense<0.000000e+00> : vector<16xf32>
    %340 = vector.multi_reduction <add>, %339, %cst_124 [1] : vector<16x32xf32> to vector<16xf32>
    %341 = vector.shape_cast %340 : vector<16xf32> to vector<16x1xf32>
    %cst_125 = arith.constant 3.200000e+01 : f32
    %342 = vector.broadcast %cst_125 : f32 to vector<16x1xf32>
    %343 = arith.divf %341, %342 : vector<16x1xf32>
    %344 = vector.broadcast %336 : vector<16x1xf32> to vector<16x32xf32>
    %345 = arith.subf %330, %344 : vector<16x32xf32>
    %cst_126 = arith.constant 9.99999974E-6 : f32
    %346 = vector.broadcast %cst_126 : f32 to vector<16x1xf32>
    %347 = arith.addf %343, %346 : vector<16x1xf32>
    %348 = math.rsqrt %347 : vector<16x1xf32>
    %349 = vector.broadcast %348 : vector<16x1xf32> to vector<16x32xf32>
    %350 = arith.mulf %345, %349 : vector<16x32xf32>
    %351 = vector.broadcast %331 : vector<1x32xf32> to vector<16x32xf32>
    %352 = arith.mulf %350, %351 : vector<16x32xf32>
    %353 = vector.broadcast %332 : vector<1x32xf32> to vector<16x32xf32>
    %354 = arith.addf %352, %353 : vector<16x32xf32>
    %c0_127 = arith.constant 0 : index
    %c0_128 = arith.constant 0 : index
    %c0_129 = arith.constant 0 : index
    %355 = vector.load %arg11[%c0_127, %c0_128, %c0_129] : memref<1x32x96xf32, #tpu.memory_space<vmem>>, vector<1x32x96xf32>
    %356 = vector.shape_cast %355 : vector<1x32x96xf32> to vector<32x96xf32>
    %c0_130 = arith.constant 0 : index
    %c0_131 = arith.constant 0 : index
    %c0_132 = arith.constant 0 : index
    %357 = vector.load %arg12[%c0_130, %c0_131, %c0_132] : memref<1x1x96xf32, #tpu.memory_space<vmem>>, vector<1x1x96xf32>
    %358 = vector.shape_cast %357 : vector<1x1x96xf32> to vector<1x96xf32>
    %c0_133 = arith.constant 0 : index
    %c0_134 = arith.constant 0 : index
    %c0_135 = arith.constant 0 : index
    %359 = vector.load %arg13[%c0_133, %c0_134, %c0_135] : memref<1x32x32xf32, #tpu.memory_space<vmem>>, vector<1x32x32xf32>
    %360 = vector.shape_cast %359 : vector<1x32x32xf32> to vector<32x32xf32>
    %c0_136 = arith.constant 0 : index
    %c0_137 = arith.constant 0 : index
    %c0_138 = arith.constant 0 : index
    %361 = vector.load %arg14[%c0_136, %c0_137, %c0_138] : memref<1x1x32xf32, #tpu.memory_space<vmem>>, vector<1x1x32xf32>
    %362 = vector.shape_cast %361 : vector<1x1x32xf32> to vector<1x32xf32>
    %363 = vector.extract_strided_slice %356 {offsets = [0, 0], sizes = [32, 32], strides = [1, 1]} : vector<32x96xf32> to vector<32x32xf32>
    %cst_139 = arith.constant dense<0.000000e+00> : vector<16x32xf32>
    %364 = tpu.matmul %181, %363, %cst_139 {dimension_numbers = #tpu.dot_dimension_numbers<[1], [0], [0], [1], [0, 0, 1, 1], [], []>} : vector<16x32xf32>, vector<32x32xf32>, vector<16x32xf32> -> vector<16x32xf32>
    %365 = vector.extract_strided_slice %358 {offsets = [0, 0], sizes = [1, 32], strides = [1, 1]} : vector<1x96xf32> to vector<1x32xf32>
    %366 = vector.broadcast %365 : vector<1x32xf32> to vector<16x32xf32>
    %367 = arith.addf %364, %366 : vector<16x32xf32>
    %368 = vector.extract_strided_slice %356 {offsets = [0, 32], sizes = [32, 64], strides = [1, 1]} : vector<32x96xf32> to vector<32x64xf32>
    %cst_140 = arith.constant dense<0.000000e+00> : vector<16x64xf32>
    %369 = tpu.matmul %354, %368, %cst_140 {dimension_numbers = #tpu.dot_dimension_numbers<[1], [0], [0], [1], [0, 0, 1, 1], [], []>} : vector<16x32xf32>, vector<32x64xf32>, vector<16x64xf32> -> vector<16x64xf32>
    %370 = vector.extract_strided_slice %358 {offsets = [0, 32], sizes = [1, 64], strides = [1, 1]} : vector<1x96xf32> to vector<1x64xf32>
    %371 = vector.broadcast %370 : vector<1x64xf32> to vector<16x64xf32>
    %372 = arith.addf %369, %371 : vector<16x64xf32>
    %373 = vector.extract_strided_slice %372 {offsets = [0, 0], sizes = [16, 32], strides = [1, 1]} : vector<16x64xf32> to vector<16x32xf32>
    %374 = vector.extract_strided_slice %372 {offsets = [0, 32], sizes = [16, 32], strides = [1, 1]} : vector<16x64xf32> to vector<16x32xf32>
    %375 = vector.extract_strided_slice %367 {offsets = [0, 0], sizes = [8, 8], strides = [1, 1]} : vector<16x32xf32> to vector<8x8xf32>
    %376 = vector.extract_strided_slice %373 {offsets = [0, 0], sizes = [8, 8], strides = [1, 1]} : vector<16x32xf32> to vector<8x8xf32>
    %377 = vector.extract_strided_slice %374 {offsets = [0, 0], sizes = [8, 8], strides = [1, 1]} : vector<16x32xf32> to vector<8x8xf32>
    %cst_141 = arith.constant dense<0.000000e+00> : vector<8x8xf32>
    %378 = tpu.matmul %375, %376, %cst_141 {dimension_numbers = #tpu.dot_dimension_numbers<[1], [1], [0], [0], [0, 0, 1, 0], [], []>} : vector<8x8xf32>, vector<8x8xf32>, vector<8x8xf32> -> vector<8x8xf32>
    %cst_142 = arith.constant dense<0xFF800000> : vector<8xf32>
    %379 = vector.multi_reduction <maximumf>, %378, %cst_142 [1] : vector<8x8xf32> to vector<8xf32>
    %380 = vector.shape_cast %379 : vector<8xf32> to vector<8x1xf32>
    %381 = vector.broadcast %380 : vector<8x1xf32> to vector<8x8xf32>
    %382 = arith.subf %378, %381 : vector<8x8xf32>
    %383 = math.exp %382 : vector<8x8xf32>
    %cst_143 = arith.constant dense<0.000000e+00> : vector<8xf32>
    %384 = vector.multi_reduction <add>, %383, %cst_143 [1] : vector<8x8xf32> to vector<8xf32>
    %385 = vector.shape_cast %384 : vector<8xf32> to vector<8x1xf32>
    %cst_144 = arith.constant 1.000000e+00 : f32
    %386 = vector.broadcast %cst_144 : f32 to vector<8x1xf32>
    %387 = arith.divf %386, %385 : vector<8x1xf32>
    %cst_145 = arith.constant dense<0.000000e+00> : vector<8x8xf32>
    %388 = tpu.matmul %383, %377, %cst_145 {dimension_numbers = #tpu.dot_dimension_numbers<[1], [0], [0], [1], [0, 0, 1, 1], [], []>} : vector<8x8xf32>, vector<8x8xf32>, vector<8x8xf32> -> vector<8x8xf32>
    %389 = vector.broadcast %387 : vector<8x1xf32> to vector<8x8xf32>
    %390 = arith.mulf %388, %389 : vector<8x8xf32>
    %391 = vector.extract_strided_slice %367 {offsets = [0, 8], sizes = [8, 8], strides = [1, 1]} : vector<16x32xf32> to vector<8x8xf32>
    %392 = vector.extract_strided_slice %373 {offsets = [0, 8], sizes = [8, 8], strides = [1, 1]} : vector<16x32xf32> to vector<8x8xf32>
    %393 = vector.extract_strided_slice %374 {offsets = [0, 8], sizes = [8, 8], strides = [1, 1]} : vector<16x32xf32> to vector<8x8xf32>
    %cst_146 = arith.constant dense<0.000000e+00> : vector<8x8xf32>
    %394 = tpu.matmul %391, %392, %cst_146 {dimension_numbers = #tpu.dot_dimension_numbers<[1], [1], [0], [0], [0, 0, 1, 0], [], []>} : vector<8x8xf32>, vector<8x8xf32>, vector<8x8xf32> -> vector<8x8xf32>
    %cst_147 = arith.constant dense<0xFF800000> : vector<8xf32>
    %395 = vector.multi_reduction <maximumf>, %394, %cst_147 [1] : vector<8x8xf32> to vector<8xf32>
    %396 = vector.shape_cast %395 : vector<8xf32> to vector<8x1xf32>
    %397 = vector.broadcast %396 : vector<8x1xf32> to vector<8x8xf32>
    %398 = arith.subf %394, %397 : vector<8x8xf32>
    %399 = math.exp %398 : vector<8x8xf32>
    %cst_148 = arith.constant dense<0.000000e+00> : vector<8xf32>
    %400 = vector.multi_reduction <add>, %399, %cst_148 [1] : vector<8x8xf32> to vector<8xf32>
    %401 = vector.shape_cast %400 : vector<8xf32> to vector<8x1xf32>
    %cst_149 = arith.constant 1.000000e+00 : f32
    %402 = vector.broadcast %cst_149 : f32 to vector<8x1xf32>
    %403 = arith.divf %402, %401 : vector<8x1xf32>
    %cst_150 = arith.constant dense<0.000000e+00> : vector<8x8xf32>
    %404 = tpu.matmul %399, %393, %cst_150 {dimension_numbers = #tpu.dot_dimension_numbers<[1], [0], [0], [1], [0, 0, 1, 1], [], []>} : vector<8x8xf32>, vector<8x8xf32>, vector<8x8xf32> -> vector<8x8xf32>
    %405 = vector.broadcast %403 : vector<8x1xf32> to vector<8x8xf32>
    %406 = arith.mulf %404, %405 : vector<8x8xf32>
    %407 = vector.extract_strided_slice %367 {offsets = [0, 16], sizes = [8, 8], strides = [1, 1]} : vector<16x32xf32> to vector<8x8xf32>
    %408 = vector.extract_strided_slice %373 {offsets = [0, 16], sizes = [8, 8], strides = [1, 1]} : vector<16x32xf32> to vector<8x8xf32>
    %409 = vector.extract_strided_slice %374 {offsets = [0, 16], sizes = [8, 8], strides = [1, 1]} : vector<16x32xf32> to vector<8x8xf32>
    %cst_151 = arith.constant dense<0.000000e+00> : vector<8x8xf32>
    %410 = tpu.matmul %407, %408, %cst_151 {dimension_numbers = #tpu.dot_dimension_numbers<[1], [1], [0], [0], [0, 0, 1, 0], [], []>} : vector<8x8xf32>, vector<8x8xf32>, vector<8x8xf32> -> vector<8x8xf32>
    %cst_152 = arith.constant dense<0xFF800000> : vector<8xf32>
    %411 = vector.multi_reduction <maximumf>, %410, %cst_152 [1] : vector<8x8xf32> to vector<8xf32>
    %412 = vector.shape_cast %411 : vector<8xf32> to vector<8x1xf32>
    %413 = vector.broadcast %412 : vector<8x1xf32> to vector<8x8xf32>
    %414 = arith.subf %410, %413 : vector<8x8xf32>
    %415 = math.exp %414 : vector<8x8xf32>
    %cst_153 = arith.constant dense<0.000000e+00> : vector<8xf32>
    %416 = vector.multi_reduction <add>, %415, %cst_153 [1] : vector<8x8xf32> to vector<8xf32>
    %417 = vector.shape_cast %416 : vector<8xf32> to vector<8x1xf32>
    %cst_154 = arith.constant 1.000000e+00 : f32
    %418 = vector.broadcast %cst_154 : f32 to vector<8x1xf32>
    %419 = arith.divf %418, %417 : vector<8x1xf32>
    %cst_155 = arith.constant dense<0.000000e+00> : vector<8x8xf32>
    %420 = tpu.matmul %415, %409, %cst_155 {dimension_numbers = #tpu.dot_dimension_numbers<[1], [0], [0], [1], [0, 0, 1, 1], [], []>} : vector<8x8xf32>, vector<8x8xf32>, vector<8x8xf32> -> vector<8x8xf32>
    %421 = vector.broadcast %419 : vector<8x1xf32> to vector<8x8xf32>
    %422 = arith.mulf %420, %421 : vector<8x8xf32>
    %423 = vector.extract_strided_slice %367 {offsets = [0, 24], sizes = [8, 8], strides = [1, 1]} : vector<16x32xf32> to vector<8x8xf32>
    %424 = vector.extract_strided_slice %373 {offsets = [0, 24], sizes = [8, 8], strides = [1, 1]} : vector<16x32xf32> to vector<8x8xf32>
    %425 = vector.extract_strided_slice %374 {offsets = [0, 24], sizes = [8, 8], strides = [1, 1]} : vector<16x32xf32> to vector<8x8xf32>
    %cst_156 = arith.constant dense<0.000000e+00> : vector<8x8xf32>
    %426 = tpu.matmul %423, %424, %cst_156 {dimension_numbers = #tpu.dot_dimension_numbers<[1], [1], [0], [0], [0, 0, 1, 0], [], []>} : vector<8x8xf32>, vector<8x8xf32>, vector<8x8xf32> -> vector<8x8xf32>
    %cst_157 = arith.constant dense<0xFF800000> : vector<8xf32>
    %427 = vector.multi_reduction <maximumf>, %426, %cst_157 [1] : vector<8x8xf32> to vector<8xf32>
    %428 = vector.shape_cast %427 : vector<8xf32> to vector<8x1xf32>
    %429 = vector.broadcast %428 : vector<8x1xf32> to vector<8x8xf32>
    %430 = arith.subf %426, %429 : vector<8x8xf32>
    %431 = math.exp %430 : vector<8x8xf32>
    %cst_158 = arith.constant dense<0.000000e+00> : vector<8xf32>
    %432 = vector.multi_reduction <add>, %431, %cst_158 [1] : vector<8x8xf32> to vector<8xf32>
    %433 = vector.shape_cast %432 : vector<8xf32> to vector<8x1xf32>
    %cst_159 = arith.constant 1.000000e+00 : f32
    %434 = vector.broadcast %cst_159 : f32 to vector<8x1xf32>
    %435 = arith.divf %434, %433 : vector<8x1xf32>
    %cst_160 = arith.constant dense<0.000000e+00> : vector<8x8xf32>
    %436 = tpu.matmul %431, %425, %cst_160 {dimension_numbers = #tpu.dot_dimension_numbers<[1], [0], [0], [1], [0, 0, 1, 1], [], []>} : vector<8x8xf32>, vector<8x8xf32>, vector<8x8xf32> -> vector<8x8xf32>
    %437 = vector.broadcast %435 : vector<8x1xf32> to vector<8x8xf32>
    %438 = arith.mulf %436, %437 : vector<8x8xf32>
    %439 = tpu.concatenate %390, %406, %422, %438 in 1 : vector<8x8xf32>, vector<8x8xf32>, vector<8x8xf32>, vector<8x8xf32> -> vector<8x32xf32>
    %440 = vector.extract_strided_slice %367 {offsets = [8, 0], sizes = [8, 8], strides = [1, 1]} : vector<16x32xf32> to vector<8x8xf32>
    %441 = vector.extract_strided_slice %373 {offsets = [8, 0], sizes = [8, 8], strides = [1, 1]} : vector<16x32xf32> to vector<8x8xf32>
    %442 = vector.extract_strided_slice %374 {offsets = [8, 0], sizes = [8, 8], strides = [1, 1]} : vector<16x32xf32> to vector<8x8xf32>
    %cst_161 = arith.constant dense<0.000000e+00> : vector<8x8xf32>
    %443 = tpu.matmul %440, %441, %cst_161 {dimension_numbers = #tpu.dot_dimension_numbers<[1], [1], [0], [0], [0, 0, 1, 0], [], []>} : vector<8x8xf32>, vector<8x8xf32>, vector<8x8xf32> -> vector<8x8xf32>
    %cst_162 = arith.constant dense<0xFF800000> : vector<8xf32>
    %444 = vector.multi_reduction <maximumf>, %443, %cst_162 [1] : vector<8x8xf32> to vector<8xf32>
    %445 = vector.shape_cast %444 : vector<8xf32> to vector<8x1xf32>
    %446 = vector.broadcast %445 : vector<8x1xf32> to vector<8x8xf32>
    %447 = arith.subf %443, %446 : vector<8x8xf32>
    %448 = math.exp %447 : vector<8x8xf32>
    %cst_163 = arith.constant dense<0.000000e+00> : vector<8xf32>
    %449 = vector.multi_reduction <add>, %448, %cst_163 [1] : vector<8x8xf32> to vector<8xf32>
    %450 = vector.shape_cast %449 : vector<8xf32> to vector<8x1xf32>
    %cst_164 = arith.constant 1.000000e+00 : f32
    %451 = vector.broadcast %cst_164 : f32 to vector<8x1xf32>
    %452 = arith.divf %451, %450 : vector<8x1xf32>
    %cst_165 = arith.constant dense<0.000000e+00> : vector<8x8xf32>
    %453 = tpu.matmul %448, %442, %cst_165 {dimension_numbers = #tpu.dot_dimension_numbers<[1], [0], [0], [1], [0, 0, 1, 1], [], []>} : vector<8x8xf32>, vector<8x8xf32>, vector<8x8xf32> -> vector<8x8xf32>
    %454 = vector.broadcast %452 : vector<8x1xf32> to vector<8x8xf32>
    %455 = arith.mulf %453, %454 : vector<8x8xf32>
    %456 = vector.extract_strided_slice %367 {offsets = [8, 8], sizes = [8, 8], strides = [1, 1]} : vector<16x32xf32> to vector<8x8xf32>
    %457 = vector.extract_strided_slice %373 {offsets = [8, 8], sizes = [8, 8], strides = [1, 1]} : vector<16x32xf32> to vector<8x8xf32>
    %458 = vector.extract_strided_slice %374 {offsets = [8, 8], sizes = [8, 8], strides = [1, 1]} : vector<16x32xf32> to vector<8x8xf32>
    %cst_166 = arith.constant dense<0.000000e+00> : vector<8x8xf32>
    %459 = tpu.matmul %456, %457, %cst_166 {dimension_numbers = #tpu.dot_dimension_numbers<[1], [1], [0], [0], [0, 0, 1, 0], [], []>} : vector<8x8xf32>, vector<8x8xf32>, vector<8x8xf32> -> vector<8x8xf32>
    %cst_167 = arith.constant dense<0xFF800000> : vector<8xf32>
    %460 = vector.multi_reduction <maximumf>, %459, %cst_167 [1] : vector<8x8xf32> to vector<8xf32>
    %461 = vector.shape_cast %460 : vector<8xf32> to vector<8x1xf32>
    %462 = vector.broadcast %461 : vector<8x1xf32> to vector<8x8xf32>
    %463 = arith.subf %459, %462 : vector<8x8xf32>
    %464 = math.exp %463 : vector<8x8xf32>
    %cst_168 = arith.constant dense<0.000000e+00> : vector<8xf32>
    %465 = vector.multi_reduction <add>, %464, %cst_168 [1] : vector<8x8xf32> to vector<8xf32>
    %466 = vector.shape_cast %465 : vector<8xf32> to vector<8x1xf32>
    %cst_169 = arith.constant 1.000000e+00 : f32
    %467 = vector.broadcast %cst_169 : f32 to vector<8x1xf32>
    %468 = arith.divf %467, %466 : vector<8x1xf32>
    %cst_170 = arith.constant dense<0.000000e+00> : vector<8x8xf32>
    %469 = tpu.matmul %464, %458, %cst_170 {dimension_numbers = #tpu.dot_dimension_numbers<[1], [0], [0], [1], [0, 0, 1, 1], [], []>} : vector<8x8xf32>, vector<8x8xf32>, vector<8x8xf32> -> vector<8x8xf32>
    %470 = vector.broadcast %468 : vector<8x1xf32> to vector<8x8xf32>
    %471 = arith.mulf %469, %470 : vector<8x8xf32>
    %472 = vector.extract_strided_slice %367 {offsets = [8, 16], sizes = [8, 8], strides = [1, 1]} : vector<16x32xf32> to vector<8x8xf32>
    %473 = vector.extract_strided_slice %373 {offsets = [8, 16], sizes = [8, 8], strides = [1, 1]} : vector<16x32xf32> to vector<8x8xf32>
    %474 = vector.extract_strided_slice %374 {offsets = [8, 16], sizes = [8, 8], strides = [1, 1]} : vector<16x32xf32> to vector<8x8xf32>
    %cst_171 = arith.constant dense<0.000000e+00> : vector<8x8xf32>
    %475 = tpu.matmul %472, %473, %cst_171 {dimension_numbers = #tpu.dot_dimension_numbers<[1], [1], [0], [0], [0, 0, 1, 0], [], []>} : vector<8x8xf32>, vector<8x8xf32>, vector<8x8xf32> -> vector<8x8xf32>
    %cst_172 = arith.constant dense<0xFF800000> : vector<8xf32>
    %476 = vector.multi_reduction <maximumf>, %475, %cst_172 [1] : vector<8x8xf32> to vector<8xf32>
    %477 = vector.shape_cast %476 : vector<8xf32> to vector<8x1xf32>
    %478 = vector.broadcast %477 : vector<8x1xf32> to vector<8x8xf32>
    %479 = arith.subf %475, %478 : vector<8x8xf32>
    %480 = math.exp %479 : vector<8x8xf32>
    %cst_173 = arith.constant dense<0.000000e+00> : vector<8xf32>
    %481 = vector.multi_reduction <add>, %480, %cst_173 [1] : vector<8x8xf32> to vector<8xf32>
    %482 = vector.shape_cast %481 : vector<8xf32> to vector<8x1xf32>
    %cst_174 = arith.constant 1.000000e+00 : f32
    %483 = vector.broadcast %cst_174 : f32 to vector<8x1xf32>
    %484 = arith.divf %483, %482 : vector<8x1xf32>
    %cst_175 = arith.constant dense<0.000000e+00> : vector<8x8xf32>
    %485 = tpu.matmul %480, %474, %cst_175 {dimension_numbers = #tpu.dot_dimension_numbers<[1], [0], [0], [1], [0, 0, 1, 1], [], []>} : vector<8x8xf32>, vector<8x8xf32>, vector<8x8xf32> -> vector<8x8xf32>
    %486 = vector.broadcast %484 : vector<8x1xf32> to vector<8x8xf32>
    %487 = arith.mulf %485, %486 : vector<8x8xf32>
    %488 = vector.extract_strided_slice %367 {offsets = [8, 24], sizes = [8, 8], strides = [1, 1]} : vector<16x32xf32> to vector<8x8xf32>
    %489 = vector.extract_strided_slice %373 {offsets = [8, 24], sizes = [8, 8], strides = [1, 1]} : vector<16x32xf32> to vector<8x8xf32>
    %490 = vector.extract_strided_slice %374 {offsets = [8, 24], sizes = [8, 8], strides = [1, 1]} : vector<16x32xf32> to vector<8x8xf32>
    %cst_176 = arith.constant dense<0.000000e+00> : vector<8x8xf32>
    %491 = tpu.matmul %488, %489, %cst_176 {dimension_numbers = #tpu.dot_dimension_numbers<[1], [1], [0], [0], [0, 0, 1, 0], [], []>} : vector<8x8xf32>, vector<8x8xf32>, vector<8x8xf32> -> vector<8x8xf32>
    %cst_177 = arith.constant dense<0xFF800000> : vector<8xf32>
    %492 = vector.multi_reduction <maximumf>, %491, %cst_177 [1] : vector<8x8xf32> to vector<8xf32>
    %493 = vector.shape_cast %492 : vector<8xf32> to vector<8x1xf32>
    %494 = vector.broadcast %493 : vector<8x1xf32> to vector<8x8xf32>
    %495 = arith.subf %491, %494 : vector<8x8xf32>
    %496 = math.exp %495 : vector<8x8xf32>
    %cst_178 = arith.constant dense<0.000000e+00> : vector<8xf32>
    %497 = vector.multi_reduction <add>, %496, %cst_178 [1] : vector<8x8xf32> to vector<8xf32>
    %498 = vector.shape_cast %497 : vector<8xf32> to vector<8x1xf32>
    %cst_179 = arith.constant 1.000000e+00 : f32
    %499 = vector.broadcast %cst_179 : f32 to vector<8x1xf32>
    %500 = arith.divf %499, %498 : vector<8x1xf32>
    %cst_180 = arith.constant dense<0.000000e+00> : vector<8x8xf32>
    %501 = tpu.matmul %496, %490, %cst_180 {dimension_numbers = #tpu.dot_dimension_numbers<[1], [0], [0], [1], [0, 0, 1, 1], [], []>} : vector<8x8xf32>, vector<8x8xf32>, vector<8x8xf32> -> vector<8x8xf32>
    %502 = vector.broadcast %500 : vector<8x1xf32> to vector<8x8xf32>
    %503 = arith.mulf %501, %502 : vector<8x8xf32>
    %504 = tpu.concatenate %455, %471, %487, %503 in 1 : vector<8x8xf32>, vector<8x8xf32>, vector<8x8xf32>, vector<8x8xf32> -> vector<8x32xf32>
    %505 = tpu.concatenate %439, %504 in 0 : vector<8x32xf32>, vector<8x32xf32> -> vector<16x32xf32>
    %cst_181 = arith.constant dense<0.000000e+00> : vector<16x32xf32>
    %506 = tpu.matmul %505, %360, %cst_181 {dimension_numbers = #tpu.dot_dimension_numbers<[1], [0], [0], [1], [0, 0, 1, 1], [], []>} : vector<16x32xf32>, vector<32x32xf32>, vector<16x32xf32> -> vector<16x32xf32>
    %507 = vector.broadcast %362 : vector<1x32xf32> to vector<16x32xf32>
    %508 = arith.addf %506, %507 : vector<16x32xf32>
    %509 = arith.addf %181, %508 : vector<16x32xf32>
    %510 = vector.extract_strided_slice %6 {offsets = [2, 0], sizes = [1, 32], strides = [1, 1]} : vector<6x32xf32> to vector<1x32xf32>
    %511 = vector.extract_strided_slice %8 {offsets = [2, 0], sizes = [1, 32], strides = [1, 1]} : vector<6x32xf32> to vector<1x32xf32>
    %cst_182 = arith.constant dense<0.000000e+00> : vector<16xf32>
    %512 = vector.multi_reduction <add>, %509, %cst_182 [1] : vector<16x32xf32> to vector<16xf32>
    %513 = vector.shape_cast %512 : vector<16xf32> to vector<16x1xf32>
    %cst_183 = arith.constant 3.200000e+01 : f32
    %514 = vector.broadcast %cst_183 : f32 to vector<16x1xf32>
    %515 = arith.divf %513, %514 : vector<16x1xf32>
    %516 = vector.broadcast %515 : vector<16x1xf32> to vector<16x32xf32>
    %517 = arith.subf %509, %516 : vector<16x32xf32>
    %518 = arith.mulf %517, %517 : vector<16x32xf32>
    %cst_184 = arith.constant dense<0.000000e+00> : vector<16xf32>
    %519 = vector.multi_reduction <add>, %518, %cst_184 [1] : vector<16x32xf32> to vector<16xf32>
    %520 = vector.shape_cast %519 : vector<16xf32> to vector<16x1xf32>
    %cst_185 = arith.constant 3.200000e+01 : f32
    %521 = vector.broadcast %cst_185 : f32 to vector<16x1xf32>
    %522 = arith.divf %520, %521 : vector<16x1xf32>
    %523 = vector.broadcast %515 : vector<16x1xf32> to vector<16x32xf32>
    %524 = arith.subf %509, %523 : vector<16x32xf32>
    %cst_186 = arith.constant 9.99999974E-6 : f32
    %525 = vector.broadcast %cst_186 : f32 to vector<16x1xf32>
    %526 = arith.addf %522, %525 : vector<16x1xf32>
    %527 = math.rsqrt %526 : vector<16x1xf32>
    %528 = vector.broadcast %527 : vector<16x1xf32> to vector<16x32xf32>
    %529 = arith.mulf %524, %528 : vector<16x32xf32>
    %530 = vector.broadcast %510 : vector<1x32xf32> to vector<16x32xf32>
    %531 = arith.mulf %529, %530 : vector<16x32xf32>
    %532 = vector.broadcast %511 : vector<1x32xf32> to vector<16x32xf32>
    %533 = arith.addf %531, %532 : vector<16x32xf32>
    %c0_187 = arith.constant 0 : index
    %c0_188 = arith.constant 0 : index
    %c0_189 = arith.constant 0 : index
    %534 = vector.load %arg15[%c0_187, %c0_188, %c0_189] : memref<1x32x64xf32, #tpu.memory_space<vmem>>, vector<1x32x64xf32>
    %535 = vector.shape_cast %534 : vector<1x32x64xf32> to vector<32x64xf32>
    %c0_190 = arith.constant 0 : index
    %c0_191 = arith.constant 0 : index
    %c0_192 = arith.constant 0 : index
    %536 = vector.load %arg16[%c0_190, %c0_191, %c0_192] : memref<1x1x64xf32, #tpu.memory_space<vmem>>, vector<1x1x64xf32>
    %537 = vector.shape_cast %536 : vector<1x1x64xf32> to vector<1x64xf32>
    %c0_193 = arith.constant 0 : index
    %c0_194 = arith.constant 0 : index
    %c0_195 = arith.constant 0 : index
    %538 = vector.load %arg17[%c0_193, %c0_194, %c0_195] : memref<1x64x32xf32, #tpu.memory_space<vmem>>, vector<1x64x32xf32>
    %539 = vector.shape_cast %538 : vector<1x64x32xf32> to vector<64x32xf32>
    %c0_196 = arith.constant 0 : index
    %c0_197 = arith.constant 0 : index
    %c0_198 = arith.constant 0 : index
    %540 = vector.load %arg18[%c0_196, %c0_197, %c0_198] : memref<1x1x32xf32, #tpu.memory_space<vmem>>, vector<1x1x32xf32>
    %541 = vector.shape_cast %540 : vector<1x1x32xf32> to vector<1x32xf32>
    %cst_199 = arith.constant dense<0.000000e+00> : vector<16x64xf32>
    %542 = tpu.matmul %533, %535, %cst_199 {dimension_numbers = #tpu.dot_dimension_numbers<[1], [0], [0], [1], [0, 0, 1, 1], [], []>} : vector<16x32xf32>, vector<32x64xf32>, vector<16x64xf32> -> vector<16x64xf32>
    %543 = vector.broadcast %537 : vector<1x64xf32> to vector<16x64xf32>
    %544 = arith.addf %542, %543 : vector<16x64xf32>
    %cst_200 = arith.constant 0.000000e+00 : f32
    %545 = vector.broadcast %cst_200 : f32 to vector<16x64xf32>
    %546 = arith.maximumf %544, %545 : vector<16x64xf32>
    %cst_201 = arith.constant dense<0.000000e+00> : vector<16x32xf32>
    %547 = tpu.matmul %546, %539, %cst_201 {dimension_numbers = #tpu.dot_dimension_numbers<[1], [0], [0], [1], [0, 0, 1, 1], [], []>} : vector<16x64xf32>, vector<64x32xf32>, vector<16x32xf32> -> vector<16x32xf32>
    %548 = vector.broadcast %541 : vector<1x32xf32> to vector<16x32xf32>
    %549 = arith.addf %547, %548 : vector<16x32xf32>
    %550 = arith.addf %533, %549 : vector<16x32xf32>
    %551 = vector.extract_strided_slice %6 {offsets = [3, 0], sizes = [1, 32], strides = [1, 1]} : vector<6x32xf32> to vector<1x32xf32>
    %552 = vector.extract_strided_slice %8 {offsets = [3, 0], sizes = [1, 32], strides = [1, 1]} : vector<6x32xf32> to vector<1x32xf32>
    %cst_202 = arith.constant dense<0.000000e+00> : vector<16xf32>
    %553 = vector.multi_reduction <add>, %550, %cst_202 [1] : vector<16x32xf32> to vector<16xf32>
    %554 = vector.shape_cast %553 : vector<16xf32> to vector<16x1xf32>
    %cst_203 = arith.constant 3.200000e+01 : f32
    %555 = vector.broadcast %cst_203 : f32 to vector<16x1xf32>
    %556 = arith.divf %554, %555 : vector<16x1xf32>
    %557 = vector.broadcast %556 : vector<16x1xf32> to vector<16x32xf32>
    %558 = arith.subf %550, %557 : vector<16x32xf32>
    %559 = arith.mulf %558, %558 : vector<16x32xf32>
    %cst_204 = arith.constant dense<0.000000e+00> : vector<16xf32>
    %560 = vector.multi_reduction <add>, %559, %cst_204 [1] : vector<16x32xf32> to vector<16xf32>
    %561 = vector.shape_cast %560 : vector<16xf32> to vector<16x1xf32>
    %cst_205 = arith.constant 3.200000e+01 : f32
    %562 = vector.broadcast %cst_205 : f32 to vector<16x1xf32>
    %563 = arith.divf %561, %562 : vector<16x1xf32>
    %564 = vector.broadcast %556 : vector<16x1xf32> to vector<16x32xf32>
    %565 = arith.subf %550, %564 : vector<16x32xf32>
    %cst_206 = arith.constant 9.99999974E-6 : f32
    %566 = vector.broadcast %cst_206 : f32 to vector<16x1xf32>
    %567 = arith.addf %563, %566 : vector<16x1xf32>
    %568 = math.rsqrt %567 : vector<16x1xf32>
    %569 = vector.broadcast %568 : vector<16x1xf32> to vector<16x32xf32>
    %570 = arith.mulf %565, %569 : vector<16x32xf32>
    %571 = vector.broadcast %551 : vector<1x32xf32> to vector<16x32xf32>
    %572 = arith.mulf %570, %571 : vector<16x32xf32>
    %573 = vector.broadcast %552 : vector<1x32xf32> to vector<16x32xf32>
    %574 = arith.addf %572, %573 : vector<16x32xf32>
    %575 = arith.addf %354, %508 : vector<16x32xf32>
    %576 = vector.extract_strided_slice %6 {offsets = [4, 0], sizes = [1, 32], strides = [1, 1]} : vector<6x32xf32> to vector<1x32xf32>
    %577 = vector.extract_strided_slice %8 {offsets = [4, 0], sizes = [1, 32], strides = [1, 1]} : vector<6x32xf32> to vector<1x32xf32>
    %cst_207 = arith.constant dense<0.000000e+00> : vector<16xf32>
    %578 = vector.multi_reduction <add>, %575, %cst_207 [1] : vector<16x32xf32> to vector<16xf32>
    %579 = vector.shape_cast %578 : vector<16xf32> to vector<16x1xf32>
    %cst_208 = arith.constant 3.200000e+01 : f32
    %580 = vector.broadcast %cst_208 : f32 to vector<16x1xf32>
    %581 = arith.divf %579, %580 : vector<16x1xf32>
    %582 = vector.broadcast %581 : vector<16x1xf32> to vector<16x32xf32>
    %583 = arith.subf %575, %582 : vector<16x32xf32>
    %584 = arith.mulf %583, %583 : vector<16x32xf32>
    %cst_209 = arith.constant dense<0.000000e+00> : vector<16xf32>
    %585 = vector.multi_reduction <add>, %584, %cst_209 [1] : vector<16x32xf32> to vector<16xf32>
    %586 = vector.shape_cast %585 : vector<16xf32> to vector<16x1xf32>
    %cst_210 = arith.constant 3.200000e+01 : f32
    %587 = vector.broadcast %cst_210 : f32 to vector<16x1xf32>
    %588 = arith.divf %586, %587 : vector<16x1xf32>
    %589 = vector.broadcast %581 : vector<16x1xf32> to vector<16x32xf32>
    %590 = arith.subf %575, %589 : vector<16x32xf32>
    %cst_211 = arith.constant 9.99999974E-6 : f32
    %591 = vector.broadcast %cst_211 : f32 to vector<16x1xf32>
    %592 = arith.addf %588, %591 : vector<16x1xf32>
    %593 = math.rsqrt %592 : vector<16x1xf32>
    %594 = vector.broadcast %593 : vector<16x1xf32> to vector<16x32xf32>
    %595 = arith.mulf %590, %594 : vector<16x32xf32>
    %596 = vector.broadcast %576 : vector<1x32xf32> to vector<16x32xf32>
    %597 = arith.mulf %595, %596 : vector<16x32xf32>
    %598 = vector.broadcast %577 : vector<1x32xf32> to vector<16x32xf32>
    %599 = arith.addf %597, %598 : vector<16x32xf32>
    %c0_212 = arith.constant 0 : index
    %c0_213 = arith.constant 0 : index
    %c0_214 = arith.constant 0 : index
    %600 = vector.load %arg19[%c0_212, %c0_213, %c0_214] : memref<1x32x64xf32, #tpu.memory_space<vmem>>, vector<1x32x64xf32>
    %601 = vector.shape_cast %600 : vector<1x32x64xf32> to vector<32x64xf32>
    %c0_215 = arith.constant 0 : index
    %c0_216 = arith.constant 0 : index
    %c0_217 = arith.constant 0 : index
    %602 = vector.load %arg20[%c0_215, %c0_216, %c0_217] : memref<1x1x64xf32, #tpu.memory_space<vmem>>, vector<1x1x64xf32>
    %603 = vector.shape_cast %602 : vector<1x1x64xf32> to vector<1x64xf32>
    %c0_218 = arith.constant 0 : index
    %c0_219 = arith.constant 0 : index
    %c0_220 = arith.constant 0 : index
    %604 = vector.load %arg21[%c0_218, %c0_219, %c0_220] : memref<1x64x32xf32, #tpu.memory_space<vmem>>, vector<1x64x32xf32>
    %605 = vector.shape_cast %604 : vector<1x64x32xf32> to vector<64x32xf32>
    %c0_221 = arith.constant 0 : index
    %c0_222 = arith.constant 0 : index
    %c0_223 = arith.constant 0 : index
    %606 = vector.load %arg22[%c0_221, %c0_222, %c0_223] : memref<1x1x32xf32, #tpu.memory_space<vmem>>, vector<1x1x32xf32>
    %607 = vector.shape_cast %606 : vector<1x1x32xf32> to vector<1x32xf32>
    %cst_224 = arith.constant dense<0.000000e+00> : vector<16x64xf32>
    %608 = tpu.matmul %599, %601, %cst_224 {dimension_numbers = #tpu.dot_dimension_numbers<[1], [0], [0], [1], [0, 0, 1, 1], [], []>} : vector<16x32xf32>, vector<32x64xf32>, vector<16x64xf32> -> vector<16x64xf32>
    %609 = vector.broadcast %603 : vector<1x64xf32> to vector<16x64xf32>
    %610 = arith.addf %608, %609 : vector<16x64xf32>
    %cst_225 = arith.constant 0.000000e+00 : f32
    %611 = vector.broadcast %cst_225 : f32 to vector<16x64xf32>
    %612 = arith.maximumf %610, %611 : vector<16x64xf32>
    %cst_226 = arith.constant dense<0.000000e+00> : vector<16x32xf32>
    %613 = tpu.matmul %612, %605, %cst_226 {dimension_numbers = #tpu.dot_dimension_numbers<[1], [0], [0], [1], [0, 0, 1, 1], [], []>} : vector<16x64xf32>, vector<64x32xf32>, vector<16x32xf32> -> vector<16x32xf32>
    %614 = vector.broadcast %607 : vector<1x32xf32> to vector<16x32xf32>
    %615 = arith.addf %613, %614 : vector<16x32xf32>
    %616 = arith.addf %599, %615 : vector<16x32xf32>
    %617 = vector.extract_strided_slice %6 {offsets = [5, 0], sizes = [1, 32], strides = [1, 1]} : vector<6x32xf32> to vector<1x32xf32>
    %618 = vector.extract_strided_slice %8 {offsets = [5, 0], sizes = [1, 32], strides = [1, 1]} : vector<6x32xf32> to vector<1x32xf32>
    %cst_227 = arith.constant dense<0.000000e+00> : vector<16xf32>
    %619 = vector.multi_reduction <add>, %616, %cst_227 [1] : vector<16x32xf32> to vector<16xf32>
    %620 = vector.shape_cast %619 : vector<16xf32> to vector<16x1xf32>
    %cst_228 = arith.constant 3.200000e+01 : f32
    %621 = vector.broadcast %cst_228 : f32 to vector<16x1xf32>
    %622 = arith.divf %620, %621 : vector<16x1xf32>
    %623 = vector.broadcast %622 : vector<16x1xf32> to vector<16x32xf32>
    %624 = arith.subf %616, %623 : vector<16x32xf32>
    %625 = arith.mulf %624, %624 : vector<16x32xf32>
    %cst_229 = arith.constant dense<0.000000e+00> : vector<16xf32>
    %626 = vector.multi_reduction <add>, %625, %cst_229 [1] : vector<16x32xf32> to vector<16xf32>
    %627 = vector.shape_cast %626 : vector<16xf32> to vector<16x1xf32>
    %cst_230 = arith.constant 3.200000e+01 : f32
    %628 = vector.broadcast %cst_230 : f32 to vector<16x1xf32>
    %629 = arith.divf %627, %628 : vector<16x1xf32>
    %630 = vector.broadcast %622 : vector<16x1xf32> to vector<16x32xf32>
    %631 = arith.subf %616, %630 : vector<16x32xf32>
    %cst_231 = arith.constant 9.99999974E-6 : f32
    %632 = vector.broadcast %cst_231 : f32 to vector<16x1xf32>
    %633 = arith.addf %629, %632 : vector<16x1xf32>
    %634 = math.rsqrt %633 : vector<16x1xf32>
    %635 = vector.broadcast %634 : vector<16x1xf32> to vector<16x32xf32>
    %636 = arith.mulf %631, %635 : vector<16x32xf32>
    %637 = vector.broadcast %617 : vector<1x32xf32> to vector<16x32xf32>
    %638 = arith.mulf %636, %637 : vector<16x32xf32>
    %639 = vector.broadcast %618 : vector<1x32xf32> to vector<16x32xf32>
    %640 = arith.addf %638, %639 : vector<16x32xf32>
    %c0_232 = arith.constant 0 : index
    %c0_233 = arith.constant 0 : index
    %641 = vector.load %arg25[%c0_232, %c0_233] : memref<16x32xf32, #tpu.memory_space<vmem>>, vector<16x32xf32>
    tpu.vector_store %arg25[%c0_232, %c0_233], %574 {strides = array<i32>} : memref<16x32xf32, #tpu.memory_space<vmem>>, vector<16x32xf32>,
    %c0_234 = arith.constant 0 : index
    %c0_235 = arith.constant 0 : index
    %642 = vector.load %arg26[%c0_234, %c0_235] : memref<16x32xf32, #tpu.memory_space<vmem>>, vector<16x32xf32>
    tpu.vector_store %arg26[%c0_234, %c0_235], %640 {strides = array<i32>} : memref<16x32xf32, #tpu.memory_space<vmem>>, vector<16x32xf32>,
    return
  }
  func.func @transform_0(%arg0: i32) -> (i32, i32) {
    %c0_i32 = arith.constant 0 : i32
    %c0_i32_0 = arith.constant 0 : i32
    %c0_i32_1 = arith.constant 0 : i32
    return %c0_i32, %c0_i32_0 : i32, i32
  }
  func.func @transform_1(%arg0: i32) -> (i32, i32) {
    %c0_i32 = arith.constant 0 : i32
    %c0_i32_0 = arith.constant 0 : i32
    %c0_i32_1 = arith.constant 0 : i32
    return %c0_i32, %c0_i32_0 : i32, i32
  }
  func.func @transform_2(%arg0: i32) -> (i32, i32, i32) {
    %c0_i32 = arith.constant 0 : i32
    %c0_i32_0 = arith.constant 0 : i32
    %c0_i32_1 = arith.constant 0 : i32
    return %arg0, %c0_i32, %c0_i32_0 : i32, i32, i32
  }
  func.func @transform_3(%arg0: i32) -> (i32, i32, i32) {
    %c0_i32 = arith.constant 0 : i32
    %c0_i32_0 = arith.constant 0 : i32
    %c0_i32_1 = arith.constant 0 : i32
    return %arg0, %c0_i32, %c0_i32_0 : i32, i32, i32
  }
  func.func @transform_4(%arg0: i32) -> (i32, i32, i32) {
    %c0_i32 = arith.constant 0 : i32
    %c0_i32_0 = arith.constant 0 : i32
    %c0_i32_1 = arith.constant 0 : i32
    return %arg0, %c0_i32, %c0_i32_0 : i32, i32, i32
  }
  func.func @transform_5(%arg0: i32) -> (i32, i32, i32) {
    %c0_i32 = arith.constant 0 : i32
    %c0_i32_0 = arith.constant 0 : i32
    %c0_i32_1 = arith.constant 0 : i32
    return %arg0, %c0_i32, %c0_i32_0 : i32, i32, i32
  }
  func.func @transform_6(%arg0: i32) -> (i32, i32, i32) {
    %c0_i32 = arith.constant 0 : i32
    %c0_i32_0 = arith.constant 0 : i32
    %c0_i32_1 = arith.constant 0 : i32
    return %arg0, %c0_i32, %c0_i32_0 : i32, i32, i32
  }
  func.func @transform_7(%arg0: i32) -> (i32, i32, i32) {
    %c0_i32 = arith.constant 0 : i32
    %c0_i32_0 = arith.constant 0 : i32
    %c0_i32_1 = arith.constant 0 : i32
    return %arg0, %c0_i32, %c0_i32_0 : i32, i32, i32
  }
  func.func @transform_8(%arg0: i32) -> (i32, i32, i32) {
    %c0_i32 = arith.constant 0 : i32
    %c0_i32_0 = arith.constant 0 : i32
    %c0_i32_1 = arith.constant 0 : i32
    return %arg0, %c0_i32, %c0_i32_0 : i32, i32, i32
  }
  func.func @transform_9(%arg0: i32) -> (i32, i32, i32) {
    %c0_i32 = arith.constant 0 : i32
    %c0_i32_0 = arith.constant 0 : i32
    %c0_i32_1 = arith.constant 0 : i32
    return %arg0, %c0_i32, %c0_i32_0 : i32, i32, i32
  }
  func.func @transform_10(%arg0: i32) -> (i32, i32, i32) {
    %c0_i32 = arith.constant 0 : i32
    %c0_i32_0 = arith.constant 0 : i32
    %c0_i32_1 = arith.constant 0 : i32
    return %arg0, %c0_i32, %c0_i32_0 : i32, i32, i32
  }
  func.func @transform_11(%arg0: i32) -> (i32, i32, i32) {
    %c0_i32 = arith.constant 0 : i32
    %c0_i32_0 = arith.constant 0 : i32
    %c0_i32_1 = arith.constant 0 : i32
    return %arg0, %c0_i32, %c0_i32_0 : i32, i32, i32
  }
  func.func @transform_12(%arg0: i32) -> (i32, i32, i32) {
    %c0_i32 = arith.constant 0 : i32
    %c0_i32_0 = arith.constant 0 : i32
    %c0_i32_1 = arith.constant 0 : i32
    return %arg0, %c0_i32, %c0_i32_0 : i32, i32, i32
  }
  func.func @transform_13(%arg0: i32) -> (i32, i32, i32) {
    %c0_i32 = arith.constant 0 : i32
    %c0_i32_0 = arith.constant 0 : i32
    %c0_i32_1 = arith.constant 0 : i32
    return %arg0, %c0_i32, %c0_i32_0 : i32, i32, i32
  }
  func.func @transform_14(%arg0: i32) -> (i32, i32, i32) {
    %c0_i32 = arith.constant 0 : i32
    %c0_i32_0 = arith.constant 0 : i32
    %c0_i32_1 = arith.constant 0 : i32
    return %arg0, %c0_i32, %c0_i32_0 : i32, i32, i32
  }
  func.func @transform_15(%arg0: i32) -> (i32, i32, i32) {
    %c0_i32 = arith.constant 0 : i32
    %c0_i32_0 = arith.constant 0 : i32
    %c0_i32_1 = arith.constant 0 : i32
    return %arg0, %c0_i32, %c0_i32_0 : i32, i32, i32
  }
  func.func @transform_16(%arg0: i32) -> (i32, i32, i32) {
    %c0_i32 = arith.constant 0 : i32
    %c0_i32_0 = arith.constant 0 : i32
    %c0_i32_1 = arith.constant 0 : i32
    return %arg0, %c0_i32, %c0_i32_0 : i32, i32, i32
  }
  func.func @transform_17(%arg0: i32) -> (i32, i32, i32) {
    %c0_i32 = arith.constant 0 : i32
    %c0_i32_0 = arith.constant 0 : i32
    %c0_i32_1 = arith.constant 0 : i32
    return %arg0, %c0_i32, %c0_i32_0 : i32, i32, i32
  }
  func.func @transform_18(%arg0: i32) -> (i32, i32, i32) {
    %c0_i32 = arith.constant 0 : i32
    %c0_i32_0 = arith.constant 0 : i32
    %c0_i32_1 = arith.constant 0 : i32
    return %arg0, %c0_i32, %c0_i32_0 : i32, i32, i32
  }
  func.func @transform_19(%arg0: i32) -> (i32, i32, i32) {
    %c0_i32 = arith.constant 0 : i32
    %c0_i32_0 = arith.constant 0 : i32
    %c0_i32_1 = arith.constant 0 : i32
    return %arg0, %c0_i32, %c0_i32_0 : i32, i32, i32
  }
  func.func @transform_20(%arg0: i32) -> (i32, i32, i32) {
    %c0_i32 = arith.constant 0 : i32
    %c0_i32_0 = arith.constant 0 : i32
    %c0_i32_1 = arith.constant 0 : i32
    return %arg0, %c0_i32, %c0_i32_0 : i32, i32, i32
  }
  func.func @transform_21(%arg0: i32) -> (i32, i32, i32) {
    %c0_i32 = arith.constant 0 : i32
    %c0_i32_0 = arith.constant 0 : i32
    %c0_i32_1 = arith.constant 0 : i32
    return %arg0, %c0_i32, %c0_i32_0 : i32, i32, i32
  }
  func.func @transform_22(%arg0: i32) -> (i32, i32, i32) {
    %c0_i32 = arith.constant 0 : i32
    %c0_i32_0 = arith.constant 0 : i32
    %c0_i32_1 = arith.constant 0 : i32
    return %arg0, %c0_i32, %c0_i32_0 : i32, i32, i32
  }
  func.func @transform_23(%arg0: i32) -> (i32, i32, i32) {
    %c0_i32 = arith.constant 0 : i32
    %c0_i32_0 = arith.constant 0 : i32
    %c0_i32_1 = arith.constant 0 : i32
    return %arg0, %c0_i32, %c0_i32_0 : i32, i32, i32
  }
  func.func @transform_24(%arg0: i32) -> (i32, i32) {
    %c0_i32 = arith.constant 0 : i32
    %c0_i32_0 = arith.constant 0 : i32
    %c0_i32_1 = arith.constant 0 : i32
    return %c0_i32, %c0_i32_0 : i32, i32
  }
  func.func @transform_25(%arg0: i32) -> (i32, i32) {
    %c0_i32 = arith.constant 0 : i32
    %c0_i32_0 = arith.constant 0 : i32
    %c0_i32_1 = arith.constant 0 : i32
    return %c0_i32, %c0_i32_0 : i32, i32
  }
}

</mosaic_0001>

<bundles_post_ra>
// kernel: encoder_forward.1
= control target key start
LH: loop header
LB: loop body
LE: loop exit
PB: predicated region body
PF: predicated region fallthrough
CT: control target
= control target key end

     0   :  { %s9449_s0 = inlined_call_operand.vmem [shape: f32[16,32], index: 0, kind: input, shape index: {}]   ;;  %s9450_s1 = inlined_call_operand.vmem [shape: f32[16,32], index: 1, kind: input, shape index: {}]   ;;  %s9451_s2 = inlined_call_operand.vmem [shape: f32[2,32,96], index: 2, kind: input, shape index: {}]   ;;  %s9452_s3 = inlined_call_operand.vmem [shape: f32[2,1,96], index: 3, kind: input, shape index: {}]   ;;  %s9453_s4 = inlined_call_operand.vmem [shape: f32[2,32,32], index: 4, kind: input, shape index: {}]   ;;  %s9454_s5 = inlined_call_operand.vmem [shape: f32[2,1,32], index: 5, kind: input, shape index: {}]   ;;  %s9455_s6 = inlined_call_operand.vmem [shape: f32[2,32,96], index: 6, kind: input, shape index: {}]   ;;  %s9456_s7 = inlined_call_operand.vmem [shape: f32[2,1,96], index: 7, kind: input, shape index: {}]   ;;  %s9457_s8 = inlined_call_operand.vmem [shape: f32[2,32,32], index: 8, kind: input, shape index: {}]   ;;  %s9458_s9 = inlined_call_operand.vmem [shape: f32[2,1,32], index: 9, kind: input, shape index: {}]   ;;  %s9459_s10 = inlined_call_operand.vmem [shape: f32[2,32,96], index: 10, kind: input, shape index: {}]   ;;  %s9460_s11 = inlined_call_operand.hbm [shape: f32[2,1,96], index: 11, kind: input, shape index: {}]   ;;  %s9461_s12 = inlined_call_operand.vmem [shape: f32[2,32,32], index: 12, kind: input, shape index: {}]   ;;  %s9462_s13 = inlined_call_operand.hbm [shape: f32[2,1,32], index: 13, kind: input, shape index: {}]   ;;  %s9463_s14 = inlined_call_operand.hbm [shape: f32[2,32,64], index: 14, kind: input, shape index: {}]   ;;  %s9464_s15 = inlined_call_operand.hbm [shape: f32[2,1,64], index: 15, kind: input, shape index: {}]   ;;  %s9465_s16 = inlined_call_operand.vmem [shape: f32[2,64,32], index: 16, kind: input, shape index: {}]   ;;  %s9466_s17 = inlined_call_operand.hbm [shape: f32[2,1,32], index: 17, kind: input, shape index: {}]   ;;  %s9467_s18 = inlined_call_operand.hbm [shape: f32[2,32,64], index: 18, kind: input, shape index: {}]   ;;  %s9468_s19 = inlined_call_operand.vmem [shape: f32[2,1,64], index: 19, kind: input, shape index: {}]   ;;  %s9469_s20 = inlined_call_operand.vmem [shape: f32[2,64,32], index: 20, kind: input, shape index: {}]   ;;  %s9470_s21 = inlined_call_operand.vmem [shape: f32[2,1,32], index: 21, kind: input, shape index: {}]   ;;  %s9471_s22 = inlined_call_operand.vmem [shape: f32[2,6,32], index: 22, kind: input, shape index: {}]   ;;  %s9472_s23 = inlined_call_operand.vmem [shape: f32[2,6,32], index: 23, kind: input, shape index: {}]   ;;  %s9473_s24 = inlined_call_operand.vmem [shape: f32[16,32], index: 24, kind: output, shape index: {0}]   ;;  %s9474_s25 = inlined_call_operand.vmem [shape: f32[16,32], index: 25, kind: output, shape index: {1}]  }
   0x1   :  { %9495 = sst [smem:[#allocation22_spill]] %s9449_s0 }
   0x2   :  { %9496 = sst [smem:[#allocation23_spill]] %s9450_s1 }
   0x3   :  { %9497 = sst [smem:[#allocation24_spill]] %s9451_s2 }
   0x4   :  { %9498 = sst [smem:[#allocation25_spill]] %s9452_s3 }
   0x5   :  { %9499 = sst [smem:[#allocation26_spill]] %s9453_s4 }
   0x6   :  { %9500 = sst [smem:[#allocation27_spill]] %s9454_s5 }
   0x7   :  { %9501 = sst [smem:[#allocation28_spill]] %s9455_s6 }
   0x8   :  { %9502 = sst [smem:[#allocation29_spill]] %s9456_s7 }
   0x9   :  { %9503 = sst [smem:[#allocation30_spill]] %s9457_s8 }
   0xa   :  { %9504 = sst [smem:[#allocation31_spill]] %s9458_s9 }
   0xb   :  { %9505 = sst [smem:[#allocation32_spill]] %s9459_s10 }
   0xc   :  { %9506 = sst [smem:[#allocation33_spill]] %s9460_s11 }
   0xd   :  { %9507 = sst [smem:[#allocation34_spill]] %s9461_s12 }
   0xe   :  { %9508 = sst [smem:[#allocation35_spill]] %s9462_s13 }
   0xf   :  { %9509 = sst [smem:[#allocation36_spill]] %s9463_s14 }
  0x10   :  { %9510 = sst [smem:[#allocation37_spill]] %s9464_s15 }
  0x11   :  { %9511 = sst [smem:[#allocation38_spill]] %s9465_s16 }
  0x12   :  { %9512 = sst [smem:[#allocation39_spill]] %s9466_s17 }
  0x13   :  { %9513 = sst [smem:[#allocation40_spill]] %s9467_s18 }
  0x14   :  { %9514 = sst [smem:[#allocation41_spill]] %s9469_s20 }
  0x15   :  { %9515 = sst [smem:[#allocation42_spill]] %s9470_s21 }
  0x16   :  { %9516 = sst [smem:[#allocation43_spill]] %s9471_s22 }
  0x17   :  { %9517 = sst [smem:[#allocation44_spill]] %s9472_s23 }
  0x18   :  { %9518 = sst [smem:[#allocation45_spill]] %s9473_s24 }
  0x19   :  { %9519 = sst [smem:[#allocation46_spill]] %s9474_s25 }
  0x1a   :  { %31 = vsyncpa [#allocation3], 0 }
  0x1b   :  { %33 = vsyncpa [#allocation3 + $0x1], 0 }
  0x1c   :  { %34 = vsyncpa [#allocation5], 0 }
  0x1d   :  { %36 = vsyncpa [#allocation5 + $0x1], 0 }
  0x1e   :  { %37 = vsyncpa [#allocation8], 0 }
  0x1f   :  { %39 = vsyncpa [#allocation8 + $0x1], 0 }
  0x20   :  { %40 = vsyncpa [#allocation11], 0 }
  0x21   :  { %42 = vsyncpa [#allocation11 + $0x1], 0  ;;  %s8299_s29 = smov 0   ;;  %s8301_s2 = smov 0  }
  0x22   :  { %s8303_s6 = smov 0   ;;  %s8305_s30 = smov 0  }
  0x23 LB: > { %9520 = sst [smem:[#allocation16_spill]] %s8135_s2  ;;  %s8318_s7 = sadd.s32 4294967295, %s8143_s30   ;;  %s8143_s30 = sphi %s8305_s30, %s9585_s30   ;;  %s8139_s6 = sphi %s8303_s6, %s9588_s6   ;;  %s8135_s2 = sphi %s8301_s2, %s9587_s2   ;;  %s8131_s29 = sphi %s8299_s29, %s9586_s29  }
  0x24   : > { %9521 = sst [smem:[#allocation17_spill]] %s8139_s6  ;;  %s8321_s3 = sadd.s32 1, %s8143_s30  }
  0x25   : > { %9522 = sst [smem:[#allocation18_spill]] %s8321_s3  ;;  %s328_s26 = ssub.s32 %s8143_s30, %s8321_s3 }
  0x26   : > { %s331_s1 = sadd.s32 1, %s8139_s6  ;;  %p329_p0 = scmp.eq.s32.totalorder %s328_s26, 0 }
  0x27   : > { %p338_p1 = scmp.ne.s32.totalorder %s8139_s6, %s8135_s2  ;;  %p339_p2 = scmp.eq.s32.totalorder %s8143_s30, 0 }
  0x28   : > { %p344_p3 = scmp.ne.s32.totalorder %s8135_s2, %s8131_s29  ;;  %p345_p5 = scmp.eq.s32.totalorder %s8318_s7, 0 }
  0x29   : > { %s8331_s8 = scalar_select %p329_p0, %s8139_s6, %s331_s1  }
  0x2a   : > { %p340_p4 = por %p339_p2, %p338_p1  ;;  %p7732_p6 = scmp.lt.s32.totalorder %s8143_s30, 2 }
  0x2b   : > { %9523 = sst [smem:[#allocation19_spill]] %s8331_s8  ;;  %p8335_p7 = por %p345_p5, %p344_p3 }
  0x2c   : > { %s8340_s4 = sand.u32 1, %s8139_s6   ;;  %s8343_s28 = sshll.u32 %s8143_s30, 4 }
  0x2d   : > { %s9524_s27 = scalar_select %p8335_p7, 1, 0 }
  0x2e   : > { %p8345_p8 = pnand %p7732_p6, %p340_p4  ;;  %s9484_s5 = sand.u32 1, %s8143_s30  }
  0x2f   : > { %s9526_s13 = sld [smem:[#allocation35_spill]]  ;;  %s820_s1 = scalar_lea.vmem [#allocation4], %s8340_s4 }
  0x30   : > { %s9525_s9 = scalar_select %p8345_p8, 1, 0 }
  0x31   : > { %s827_s8 = sshll.u32 %s820_s1, 4  ;;  %s8362_s6 = scalar_lea.sflag [#allocation5], %s9484_s5  ;;  %s8357_s8 = int_to_ptr.vmem [resolvable:$true] %s827_s8 }
  0x32   : > { %p8368_p11 = pneg %p8345_p8 }
  0x35   : > { %s8354_s26 = scalar_lea.hbm %s9526_s13, %s8343_s28  ;;  %s7922_s1 = scalar_lea.hbm %s9526_s13, 32 }
  0x36   : > { %s7917_s3 = scalar_lea.hbm %s8354_s26, 16  ;;  %p7923_p0 = scmp.lt.u32.totalorder %s8354_s26, %s9526_s13 }
  0x37   : > { %p7918_p10 = scmp.ne.s32.totalorder %s8354_s26, %s7917_s3  ;;  %p7924_p1 = scmp.lt.u32.totalorder %s7922_s1, %s7917_s3 }
  0x38   : > { %p7926_p3 = scmp.lt.u32.totalorder %s7917_s3, %s8354_s26 }
  0x39   : > { %p7920_p12 = pnand %p8368_p11, %p7918_p10  ;;  %p7925_p2 = por %p7924_p1, %p7923_p0 }
  0x3b   : > { %p7921_p13 = pneg %p7920_p12  ;;  %p7927_p4 = por %p7926_p3, %p7925_p2 }
  0x3d   : > { %p7928_p5 = pnand %p7927_p4, %p7921_p13 }
  0x3f   : > { %7931 = shalt.err (!%p7928_p5)
}
  0x40   : > { %s7932_s5 = scalar_lea.vmem %s8357_s8, 16  ;;  %s8145_s0 = smov [#allocation4]  }
  0x41   : > { %p7933_p6 = scmp.ne.s32.totalorder %s8357_s8, %s7932_s5  ;;  %s7937_s29 = sshll.u32 %s8145_s0, 4  ;;  %s7938_s29 = int_to_ptr.vmem [resolvable:$false] %s7937_s29 }
  0x42   : > { %s7939_s23 = scalar_lea.vmem %s7938_s29, 32  ;;  %p7940_p9 = scmp.lt.s32.totalorder %s8357_s8, %s7938_s29 }
  0x43   : > { %p7935_p10 = pnand %p7933_p6, %p8368_p11  ;;  %p7941_p7 = scmp.lt.s32.totalorder %s7939_s23, %s7932_s5 }
  0x45   : > { %p7936_p12 = pneg %p7935_p10  ;;  %p7942_p0 = por %p7941_p7, %p7940_p9 }
  0x47   : > { %p7943_p1 = pnand %p7942_p0, %p7936_p12 }
  0x49   : > { %7946 = shalt.err (!%p7943_p1)
}
  0x4a   : > { %7719 = dma.hbm_to_vmem [thread:$0]  (!%p8345_p8), %s8354_s26, 16, %s8357_s8, %s8362_s6  }
  0x4b   : > { %p950_p13 = scmp.lt.s32.totalorder %s8143_s30, 3  ;;  %s9528_s15 = sld [smem:[#allocation37_spill]] }
  0x4c   : > { %p9529_p7 = scmp.ge.s32.totalorder %s8143_s30, 1  ;;  %s858_s0 = scalar_lea.vmem [#allocation7], %s8340_s4 }
  0x4d   : > { %s865_s29 = sshll.u32 %s858_s0, 4  ;;  %s9531_s23 = sand.u32 1, %s8143_s30   ;;  %s866_s29 = int_to_ptr.vmem [resolvable:$true] %s865_s29 }
  0x4e   : > { %p8401_p9 = pnand %p9529_p7, %p950_p13  ;;  %s8408_s8 = scalar_lea.sflag [#allocation8], %s9531_s23 }
  0x50   : > { %s9530_s1 = scalar_select %p8401_p9, 1, 0 }
  0x51   : > { %s8397_s5 = scalar_lea.hbm %s9528_s15, %s8343_s28  ;;  %s7952_s13 = scalar_lea.hbm %s9528_s15, 32 }
  0x52   : > { %s7947_s26 = scalar_lea.hbm %s8397_s5, 16  ;;  %p7953_p5 = scmp.lt.u32.totalorder %s8397_s5, %s9528_s15 }
  0x53   : > { %p7948_p2 = scmp.ne.s32.totalorder %s8397_s5, %s7947_s26  ;;  %p7954_p6 = scmp.lt.u32.totalorder %s7952_s13, %s7947_s26 }
  0x54   : > { %p7956_p12 = scmp.lt.u32.totalorder %s7947_s26, %s8397_s5 }
  0x55   : > { %p7950_p3 = pnand %p7948_p2, %p8368_p11  ;;  %p7955_p10 = por %p7954_p6, %p7953_p5 }
  0x57   : > { %p7951_p4 = pneg %p7950_p3  ;;  %p7957_p0 = por %p7956_p12, %p7955_p10 }
  0x59   : > { %p7958_p1 = pnand %p7957_p0, %p7951_p4 }
  0x5b   : > { %7961 = shalt.err (!%p7958_p1)
}
  0x5c   : > { %s7962_s0 = scalar_lea.vmem %s866_s29, 16  ;;  %s8146_s23 = smov [#allocation7]  }
  0x5d   : > { %p7963_p13 = scmp.ne.s32.totalorder %s866_s29, %s7962_s0  ;;  %s7967_s20 = sshll.u32 %s8146_s23, 4  ;;  %s7968_s20 = int_to_ptr.vmem [resolvable:$false] %s7967_s20 }
  0x5e   : > { %s7969_s24 = scalar_lea.vmem %s7968_s20, 32  ;;  %p7970_p3 = scmp.lt.s32.totalorder %s866_s29, %s7968_s20 }
  0x5f   : > { %p7965_p7 = pnand %p7963_p13, %p8368_p11  ;;  %p7971_p9 = scmp.lt.s32.totalorder %s7969_s24, %s7962_s0 }
  0x61   : > { %p7966_p2 = pneg %p7965_p7  ;;  %p7972_p8 = por %p7971_p9, %p7970_p3 }
  0x63   : > { %p7973_p5 = pnand %p7972_p8, %p7966_p2 }
  0x65   : > { %7976 = shalt.err (!%p7973_p5)
}
  0x66   : > { %p9532_p6 = scmp.ne.s32.totalorder %s9525_s9, 0  ;;  %s9533_s11 = sld [smem:[#allocation33_spill]] }
  0x67   : > { %s795_s20 = scalar_lea.vmem [#allocation2], %s8340_s4  ;;  %s793_s0 = scalar_lea.sflag [#allocation3], %s8340_s4 }
  0x68   : > { %7725 = dma.hbm_to_vmem [thread:$0]  (!%p9532_p6), %s8397_s5, 16, %s866_s29, %s8408_s8  }
  0x69   : > { %s802_s26 = sshll.u32 %s795_s20, 4  ;;  %s803_s26 = int_to_ptr.vmem [resolvable:$true] %s802_s26 }
  0x6c   : > { %s8432_s22 = scalar_lea.hbm %s9533_s11, %s8343_s28  ;;  %s7982_s24 = scalar_lea.hbm %s9533_s11, 32 }
  0x6d   : > { %s7977_s23 = scalar_lea.hbm %s8432_s22, 16  ;;  %p7983_p10 = scmp.lt.u32.totalorder %s8432_s22, %s9533_s11 }
  0x6e   : > { %p7978_p8 = scmp.ne.s32.totalorder %s8432_s22, %s7977_s23  ;;  %p7984_p12 = scmp.lt.u32.totalorder %s7982_s24, %s7977_s23 }
  0x6f   : > { %p7986_p1 = scmp.lt.u32.totalorder %s7977_s23, %s8432_s22 }
  0x70   : > { %p7980_p9 = pnand %p7978_p8, %p8368_p11  ;;  %p7985_p0 = por %p7984_p12, %p7983_p10 }
  0x72   : > { %p7981_p4 = pneg %p7980_p9  ;;  %p7987_p13 = por %p7986_p1, %p7985_p0 }
  0x74   : > { %p7988_p7 = pnand %p7987_p13, %p7981_p4 }
  0x76   : > { %7991 = shalt.err (!%p7988_p7)
}
  0x77   : > { %s7992_s20 = scalar_lea.vmem %s803_s26, 16  ;;  %s8147_s3 = smov [#allocation2]  }
  0x78   : > { %p7993_p2 = scmp.ne.s32.totalorder %s803_s26, %s7992_s20  ;;  %s7997_s15 = sshll.u32 %s8147_s3, 4  ;;  %s7998_s15 = int_to_ptr.vmem [resolvable:$false] %s7997_s15 }
  0x79   : > { %s7999_s5 = scalar_lea.vmem %s7998_s15, 32  ;;  %p8000_p8 = scmp.lt.s32.totalorder %s803_s26, %s7998_s15 }
  0x7a   : > { %p7995_p3 = pnand %p7993_p2, %p8368_p11  ;;  %p8001_p9 = scmp.lt.s32.totalorder %s7999_s5, %s7992_s20 }
  0x7c   : > { %p7996_p5 = pneg %p7995_p3  ;;  %p8002_p6 = por %p8001_p9, %p8000_p8 }
  0x7e   : > { %p8003_p10 = pnand %p8002_p6, %p7996_p5 }
  0x80   : > { %8006 = shalt.err (!%p8003_p10)
}
  0x81   : > { %p9534_p12 = scmp.ne.s32.totalorder %s9525_s9, 0  ;;  %s9488_s23 = sshll.u32 %s8143_s30, 9 }
  0x82   : > { %s9535_s29 = sshll.u32 %s8340_s4, 5  ;;  %s9536_s14 = sld [smem:[#allocation36_spill]] }
  0x83   : > { %7716 = dma.hbm_to_vmem [thread:$0]  (!%p9534_p12), %s8432_s22, 16, %s803_s26, %s793_s0  }
  0x84   : > { %s838_s24 = scalar_lea.vmem [#allocation6], %s9535_s29 }
  0x85   : > { %s845_s13 = sshll.u32 %s838_s24, 4  ;;  %s8464_s13 = int_to_ptr.vmem [resolvable:$true] %s845_s13 }
  0x88   : > { %s8462_s15 = scalar_lea.hbm %s9536_s14, %s9488_s23  ;;  %s8012_s0 = scalar_lea.hbm %s9536_s14, 1024 }
  0x89   : > { %s8007_s20 = scalar_lea.hbm %s8462_s15, 512  ;;  %p8013_p1 = scmp.lt.u32.totalorder %s8462_s15, %s9536_s14 }
  0x8a   : > { %p8008_p6 = scmp.ne.s32.totalorder %s8462_s15, %s8007_s20  ;;  %p8014_p13 = scmp.lt.u32.totalorder %s8012_s0, %s8007_s20 }
  0x8b   : > { %p8016_p2 = scmp.lt.u32.totalorder %s8007_s20, %s8462_s15 }
  0x8c   : > { %p8010_p4 = pnand %p8008_p6, %p8368_p11  ;;  %p8015_p7 = por %p8014_p13, %p8013_p1 }
  0x8e   : > { %p8011_p0 = pneg %p8010_p4  ;;  %p8017_p3 = por %p8016_p2, %p8015_p7 }
  0x90   : > { %p8018_p5 = pnand %p8017_p3, %p8011_p0 }
  0x92   : > { %8021 = shalt.err (!%p8018_p5)
}
  0x93   : > { %s8022_s24 = scalar_lea.vmem %s8464_s13, 512  ;;  %s8148_s3 = smov [#allocation6]  }
  0x94   : > { %p8023_p8 = scmp.ne.s32.totalorder %s8464_s13, %s8022_s24  ;;  %s8027_s21 = sshll.u32 %s8148_s3, 4  ;;  %s8028_s21 = int_to_ptr.vmem [resolvable:$false] %s8027_s21 }
  0x95   : > { %s8029_s22 = scalar_lea.vmem %s8028_s21, 1024  ;;  %p8030_p6 = scmp.lt.s32.totalorder %s8464_s13, %s8028_s21 }
  0x96   : > { %p8025_p9 = pnand %p8023_p8, %p8368_p11  ;;  %p8031_p4 = scmp.lt.s32.totalorder %s8029_s22, %s8022_s24 }
  0x98   : > { %p8026_p10 = pneg %p8025_p9  ;;  %p8032_p1 = por %p8031_p4, %p8030_p6 }
  0x9a   : > { %p8033_p13 = pnand %p8032_p1, %p8026_p10 }
  0x9c   : > { %8036 = shalt.err (!%p8033_p13)
}
  0x9d   : > { %s8149_s20 = smov 128   ;;  %s8150_s26 = smov 8  }
  0x9e   : > { %7722 = dma.hbm_to_vmem [thread:$0]  (!%p9534_p12), %s8462_s15, 512, %s8464_s13, %s8362_s6, %s8149_s20, %s8149_s20, %s8150_s26  }
  0x9f   : > { %s9537_s17 = sld [smem:[#allocation39_spill]]  ;;  %s883_s24 = scalar_lea.vmem [#allocation9], %s8340_s4 }
  0xa0   : > { %s890_s3 = sshll.u32 %s883_s24, 4  ;;  %s891_s3 = int_to_ptr.vmem [resolvable:$true] %s890_s3 }
  0xa5   : > { %s8495_s29 = scalar_lea.hbm %s9537_s17, %s8343_s28  ;;  %s8042_s6 = scalar_lea.hbm %s9537_s17, 32 }
  0xa6   : > { %s8037_s21 = scalar_lea.hbm %s8495_s29, 16  ;;  %p8043_p3 = scmp.lt.u32.totalorder %s8495_s29, %s9537_s17 }
  0xa7   : > { %p8038_p0 = scmp.ne.s32.totalorder %s8495_s29, %s8037_s21  ;;  %p8044_p5 = scmp.lt.u32.totalorder %s8042_s6, %s8037_s21 }
  0xa8   : > { %p8046_p9 = scmp.lt.u32.totalorder %s8037_s21, %s8495_s29 }
  0xa9   : > { %p8040_p7 = pnand %p8038_p0, %p8368_p11  ;;  %p8045_p8 = por %p8044_p5, %p8043_p3 }
  0xab   : > { %p8041_p2 = pneg %p8040_p7  ;;  %p8047_p10 = por %p8046_p9, %p8045_p8 }
  0xad   : > { %p8048_p6 = pnand %p8047_p10, %p8041_p2 }
  0xaf   : > { %8051 = shalt.err (!%p8048_p6)
}
  0xb0   : > { %s8052_s28 = scalar_lea.vmem %s891_s3, 16  ;;  %s8151_s0 = smov [#allocation9]  }
  0xb1   : > { %p8053_p4 = scmp.ne.s32.totalorder %s891_s3, %s8052_s28  ;;  %s8057_s5 = sshll.u32 %s8151_s0, 4  ;;  %s8058_s5 = int_to_ptr.vmem [resolvable:$false] %s8057_s5 }
  0xb2   : > { %s8059_s23 = scalar_lea.vmem %s8058_s5, 32  ;;  %p8060_p0 = scmp.lt.s32.totalorder %s891_s3, %s8058_s5 }
  0xb3   : > { %p8055_p1 = pnand %p8053_p4, %p8368_p11  ;;  %p8061_p7 = scmp.lt.s32.totalorder %s8059_s23, %s8052_s28 }
  0xb5   : > { %p8056_p13 = pneg %p8055_p1  ;;  %p8062_p12 = por %p8061_p7, %p8060_p0 }
  0xb7   : > { %p8063_p3 = pnand %p8062_p12, %p8056_p13 }
  0xb9   : > { %8066 = shalt.err (!%p8063_p3)
}
  0xba   : > { %p9538_p5 = scmp.ne.s32.totalorder %s9525_s9, 0  ;;  %s9539_s24 = sshll.u32 %s8143_s30, 9 }
  0xbb   : > { %s9540_s18 = sld [smem:[#allocation40_spill]]  ;;  %s9541_s13 = sshll.u32 %s8340_s4, 5 }
  0xbc   : > { %7728 = dma.hbm_to_vmem [thread:$0]  (!%p9538_p5), %s8495_s29, 16, %s891_s3, %s8408_s8  }
  0xbd   : > { %s901_s15 = scalar_lea.vmem [#allocation10], %s9541_s13  ;;  %s898_s0 = scalar_lea.sflag [#allocation11], %s8340_s4 }
  0xbe   : > { %s908_s28 = sshll.u32 %s901_s15, 4  ;;  %s8525_s28 = int_to_ptr.vmem [resolvable:$true] %s908_s28 }
  0xc1   : > { %s8521_s6 = scalar_lea.hbm %s9540_s18, %s9539_s24  ;;  %s8072_s29 = scalar_lea.hbm %s9540_s18, 1024 }
  0xc2   : > { %s8067_s5 = scalar_lea.hbm %s8521_s6, 512  ;;  %p8073_p9 = scmp.lt.u32.totalorder %s8521_s6, %s9540_s18 }
  0xc3   : > { %p8068_p12 = scmp.ne.s32.totalorder %s8521_s6, %s8067_s5  ;;  %p8074_p10 = scmp.lt.u32.totalorder %s8072_s29, %s8067_s5 }
  0xc4   : > { %p8076_p4 = scmp.lt.u32.totalorder %s8067_s5, %s8521_s6 }
  0xc5   : > { %p8070_p2 = pnand %p8068_p12, %p8368_p11  ;;  %p8075_p6 = por %p8074_p10, %p8073_p9 }
  0xc7   : > { %p8071_p8 = pneg %p8070_p2  ;;  %p8077_p1 = por %p8076_p4, %p8075_p6 }
  0xc9   : > { %p8078_p13 = pnand %p8077_p1, %p8071_p8 }
  0xcb   : > { %8081 = shalt.err (!%p8078_p13)
}
  0xcc   : > { %s8082_s24 = scalar_lea.vmem %s8525_s28, 512  ;;  %s8152_s21 = smov [#allocation10]  }
  0xcd   : > { %p8083_p0 = scmp.ne.s32.totalorder %s8525_s28, %s8082_s24  ;;  %s8087_s22 = sshll.u32 %s8152_s21, 4  ;;  %s8088_s22 = int_to_ptr.vmem [resolvable:$false] %s8087_s22 }
  0xce   : > { %s8089_s13 = scalar_lea.vmem %s8088_s22, 1024  ;;  %p8090_p12 = scmp.lt.s32.totalorder %s8525_s28, %s8088_s22 }
  0xcf   : > { %p8085_p7 = pnand %p8083_p0, %p8368_p11  ;;  %p8091_p2 = scmp.lt.s32.totalorder %s8089_s13, %s8082_s24 }
  0xd1   : > { %p8086_p3 = pneg %p8085_p7  ;;  %p8092_p9 = por %p8091_p2, %p8090_p12 }
  0xd3   : > { %p8093_p10 = pnand %p8092_p9, %p8086_p3 }
  0xd5   : > { %8096 = shalt.err (!%p8093_p10)
}
  0xd6   : > { %7731 = dma.hbm_to_vmem [thread:$0]  (!%p9538_p5), %s8521_s6, 512, %s8525_s28, %s898_s0, %s8149_s20, %s8149_s20, %s8150_s26  }
  0xd7   : > { %p9542_p11 = scmp.ne.s32.totalorder %s9530_s1, 0 }
  0xd9   : > { %954 = sbr.rel (%p9542_p11) target bundleno = 5092 (0x13e4), region = 116 }
  0xe0   : > { %s8557_s25 = sand.u32 1, %s8135_s2   ;;  %p9543_p8 = scmp.ne.s32.totalorder %s9524_s27, 0 }
  0xe1   : > { %s957_s15 = scalar_lea.sflag [#allocation3], %s8557_s25 }
  0xe2   : > { %8114 = dma.done.wait (%p9543_p8), %s957_s15, 16  }
  0xe3   : > { %8116 = vsyncadd (%p9543_p8), %s957_s15, 4294967280  ;;  %s964_s4 = sand.u32 1, %s8318_s7  }
  0xe4   : > { %s965_s9 = scalar_lea.sflag [#allocation5], %s964_s4 }
  0xe5   : > { %8118 = dma.done.wait (%p9543_p8), %s965_s9, 528  }
  0xe6   : > { %8120 = vsyncadd (%p9543_p8), %s965_s9, 4294966768  ;;  %s6913_s20 = sshll.u32 %s8557_s25, 5  ;;  %s982_s6 = scalar_lea.sflag [#allocation8], %s964_s4 }
  0xe7   : > { %s8572_s26 = scalar_lea.vmem [#allocation6], %s6913_s20 }
  0xe8   : > { %8122 = dma.done.wait (%p9543_p8), %s982_s6, 32  }
  0xe9   : > { %8124 = vsyncadd (%p9543_p8), %s982_s6, 4294967264  ;;  %s998_s30 = scalar_lea.sflag [#allocation11], %s8557_s25  ;;  %s8581_s8 = scalar_lea.vmem [#allocation10], %s6913_s20 }
  0xea   : > { %9544 = sst [smem:[#allocation20_spill]] %s8581_s8 }
  0xeb   : > { %8126 = dma.done.wait (%p9543_p8), %s998_s30, 512  }
  0xec   : > { %8128 = vsyncadd (%p9543_p8), %s998_s30, 4294966784  ;;  %p1150_p5 = scmp.lt.s32.totalorder %s8318_s7, 1  ;;  %s9546_s15 = sld [smem:[#allocation24_spill]] }
  0xed   : > { %s9547_s6 = sld [smem:[#allocation26_spill]]  ;;  %s9549_s17 = sld [smem:[#allocation28_spill]] }
  0xee   : > { %s8589_s29 = scalar_select %p1150_p5, %s8318_s7, 1 }
  0xef   : > { %s9551_s18 = sld [smem:[#allocation30_spill]]  ;;  %s9553_s10 = sld [smem:[#allocation32_spill]] }
  0xf0   : > { %s7042_s3 = sshll.u32 %s8589_s29, 5  ;;  %s9554_s12 = sld [smem:[#allocation34_spill]] }
  0xf1   : > { %s7048_s27 = sshll.u32 %s8589_s29, 6  ;;  %s9555_s16 = sld [smem:[#allocation38_spill]] }
  0xf2   : > { %s8599_s4 = scalar_lea.vmem %s9546_s15, %s7042_s3  ;;  %s9557_s28 = sld [smem:[#allocation41_spill]] }
  0xf3   : > { %s8604_s30 = scalar_lea.vmem %s9547_s6, %s7042_s3  ;;  %s8613_s23 = scalar_lea.vmem %s9549_s17, %s7042_s3 }
  0xf4   : > { %s6931_s14 = sshll.u32 %s8589_s29, 3  ;;  %p6933_p6 = scmp.ne.s32.totalorder %s8318_s7, 0 }
  0xf5   : > { %s8622_s2 = scalar_lea.vmem %s9551_s18, %s7042_s3  ;;  %s8631_s0 = scalar_lea.vmem %s9553_s10, %s7042_s3  ;;  %vm1222_vm0 = vcmask (!%p6933_p6), 261120  }
  0xf6   : > { %s8636_s17 = scalar_lea.vmem %s9554_s12, %s7042_s3  ;;  %s9559_s12 = sld [smem:[#allocation43_spill]] }
  0xf7   : > { %s8642_s18 = scalar_lea.vmem %s9555_s16, %s7048_s27  ;;  %s9561_s20 = sld [smem:[#allocation22_spill]] (!%p6933_p6) }
  0xf8   : > { %9556 = sst [smem:[#allocation21_spill]] %s8642_s18  ;;  %s8651_s1 = scalar_lea.vmem %s9557_s28, %s7048_s27 }
  0xf9   : > { %s9560_s18 = sld [smem:[#allocation44_spill]]  ;;  %1219 = sbr.rel (%p6933_p6) target bundleno = 262 (0x106), region = 144 }
  0xfa   : > { %s9562_s22 = sld [smem:[#allocation23_spill]] (!%p6933_p6)  ;;  %s9564_s21 = sld [smem:[#allocation46_spill]] (!%p6933_p6) }
  0xfc   : > { %s8661_s24 = scalar_lea.vmem %s9559_s12, %s6931_s14 }
  0xfd   : > { %v1220_v0 = vld [vmem:[%s9561_s20] sm:$0xff] (!%p6933_p6)  ;;  %v1221_v1 = vld [vmem:[%s9561_s20 + $0x8] sm:$0xff] (!%p6933_p6) }
  0xff   : > { %s8666_s13 = scalar_lea.vmem %s9560_s18, %s6931_s14  ;;  %s9563_s18 = sld [smem:[#allocation45_spill]] (!%p6933_p6) }
 0x100   : > { %v1225_v2 = vld [vmem:[%s9562_s22] sm:$0xff]  ;;  %v1226_v3 = vld [vmem:[%s9562_s22 + $0x8] sm:$0xff] }
 0x101   : > { %1227 = vst.msk [vmem:[%s9564_s21] sm:$0xff] %vm1222_vm0, %v1225_v2  ;;  %1228 = vst.msk [vmem:[%s9564_s21 + $0x8] sm:$0xff] %vm1222_vm0, %v1226_v3 }
 0x105   : > { %1223 = vst.msk [vmem:[%s9563_s18] sm:$0xff] %vm1222_vm0, %v1220_v0  ;;  %1224 = vst.msk [vmem:[%s9563_s18 + $0x8] sm:$0xff] %vm1222_vm0, %v1221_v1 }
 0x106 PF: > { %v1235_v4 = vld [vmem:[%s8599_s4] sm:$0xff]  ;;  %v1236_v5 = vld [vmem:[%s8599_s4 + $0x8] sm:$0xff]  ;;  %v1237_v6 = vld [vmem:[%s8599_s4 + $0x10] sm:$0xff]  ;;  %vm1251_vm1 = vcmask 261120   ;;  %s9565_s6 = sld [smem:[#allocation45_spill]]  ;;  %v8153_v12 = vmov 0.0  }
 0x107   : > { %v7597_v7 = vpack.c.bf16 %v1236_v5, %v1235_v4  ;;  %v1238_v8 = vld [vmem:[%s8599_s4 + $0x18] sm:$0xff]  ;;  %7236 = vmatprep.subr.mxu1 %v8153_v12  ;;  %vm8154_vm2 = vmmov 0   ;;  %s9566_s7 = sld [smem:[#allocation25_spill]]  ;;  %s8155_s14 = smov 120   ;;  %vm1336_vm3 = vcmask 64512   ;;  %vm2010_vm4 = vcmask 130048  }
 0x108   : > { %v7601_v10 = vpack.c.bf16 %v1238_v8, %v1237_v6  ;;  %7238 = vmatprep.mubr.msk.f32.mxu1 %vm8154_vm2, %v8153_v12  ;;  %s8156_s21 = smov 96   ;;  %s8157_s27 = smov 80   ;;  %vm2012_vm5 = vcmask 195584   ;;  %vm6187_vm6 = vcmask 523264  }
 0x109   : > { %7598 = vmatprep.subr.bf16.mxu0 %v7597_v7  ;;  %s8158_s15 = smov 88   ;;  %s8159_s5 = smov 72  }
 0x10a   : > { %7600 = vmatpush3.bf16.msra.mxu0 %v7597_v7  ;;  %s8160_s8 = smov 112   ;;  %s8161_s10 = smov 104  }
 0x10b   : > { %7602 = vmatprep.subr.bf16.mxu0 %v7601_v10  ;;  %s8162_s12 = smov 56   ;;  %s8163_s16 = smov 64  }
 0x10c   : > { %v1229_v9 = vld [vmem:[%s9565_s6] sm:$0xff]  ;;  %v1230_v11 = vld [vmem:[%s9565_s6 + $0x8] sm:$0xff]  ;;  %s8164_s18 = smov 40   ;;  %s9493_s4 = smov 48  }
 0x10d   : > { %7228 = vmatprep.mubr.msk.f32.mxu0 %vm1251_vm1, %v1229_v9  ;;  %s9567_s11 = scalar_lea.vmem %s9566_s7, %s8589_s29  ;;  %s9568_s7 = sld [smem:[#allocation46_spill]] }
 0x10e   : > { %7604 = vmatpush3.bf16.msra.mxu0 %v7601_v10  ;;  %v6934_v13 = vld [vmem:[%s9567_s11] ss:$0 sm:$0xff]  ;;  %s8166_s3 = smov 8   ;;  %s8168_s28 = smov 24  }
 0x10f   : > { %7231 = vmatprep.subr.mxu0 %v8153_v12  ;;  %s9569_s9 = sld [smem:[#allocation29_spill]] }
 0x111   : > { %7229 = vmatmul.mubr.msk.f32.vlgmr.msra.gmra.mrb[0].mxu0 %vm1251_vm1, %v1230_v11 }
 0x112   : > { %7233 = vmatprep.mubr.msk.f32.mxu0 %vm8154_vm2, %v8153_v12 }
 0x1e4   : > { %v7230_v14 = vpop.f32.mrb[0].mxu0 }
 0x1e5   : > { %v1324_v15 = vpop.f32.mrb[1].mxu0  ;;  %v8730_v17 = vadd.f32 %v7230_v14, %v6934_v13 }
 0x1e6   : > { %v8716_v16 = vadd.f32 %v6934_v13, %v1324_v15 }
 0x1e8   : > { %1499 = vrot.lane.b32.xlu1 %v8716_v16, %s8155_s14  ;;  %1334 = vrot.lane.b32.xlu0 %v8716_v16, %s8156_s21 }
 0x1ec   : > { %1667 = vrot.lane.b32.xlu1 %v8716_v16, %s8157_s27  ;;  %1501 = vrot.lane.b32.xlu0 %v8716_v16, %s8158_s15 }
 0x1f0   : > { %1833 = vrot.lane.b32.xlu1 %v8716_v16, %s8159_s5  ;;  %1665 = vrot.lane.b32.xlu0 %v8716_v16, %s8160_s8 }
 0x1f4   : > { %2015 = vrot.lane.b32.xlu1 %v8730_v17, %s8156_s21  ;;  %1831 = vrot.lane.b32.xlu0 %v8716_v16, %s8161_s10 }
 0x1f8   : > { %2179 = vrot.lane.b32.xlu1 %v8730_v17, %s8155_s14  ;;  %2181 = vrot.lane.b32.xlu0 %v8730_v17, %s8158_s15 }
 0x1fc   : > { %2345 = vrot.lane.b32.xlu1 %v8730_v17, %s8160_s8  ;;  %2347 = vrot.lane.b32.xlu0 %v8730_v17, %s8157_s27 }
 0x200   : > { %2511 = vrot.lane.b32.xlu1 %v8730_v17, %s8161_s10  ;;  %2513 = vrot.lane.b32.xlu0 %v8730_v17, %s8159_s5 }
 0x204   : > { %1588 = vrot.lane.b32.xlu1 %v8716_v16, %s8162_s12  ;;  %1422 = vrot.lane.b32.xlu0 %v8716_v16, %s8163_s16 }
 0x208   : > { %1920 = vrot.lane.b32.xlu1 %v8716_v16, %s8164_s18 }
 0x25a   : > { %v1500_v18 = vpop.permute.xlu1 %1499  ;;  %v1335_v19 = vpop.permute.xlu0 %1334 }
 0x25b   : > { %7232 = vmatpush3.xpose.msk.msra.mxu0 %vm1336_vm3, %v1335_v19 }
 0x25c   : > { %7241 = vmatprep.subr.mxu0 %v8153_v12 }
 0x25e   : > { %v1668_v20 = vpop.permute.xlu1 %1667  ;;  %7234 = vmatmul.mubr.msk.f32.vlgmr.msra.gmra.mrb[2].mxu0 %vm1336_vm3, %v8716_v16  ;;  %v1502_v21 = vpop.permute.xlu0 %1501 }
 0x25f   : > { %7242 = vmatpush3.xpose.msk.msra.mxu0 %vm1336_vm3, %v1502_v21  ;;  %7243 = vmatprep.mubr.msk.f32.mxu0 %vm8154_vm2, %v8153_v12 }
 0x260   : > { %7251 = vmatprep.subr.mxu0 %v8153_v12 }
 0x262   : > { %v1834_v22 = vpop.permute.xlu1 %1833  ;;  %7244 = vmatmul.mubr.msk.f32.vlgmr.msra.gmra.mrb[4].mxu0 %vm1336_vm3, %v1500_v18  ;;  %v1666_v23 = vpop.permute.xlu0 %1665 }
 0x263   : > { %7252 = vmatpush3.xpose.msk.msra.mxu0 %vm1336_vm3, %v1668_v20  ;;  %7253 = vmatprep.mubr.msk.f32.mxu0 %vm8154_vm2, %v8153_v12 }
 0x264   : > { %7261 = vmatprep.subr.mxu0 %v8153_v12 }
 0x266   : > { %7254 = vmatmul.mubr.msk.f32.vlgmr.msra.gmra.mrb[6].mxu0 %vm1336_vm3, %v1666_v23  ;;  %v1832_v24 = vpop.permute.xlu0 %1831  ;;  %v2016_v25 = vpop.permute.xlu1 %2015 }
 0x267   : > { %7262 = vmatpush3.xpose.msk.msra.mxu0 %vm1336_vm3, %v1834_v22  ;;  %7263 = vmatprep.mubr.msk.f32.mxu0 %vm8154_vm2, %v8153_v12 }
 0x268   : > { %7271 = vmatprep.subr.mxu0 %v8153_v12 }
 0x26a   : > { %7264 = vmatmul.mubr.msk.f32.vlgmr.msra.gmra.mrb[8].mxu0 %vm1336_vm3, %v1832_v24  ;;  %v2182_v26 = vpop.permute.xlu0 %2181  ;;  %v2180_v27 = vpop.permute.xlu1 %2179 }
 0x26b   : > { %7272 = vmatpush3.xpose.msk.msra.mxu0 %vm1336_vm3, %v2016_v25  ;;  %7273 = vmatprep.mubr.msk.f32.mxu0 %vm8154_vm2, %v8153_v12 }
 0x26c   : > { %7281 = vmatprep.subr.mxu0 %v8153_v12 }
 0x26e   : > { %7274 = vmatmul.mubr.msk.f32.vlgmr.msra.gmra.mrb[10].mxu0 %vm1336_vm3, %v8730_v17  ;;  %v2348_v28 = vpop.permute.xlu0 %2347  ;;  %v2346_v30 = vpop.permute.xlu1 %2345 }
 0x26f   : > { %7282 = vmatpush3.xpose.msk.msra.mxu0 %vm1336_vm3, %v2182_v26  ;;  %7283 = vmatprep.mubr.msk.f32.mxu0 %vm8154_vm2, %v8153_v12 }
 0x270   : > { %7291 = vmatprep.subr.mxu0 %v8153_v12 }
 0x272   : > { %7284 = vmatmul.mubr.msk.f32.vlgmr.msra.gmra.mrb[12].mxu0 %vm1336_vm3, %v2180_v27  ;;  %v2514_v29 = vpop.permute.xlu0 %2513  ;;  %v2512_v32 = vpop.permute.xlu1 %2511 }
 0x273   : > { %7292 = vmatpush3.xpose.msk.msra.mxu0 %vm1336_vm3, %v2348_v28  ;;  %7293 = vmatprep.mubr.msk.f32.mxu0 %vm8154_vm2, %v8153_v12 }
 0x274   : > { %7301 = vmatprep.subr.mxu0 %v8153_v12 }
 0x276   : > { %7294 = vmatmul.mubr.msk.f32.vlgmr.msra.gmra.mrb[14].mxu0 %vm1336_vm3, %v2346_v30  ;;  %v1423_v31 = vpop.permute.xlu0 %1422  ;;  %v1589_v57 = vpop.permute.xlu1 %1588 }
 0x277   : > { %7237 = vmatpush3.msra.mxu1 %v1423_v31  ;;  %7302 = vmatpush3.xpose.msk.msra.mxu0 %vm1336_vm3, %v2514_v29 }
 0x278   : > { %7303 = vmatprep.mubr.msk.f32.mxu0 %vm8154_vm2, %v8153_v12  ;;  %7246 = vmatprep.subr.mxu1 %v8153_v12 }
 0x27a   : > { %7304 = vmatmul.mubr.msk.f32.vlgmr.msra.gmra.mrb[16].mxu0 %vm1336_vm3, %v2512_v32  ;;  %v1921_v58 = vpop.permute.xlu1 %1920 }
 0x331   : > { %v1407_v33 = vpop.f32.mrb[2].mxu0 }
 0x332   : > { %v7235_v34 = vpop.f32.mrb[3].mxu0  ;;  %v1411_v35 = vsel %vm1336_vm3, %v1407_v33, -inf }
 0x333   : > { %1412 = vmax.xlane.f32.xlu0 %v1411_v35  ;;  %v2821_v34 = vld [vmem:[%s8613_s23 + $0x8] sm:$0xff] }
 0x335   : > { %v1573_v36 = vpop.f32.mrb[4].mxu0 }
 0x336   : > { %v7245_v37 = vpop.f32.mrb[5].mxu0  ;;  %v1577_v38 = vsel %vm1336_vm3, %v1573_v36, -inf }
 0x337   : > { %1578 = vmax.xlane.f32.xlu1 %v1577_v38  ;;  %v2822_v38 = vld [vmem:[%s8613_s23 + $0x10] sm:$0xff] }
 0x339   : > { %v1739_v39 = vpop.f32.mrb[6].mxu0 }
 0x33a   : > { %v7255_v40 = vpop.f32.mrb[7].mxu0  ;;  %v1743_v52 = vsel %vm1336_vm3, %v1739_v39, -inf }
 0x33d   : > { %v1905_v41 = vpop.f32.mrb[8].mxu0 }
 0x33e   : > { %v7265_v42 = vpop.f32.mrb[9].mxu0  ;;  %v1909_v53 = vsel %vm1336_vm3, %v1905_v41, -inf }
 0x341   : > { %v2087_v43 = vpop.f32.mrb[10].mxu0 }
 0x342   : > { %v7275_v44 = vpop.f32.mrb[11].mxu0  ;;  %v2091_v45 = vsel %vm1336_vm3, %v2087_v43, -inf }
 0x343   : > { %2092 = vmax.xlane.f32.xlu1 %v2091_v45 }
 0x345   : > { %v2253_v46 = vpop.f32.mrb[12].mxu0 }
 0x346   : > { %v7285_v47 = vpop.f32.mrb[13].mxu0  ;;  %v2257_v54 = vsel %vm1336_vm3, %v2253_v46, -inf }
 0x349   : > { %1754 = vrot.lane.b32.xlu0 %v8716_v16, %s9493_s4  ;;  %v8799_v48 = vpop.f32.mrb[14].mxu0 }
 0x34a   : > { %v7295_v49 = vpop.f32.mrb[15].mxu0  ;;  %v2423_v55 = vsel %vm1336_vm3, %v8799_v48, -inf }
 0x34d   : > { %v8801_v50 = vpop.f32.mrb[16].mxu0 }
 0x34e   : > { %v7305_v51 = vpop.f32.mrb[17].mxu0  ;;  %v2589_v56 = vsel %vm1336_vm3, %v8801_v50, -inf }
 0x354   : > { %2268 = vrot.lane.b32.xlu1 %v8730_v17, %s8162_s12 }
 0x368   : > { %1744 = vmax.xlane.f32.xlu0 %v1743_v52 }
 0x36c   : > { %1910 = vmax.xlane.f32.xlu0 %v1909_v53 }
 0x370   : > { %2258 = vmax.xlane.f32.xlu0 %v2257_v54 }
 0x378   : > { %2424 = vmax.xlane.f32.xlu1 %v2423_v55 }
 0x37c   : > { %2590 = vmax.xlane.f32.xlu1 %v2589_v56 }
 0x386   : > { %2102 = vrot.lane.b32.xlu0 %v8730_v17, %s8163_s16 }
 0x38a   : > { %2434 = vrot.lane.b32.xlu0 %v8730_v17, %s9493_s4  ;;  %s9570_s4 = scalar_lea.vmem %s9569_s9, %s8589_s29  ;;  %s9573_s9 = smov 48  }
 0x38d   : > { %2600 = vrot.lane.b32.xlu1 %v8730_v17, %s8164_s18 }
 0x3c0   : > { %v1413_v59 = vpop.xlane.xlu0 %1412 }
 0x3c1   : > { %v1414_v60 = vsub.f32 %v1407_v33, %v1413_v59  ;;  %v2820_v33 = vld [vmem:[%s8613_s23] sm:$0xff] }
 0x3c3   : > { %v1415_v61 = vmul.f32 1.442695, %v1414_v60 }
 0x3c4   : > { %v1579_v62 = vpop.xlane.xlu1 %1578  ;;  %v1755_v3 = vpop.permute.xlu0 %1754 }
 0x3c5   : > { %7793 = vpow2.f32 %v1415_v61  ;;  %v1580_v63 = vsub.f32 %v1573_v36, %v1579_v62  ;;  %v7613_v36 = vpack.c.bf16 %v2821_v34, %v2820_v33 }
 0x3c7   : > { %v1581_v0 = vmul.f32 1.442695, %v1580_v63  ;;  %v1240_v63 = vld [vmem:[%s8604_s30] sm:$0xff] }
 0x3c9   : > { %7795 = vpow2.f32 %v1581_v0  ;;  %v1241_v0 = vld [vmem:[%s8604_s30 + $0x8] sm:$0xff] }
 0x3cf   : > { %v8818_v1 = vpop.eup %7793 }
 0x3d0   : > { %7239 = vmatmul.mubr.msk.f32.vlgmr.msra.gmra.mrb[0].mxu1 %vm1336_vm3, %v8818_v1  ;;  %v2093_v6 = vpop.xlane.xlu1 %2092  ;;  %v1417_v44 = vsel %vm1336_vm3, %v8818_v1, 0.0  ;;  %v7605_v1 = vpack.c.bf16 %v1241_v0, %v1240_v63 }
 0x3d1   : > { %7247 = vmatpush3.msra.mxu1 %v1589_v57  ;;  %7248 = vmatprep.mubr.msk.f32.mxu1 %vm8154_vm2, %v8153_v12  ;;  %v2094_v9 = vsub.f32 %v2087_v43, %v2093_v6 }
 0x3d2   : > { %7256 = vmatprep.subr.mxu1 %v8153_v12  ;;  %7606 = vmatprep.subr.bf16.mxu0 %v7605_v1 }
 0x3d3   : > { %v7796_v2 = vpop.eup %7795  ;;  %v2095_v14 = vmul.f32 1.442695, %v2094_v9  ;;  %7608 = vmatpush3.bf16.msra.mxu0 %v7605_v1 }
 0x3d4   : > { %7249 = vmatmul.mubr.msk.f32.vlgmr.msra.gmra.mrb[2].mxu1 %vm1336_vm3, %v7796_v2  ;;  %v1583_v4 = vsel %vm1336_vm3, %v7796_v2, 0.0  ;;  %v2269_v18 = vpop.permute.xlu1 %2268 }
 0x3d5   : > { %7257 = vmatpush3.msra.mxu1 %v1755_v3  ;;  %1584 = vadd.xlane.f32.xlu0 %v1583_v4 }
 0x3d6   : > { %7258 = vmatprep.mubr.msk.f32.mxu1 %vm8154_vm2, %v8153_v12  ;;  %7266 = vmatprep.subr.mxu1 %v8153_v12 }
 0x3f5   : > { %v1745_v5 = vpop.xlane.xlu0 %1744 }
 0x3f6   : > { %v1746_v7 = vsub.f32 %v1739_v39, %v1745_v5  ;;  %v2823_v39 = vld [vmem:[%s8613_s23 + $0x18] sm:$0xff]  ;;  %s8167_s23 = smov 16  }
 0x3f7   : > { %v7617_v42 = vpack.c.bf16 %v2823_v39, %v2822_v38 }
 0x3f8   : > { %v1747_v8 = vmul.f32 1.442695, %v1746_v7  ;;  %v1242_v7 = vld [vmem:[%s8604_s30 + $0x10] sm:$0xff] }
 0x3f9   : > { %v1911_v10 = vpop.xlane.xlu0 %1910 }
 0x3fa   : > { %7797 = vpow2.f32 %v1747_v8  ;;  %v1912_v11 = vsub.f32 %v1905_v41, %v1911_v10  ;;  %v1243_v8 = vld [vmem:[%s8604_s30 + $0x18] sm:$0xff]  ;;  %s9571_s30 = sld [smem:[#allocation27_spill]] }
 0x3fb   : > { %v7609_v9 = vpack.c.bf16 %v1243_v8, %v1242_v7 }
 0x3fc   : > { %v1913_v13 = vmul.f32 1.442695, %v1912_v11 }
 0x3fd   : > { %v2259_v15 = vpop.xlane.xlu0 %2258  ;;  %7610 = vmatprep.subr.bf16.mxu0 %v7609_v9 }
 0x3fe   : > { %7799 = vpow2.f32 %v1913_v13  ;;  %v2260_v16 = vsub.f32 %v2253_v46, %v2259_v15  ;;  %v8866_v46 = vld [vmem:[%s9568_s7] sm:$0xff]  ;;  %7612 = vmatpush3.bf16.msra.mxu0 %v7609_v9 }
 0x3ff   : > { %7801 = vpow2.f32 %v2095_v14  ;;  %7333 = vmatprep.subr.mxu0 %v8153_v12 }
 0x400   : > { %v2261_v17 = vmul.f32 1.442695, %v2260_v16  ;;  %s9572_s11 = scalar_lea.vmem %s9571_s30, %s8589_s29 }
 0x401   : > { %v2103_v25 = vpop.permute.xlu0 %2102 }
 0x402   : > { %7803 = vpow2.f32 %v2261_v17 }
 0x404   : > { %v7798_v19 = vpop.eup %7797 }
 0x405   : > { %v2425_v20 = vpop.xlane.xlu1 %2424  ;;  %7259 = vmatmul.mubr.msk.f32.vlgmr.msra.gmra.mrb[4].mxu1 %vm1336_vm3, %v7798_v19  ;;  %v1749_v21 = vsel %vm1336_vm3, %v7798_v19, 0.0  ;;  %v2435_v35 = vpop.permute.xlu0 %2434 }
 0x406   : > { %v2426_v22 = vsub.f32 %v8799_v48, %v2425_v20  ;;  %7267 = vmatpush3.msra.mxu1 %v1921_v58  ;;  %1750 = vadd.xlane.f32.xlu1 %v1749_v21  ;;  %v8874_v48 = vld [vmem:[%s9568_s7 + $0x8] sm:$0xff] }
 0x407   : > { %7268 = vmatprep.mubr.msk.f32.mxu1 %vm8154_vm2, %v8153_v12  ;;  %7276 = vmatprep.subr.mxu1 %v8153_v12 }
 0x408   : > { %v7800_v23 = vpop.eup %7799  ;;  %v2427_v24 = vmul.f32 1.442695, %v2426_v22 }
 0x409   : > { %v2591_v26 = vpop.xlane.xlu1 %2590  ;;  %7269 = vmatmul.mubr.msk.f32.vlgmr.msra.gmra.mrb[6].mxu1 %vm1336_vm3, %v7800_v23  ;;  %v1915_v27 = vsel %vm1336_vm3, %v7800_v23, 0.0  ;;  %v7802_v29 = vpop.eup %7801 }
 0x40a   : > { %7805 = vpow2.f32 %v2427_v24  ;;  %v2592_v28 = vsub.f32 %v8801_v50, %v2591_v26  ;;  %7277 = vmatpush3.msra.mxu1 %v2103_v25  ;;  %1916 = vadd.xlane.f32.xlu0 %v1915_v27  ;;  %v2097_v47 = vsel %vm1336_vm3, %v7802_v29, 0.0  ;;  %v6964_v26 = vld [vmem:[%s9570_s4] ss:$0 sm:$0xff]  ;;  %s9574_s4 = sld [smem:[#allocation31_spill]] }
 0x40b   : > { %7278 = vmatprep.mubr.msk.f32.mxu1 %vm8154_vm2, %v8153_v12  ;;  %7286 = vmatprep.subr.mxu1 %v8153_v12 }
 0x40c   : > { %v7804_v30 = vpop.eup %7803  ;;  %v2593_v31 = vmul.f32 1.442695, %v2592_v28 }
 0x40d   : > { %7279 = vmatmul.mubr.msk.f32.vlgmr.msra.gmra.mrb[8].mxu1 %vm1336_vm3, %v7802_v29  ;;  %v2263_v32 = vsel %vm1336_vm3, %v7804_v30, 0.0  ;;  %v2601_v40 = vpop.permute.xlu1 %2600 }
 0x40e   : > { %7807 = vpow2.f32 %v2593_v31  ;;  %7287 = vmatpush3.msra.mxu1 %v2269_v18  ;;  %2264 = vadd.xlane.f32.xlu0 %v2263_v32 }
 0x40f   : > { %7288 = vmatprep.mubr.msk.f32.mxu1 %vm8154_vm2, %v8153_v12  ;;  %7296 = vmatprep.subr.mxu1 %v8153_v12 }
 0x410   : > { %s9575_s30 = scalar_lea.vmem %s9574_s4, %s8589_s29 }
 0x411   : > { %7289 = vmatmul.mubr.msk.f32.vlgmr.msra.gmra.mrb[10].mxu1 %vm1336_vm3, %v7804_v30 }
 0x412   : > { %7297 = vmatpush3.msra.mxu1 %v2435_v35  ;;  %7298 = vmatprep.mubr.msk.f32.mxu1 %vm8154_vm2, %v8153_v12 }
 0x413   : > { %7306 = vmatprep.subr.mxu1 %v8153_v12 }
 0x414   : > { %v7806_v37 = vpop.eup %7805 }
 0x415   : > { %7299 = vmatmul.mubr.msk.f32.vlgmr.msra.gmra.mrb[12].mxu1 %vm1336_vm3, %v7806_v37  ;;  %v2429_v41 = vsel %vm1336_vm3, %v7806_v37, 0.0 }
 0x416   : > { %7307 = vmatpush3.msra.mxu1 %v2601_v40  ;;  %2430 = vadd.xlane.f32.xlu1 %v2429_v41 }
 0x417   : > { %7308 = vmatprep.mubr.msk.f32.mxu1 %vm8154_vm2, %v8153_v12  ;;  %7614 = vmatprep.subr.bf16.mxu1 %v7613_v36 }
 0x418   : > { %v7808_v43 = vpop.eup %7807 }
 0x419   : > { %7309 = vmatmul.mubr.msk.f32.vlgmr.msra.gmra.mrb[14].mxu1 %vm1336_vm3, %v7808_v43  ;;  %v2595_v45 = vsel %vm1336_vm3, %v7808_v43, 0.0 }
 0x41a   : > { %7616 = vmatpush3.bf16.msra.mxu1 %v7613_v36  ;;  %1418 = vadd.xlane.f32.xlu1 %v1417_v44 }
 0x41b   : > { %2596 = vadd.xlane.f32.xlu0 %v2595_v45  ;;  %7618 = vmatprep.subr.bf16.mxu1 %v7617_v42 }
 0x41c   : > { %7330 = vmatprep.mubr.msk.f32.mxu1 %vm1251_vm1, %v8866_v46 }
 0x41e   : > { %7620 = vmatpush3.bf16.msra.mxu1 %v7617_v42 }
 0x41f   : > { %2098 = vadd.xlane.f32.xlu0 %v2097_v47  ;;  %7338 = vmatprep.subr.mxu1 %v8153_v12 }
 0x421   : > { %7331 = vmatmul.mubr.msk.f32.vlgmr.msra.gmra.mrb[16].mxu1 %vm1251_vm1, %v8874_v48 }
 0x422   : > { %7340 = vmatprep.mubr.msk.f32.mxu1 %vm8154_vm2, %v8153_v12 }
 0x462   : > { %v1585_v49 = vpop.xlane.xlu0 %1584 }
 0x463   : > { %7809 = vrcp.f32 %v1585_v49 }
 0x46d   : > { %v7810_v52 = vpop.eup %7809 }
 0x493   : > { %v1751_v56 = vpop.xlane.xlu1 %1750 }
 0x494   : > { %7811 = vrcp.f32 %v1751_v56 }
 0x497   : > { %v1917_v57 = vpop.xlane.xlu0 %1916 }
 0x498   : > { %7813 = vrcp.f32 %v1917_v57 }
 0x49b   : > { %v2265_v58 = vpop.xlane.xlu0 %2264 }
 0x49c   : > { %7815 = vrcp.f32 %v2265_v58 }
 0x49e   : > { %v7812_v59 = vpop.eup %7811 }
 0x4a2   : > { %v7814_v3 = vpop.eup %7813 }
 0x4a3   : > { %v8881_v50 = vpop.f32.mrb[0].mxu1  ;;  %v2431_v2 = vpop.xlane.xlu1 %2430 }
 0x4a4   : > { %v7240_v51 = vpop.f32.mrb[1].mxu1  ;;  %7817 = vrcp.f32 %v2431_v2  ;;  %v8993_v2 = vld [vmem:[%s9572_s11] ss:$0 sm:$0xff] }
 0x4a6   : > { %v7816_v14 = vpop.eup %7815 }
 0x4a7   : > { %v1660_v53 = vpop.f32.mrb[2].mxu1  ;;  %v1419_v31 = vpop.xlane.xlu1 %1418 }
 0x4a8   : > { %v1664_v54 = vmul.f32 %v7810_v52, %v1660_v53  ;;  %v7250_v55 = vpop.f32.mrb[3].mxu1  ;;  %v2597_v10 = vpop.xlane.xlu0 %2596 }
 0x4a9   : > { %7819 = vrcp.f32 %v2597_v10 }
 0x4aa   : > { %1998 = vrot.lane.b32.xlu1 %v1664_v54, %s8166_s3  ;;  %7821 = vrcp.f32 %v1419_v31 }
 0x4ac   : > { %v2099_v32 = vpop.xlane.xlu0 %2098 }
 0x4ad   : > { %7823 = vrcp.f32 %v2099_v32 }
 0x4ae   : > { %v7818_v18 = vpop.eup %7817 }
 0x4b3   : > { %v7820_v22 = vpop.eup %7819 }
 0x4b4   : > { %v7822_v33 = vpop.eup %7821 }
 0x4b5   : > { %v1498_v35 = vmul.f32 %v7822_v33, %v8881_v50 }
 0x4b7   : > { %v7824_v41 = vpop.eup %7823 }
 0x4d8   : > { %v1826_v60 = vpop.f32.mrb[4].mxu1 }
 0x4d9   : > { %v1830_v61 = vmul.f32 %v7812_v59, %v1826_v60  ;;  %v7260_v62 = vpop.f32.mrb[5].mxu1 }
 0x4db   : > { %2002 = vrot.lane.b32.xlu0 %v1830_v61, %s8167_s23 }
 0x4dc   : > { %v1992_v4 = vpop.f32.mrb[6].mxu1 }
 0x4dd   : > { %v1996_v5 = vmul.f32 %v7814_v3, %v1992_v4  ;;  %v7270_v6 = vpop.f32.mrb[7].mxu1 }
 0x4df   : > { %2006 = vrot.lane.b32.xlu1 %v1996_v5, %s8168_s28 }
 0x4e0   : > { %v2174_v11 = vpop.f32.mrb[8].mxu1 }
 0x4e1   : > { %v7280_v13 = vpop.f32.mrb[9].mxu1  ;;  %v2178_v43 = vmul.f32 %v7824_v41, %v2174_v11 }
 0x4e4   : > { %v2340_v15 = vpop.f32.mrb[10].mxu1 }
 0x4e5   : > { %v2344_v16 = vmul.f32 %v7816_v14, %v2340_v15  ;;  %v7290_v17 = vpop.f32.mrb[11].mxu1 }
 0x4e7   : > { %2678 = vrot.lane.b32.xlu1 %v2344_v16, %s8166_s3 }
 0x4e8   : > { %v2506_v19 = vpop.f32.mrb[12].mxu1 }
 0x4e9   : > { %v2510_v20 = vmul.f32 %v7818_v18, %v2506_v19  ;;  %v7300_v21 = vpop.f32.mrb[13].mxu1 }
 0x4eb   : > { %2682 = vrot.lane.b32.xlu0 %v2510_v20, %s8167_s23 }
 0x4ec   : > { %v2672_v23 = vpop.f32.mrb[14].mxu1 }
 0x4ed   : > { %v2676_v24 = vmul.f32 %v7820_v22, %v2672_v23  ;;  %v7310_v25 = vpop.f32.mrb[15].mxu1 }
 0x4ef   : > { %2686 = vrot.lane.b32.xlu1 %v2676_v24, %s8168_s28 }
 0x4f4   : > { %v7332_v27 = vpop.f32.mrb[16].mxu1 }
 0x4f5   : > { %v2908_v28 = vpop.f32.mrb[17].mxu1  ;;  %v8913_v30 = vadd.f32 %v7332_v27, %v6964_v26 }
 0x4f6   : > { %v8899_v29 = vadd.f32 %v6964_v26, %v2908_v28 }
 0x4f8   : > { %2918 = vrot.lane.b32.xlu0 %v8899_v29, %s8156_s21  ;;  %3084 = vrot.lane.b32.xlu1 %v8899_v29, %s8158_s15 }
 0x4fc   : > { %3082 = vrot.lane.b32.xlu0 %v8899_v29, %s8155_s14  ;;  %3250 = vrot.lane.b32.xlu1 %v8899_v29, %s8157_s27 }
 0x500   : > { %3248 = vrot.lane.b32.xlu0 %v8899_v29, %s8160_s8  ;;  %3416 = vrot.lane.b32.xlu1 %v8899_v29, %s8159_s5 }
 0x504   : > { %3414 = vrot.lane.b32.xlu0 %v8899_v29, %s8161_s10  ;;  %3596 = vrot.lane.b32.xlu1 %v8913_v30, %s8156_s21 }
 0x508   : > { %3762 = vrot.lane.b32.xlu0 %v8913_v30, %s8158_s15  ;;  %3760 = vrot.lane.b32.xlu1 %v8913_v30, %s8155_s14 }
 0x50c   : > { %3928 = vrot.lane.b32.xlu0 %v8913_v30, %s8157_s27  ;;  %3926 = vrot.lane.b32.xlu1 %v8913_v30, %s8160_s8 }
 0x510   : > { %4094 = vrot.lane.b32.xlu0 %v8913_v30, %s8159_s5  ;;  %4092 = vrot.lane.b32.xlu1 %v8913_v30, %s8161_s10 }
 0x514   : > { %3005 = vrot.lane.b32.xlu0 %v8899_v29, %s8163_s16  ;;  %3171 = vrot.lane.b32.xlu1 %v8899_v29, %s8162_s12 }
 0x518   : > { %3503 = vrot.lane.b32.xlu1 %v8899_v29, %s8164_s18 }
 0x51c   : > { %v1999_v34 = vpop.permute.xlu1 %1998 }
 0x51d   : > { %v2009_v37 = vsel %vm1336_vm3, %v1498_v35, %v1999_v34 }
 0x54d   : > { %v2003_v36 = vpop.permute.xlu0 %2002 }
 0x54e   : > { %v2011_v38 = vsel %vm2010_vm4, %v2009_v37, %v2003_v36 }
 0x551   : > { %v2007_v39 = vpop.permute.xlu1 %2006 }
 0x552   : > { %v2013_v40 = vsel %vm2012_vm5, %v2011_v38, %v2007_v39 }
 0x553   : > { %7319 = vmatprep.mubr.msk.f32.mxu0 %vm1251_vm1, %v2013_v40 }
 0x559   : > { %v2679_v42 = vpop.permute.xlu1 %2678 }
 0x55a   : > { %v2689_v45 = vsel %vm1336_vm3, %v2178_v43, %v2679_v42 }
 0x55d   : > { %v2683_v44 = vpop.permute.xlu0 %2682 }
 0x55e   : > { %v2690_v47 = vsel %vm2010_vm4, %v2689_v45, %v2683_v44 }
 0x561   : > { %v2687_v49 = vpop.permute.xlu1 %2686 }
 0x562   : > { %v2691_v50 = vsel %vm2012_vm5, %v2690_v47, %v2687_v49 }
 0x563   : > { %7320 = vmatmul.mubr.msk.f32.vlgmr.msra.gmra.mrb[18].mxu0 %vm1251_vm1, %v2691_v50 }
 0x564   : > { %7335 = vmatprep.mubr.msk.f32.mxu0 %vm8154_vm2, %v8153_v12 }
 0x56a   : > { %v3085_v51 = vpop.permute.xlu1 %3084  ;;  %v2919_v52 = vpop.permute.xlu0 %2918 }
 0x56b   : > { %7334 = vmatpush3.xpose.msk.msra.mxu0 %vm1336_vm3, %v2919_v52 }
 0x56c   : > { %7343 = vmatprep.subr.mxu0 %v8153_v12 }
 0x56e   : > { %v3251_v53 = vpop.permute.xlu1 %3250  ;;  %7336 = vmatmul.mubr.msk.f32.vlgmr.msra.gmra.mrb[20].mxu0 %vm1336_vm3, %v8899_v29  ;;  %v3083_v54 = vpop.permute.xlu0 %3082 }
 0x56f   : > { %7344 = vmatpush3.xpose.msk.msra.mxu0 %vm1336_vm3, %v3085_v51  ;;  %7345 = vmatprep.mubr.msk.f32.mxu0 %vm8154_vm2, %v8153_v12 }
 0x570   : > { %7353 = vmatprep.subr.mxu0 %v8153_v12 }
 0x572   : > { %v3417_v55 = vpop.permute.xlu1 %3416  ;;  %7346 = vmatmul.mubr.msk.f32.vlgmr.msra.gmra.mrb[22].mxu0 %vm1336_vm3, %v3083_v54  ;;  %v3249_v56 = vpop.permute.xlu0 %3248 }
 0x573   : > { %7354 = vmatpush3.xpose.msk.msra.mxu0 %vm1336_vm3, %v3251_v53  ;;  %7355 = vmatprep.mubr.msk.f32.mxu0 %vm8154_vm2, %v8153_v12 }
 0x574   : > { %7363 = vmatprep.subr.mxu0 %v8153_v12 }
 0x576   : > { %7356 = vmatmul.mubr.msk.f32.vlgmr.msra.gmra.mrb[24].mxu0 %vm1336_vm3, %v3249_v56  ;;  %v3415_v57 = vpop.permute.xlu0 %3414  ;;  %v3597_v58 = vpop.permute.xlu1 %3596 }
 0x577   : > { %7364 = vmatpush3.xpose.msk.msra.mxu0 %vm1336_vm3, %v3417_v55  ;;  %7365 = vmatprep.mubr.msk.f32.mxu0 %vm8154_vm2, %v8153_v12 }
 0x578   : > { %7373 = vmatprep.subr.mxu0 %v8153_v12 }
 0x57a   : > { %7366 = vmatmul.mubr.msk.f32.vlgmr.msra.gmra.mrb[26].mxu0 %vm1336_vm3, %v3415_v57  ;;  %v3763_v59 = vpop.permute.xlu0 %3762  ;;  %v3761_v60 = vpop.permute.xlu1 %3760 }
 0x57b   : > { %7374 = vmatpush3.xpose.msk.msra.mxu0 %vm1336_vm3, %v3597_v58  ;;  %7375 = vmatprep.mubr.msk.f32.mxu0 %vm8154_vm2, %v8153_v12 }
 0x57c   : > { %7383 = vmatprep.subr.mxu0 %v8153_v12 }
 0x57e   : > { %7376 = vmatmul.mubr.msk.f32.vlgmr.msra.gmra.mrb[28].mxu0 %vm1336_vm3, %v8913_v30  ;;  %v3929_v61 = vpop.permute.xlu0 %3928  ;;  %v3927_v63 = vpop.permute.xlu1 %3926 }
 0x57f   : > { %7384 = vmatpush3.xpose.msk.msra.mxu0 %vm1336_vm3, %v3763_v59  ;;  %7385 = vmatprep.mubr.msk.f32.mxu0 %vm8154_vm2, %v8153_v12 }
 0x580   : > { %7393 = vmatprep.subr.mxu0 %v8153_v12 }
 0x582   : > { %7386 = vmatmul.mubr.msk.f32.vlgmr.msra.gmra.mrb[30].mxu0 %vm1336_vm3, %v3761_v60  ;;  %v4095_v62 = vpop.permute.xlu0 %4094  ;;  %v4093_v1 = vpop.permute.xlu1 %4092 }
 0x583   : > { %7394 = vmatpush3.xpose.msk.msra.mxu0 %vm1336_vm3, %v3929_v61  ;;  %7395 = vmatprep.mubr.msk.f32.mxu0 %vm8154_vm2, %v8153_v12 }
 0x584   : > { %7403 = vmatprep.subr.mxu0 %v8153_v12 }
 0x586   : > { %7396 = vmatmul.mubr.msk.f32.vlgmr.msra.gmra.mrb[32].mxu0 %vm1336_vm3, %v3927_v63  ;;  %v3006_v0 = vpop.permute.xlu0 %3005  ;;  %v3172_v32 = vpop.permute.xlu1 %3171 }
 0x587   : > { %7339 = vmatpush3.msra.mxu1 %v3006_v0  ;;  %7404 = vmatpush3.xpose.msk.msra.mxu0 %vm1336_vm3, %v4095_v62 }
 0x588   : > { %7405 = vmatprep.mubr.msk.f32.mxu0 %vm8154_vm2, %v8153_v12  ;;  %7348 = vmatprep.subr.mxu1 %v8153_v12 }
 0x58a   : > { %7406 = vmatmul.mubr.msk.f32.vlgmr.msra.gmra.mrb[34].mxu0 %vm1336_vm3, %v4093_v1  ;;  %v3504_v33 = vpop.permute.xlu1 %3503 }
 0x636   : > { %v7321_v3 = vpop.f32.mrb[18].mxu0 }
 0x637   : > { %v8996_v4 = vadd.f32 %v7321_v3, %v8993_v2  ;;  %v8998_v5 = vpop.f32.mrb[19].mxu0 }
 0x641   : > { %v2990_v6 = vpop.f32.mrb[20].mxu0 }
 0x642   : > { %v7337_v7 = vpop.f32.mrb[21].mxu0  ;;  %v2994_v8 = vsel %vm1336_vm3, %v2990_v6, -inf }
 0x643   : > { %2995 = vmax.xlane.f32.xlu0 %v2994_v8 }
 0x645   : > { %v3156_v9 = vpop.f32.mrb[22].mxu0 }
 0x646   : > { %v7347_v10 = vpop.f32.mrb[23].mxu0  ;;  %v3160_v11 = vsel %vm1336_vm3, %v3156_v9, -inf }
 0x647   : > { %3161 = vmax.xlane.f32.xlu1 %v3160_v11 }
 0x649   : > { %v3322_v13 = vpop.f32.mrb[24].mxu0 }
 0x64a   : > { %v7357_v14 = vpop.f32.mrb[25].mxu0  ;;  %v3326_v26 = vsel %vm1336_vm3, %v3322_v13, -inf }
 0x64d   : > { %v3488_v15 = vpop.f32.mrb[26].mxu0 }
 0x64e   : > { %v7367_v16 = vpop.f32.mrb[27].mxu0  ;;  %v3492_v27 = vsel %vm1336_vm3, %v3488_v15, -inf }
 0x651   : > { %v3668_v17 = vpop.f32.mrb[28].mxu0 }
 0x652   : > { %v7377_v18 = vpop.f32.mrb[29].mxu0  ;;  %v3672_v19 = vsel %vm1336_vm3, %v3668_v17, -inf }
 0x653   : > { %3673 = vmax.xlane.f32.xlu1 %v3672_v19 }
 0x655   : > { %v3834_v20 = vpop.f32.mrb[30].mxu0 }
 0x656   : > { %v7387_v21 = vpop.f32.mrb[31].mxu0  ;;  %v3838_v28 = vsel %vm1336_vm3, %v3834_v20, -inf }
 0x659   : > { %3337 = vrot.lane.b32.xlu0 %v8899_v29, %s9573_s9  ;;  %v9005_v22 = vpop.f32.mrb[32].mxu0 }
 0x65a   : > { %v7397_v23 = vpop.f32.mrb[33].mxu0  ;;  %v4004_v29 = vsel %vm1336_vm3, %v9005_v22, -inf }
 0x65d   : > { %v9007_v24 = vpop.f32.mrb[34].mxu0 }
 0x65e   : > { %v7407_v25 = vpop.f32.mrb[35].mxu0  ;;  %v4170_v31 = vsel %vm1336_vm3, %v9007_v24, -inf }
 0x664   : > { %3849 = vrot.lane.b32.xlu1 %v8913_v30, %s8162_s12 }
 0x678   : > { %3327 = vmax.xlane.f32.xlu0 %v3326_v26 }
 0x67c   : > { %3493 = vmax.xlane.f32.xlu0 %v3492_v27 }
 0x680   : > { %3839 = vmax.xlane.f32.xlu0 %v3838_v28 }
 0x688   : > { %4005 = vmax.xlane.f32.xlu1 %v4004_v29 }
 0x68c   : > { %4171 = vmax.xlane.f32.xlu1 %v4170_v31 }
 0x696   : > { %3683 = vrot.lane.b32.xlu0 %v8913_v30, %s8163_s16 }
 0x69a   : > { %4015 = vrot.lane.b32.xlu0 %v8913_v30, %s9573_s9 }
 0x69d   : > { %4181 = vrot.lane.b32.xlu1 %v8913_v30, %s8164_s18 }
 0x6d0   : > { %v2996_v34 = vpop.xlane.xlu0 %2995 }
 0x6d1   : > { %v2997_v35 = vsub.f32 %v2990_v6, %v2996_v34 }
 0x6d3   : > { %v2998_v36 = vmul.f32 1.442695, %v2997_v35  ;;  %v2825_v35 = vld [vmem:[%s8622_s2] sm:$0xff] }
 0x6d4   : > { %v3162_v37 = vpop.xlane.xlu1 %3161  ;;  %v3338_v41 = vpop.permute.xlu0 %3337 }
 0x6d5   : > { %7825 = vpow2.f32 %v2998_v36  ;;  %v3163_v38 = vsub.f32 %v3156_v9, %v3162_v37  ;;  %v2826_v36 = vld [vmem:[%s8622_s2 + $0x8] sm:$0xff] }
 0x6d6   : > { %v7621_v37 = vpack.c.bf16 %v2826_v36, %v2825_v35  ;;  %v7914_v36 = vld [vmem:[%s9565_s6 + $0x8] sm:$0xff] }
 0x6d7   : > { %v3164_v39 = vmul.f32 1.442695, %v3163_v38 }
 0x6d8   : > { %7622 = vmatprep.subr.bf16.mxu0 %v7621_v37 }
 0x6d9   : > { %7827 = vpow2.f32 %v3164_v39  ;;  %7624 = vmatpush3.bf16.msra.mxu0 %v7621_v37  ;;  %v2780_v37 = vadd.f32 %v7914_v36, %v8996_v4 }
 0x6df   : > { %v9024_v40 = vpop.eup %7825 }
 0x6e0   : > { %7341 = vmatmul.mubr.msk.f32.vlgmr.msra.gmra.mrb[18].mxu1 %vm1336_vm3, %v9024_v40  ;;  %v3674_v44 = vpop.xlane.xlu1 %3673 }
 0x6e1   : > { %7349 = vmatpush3.msra.mxu1 %v3172_v32  ;;  %7350 = vmatprep.mubr.msk.f32.mxu1 %vm8154_vm2, %v8153_v12  ;;  %v3675_v49 = vsub.f32 %v3668_v17, %v3674_v44  ;;  %v3000_v17 = vsel %vm1336_vm3, %v9024_v40, 0.0 }
 0x6e2   : > { %7358 = vmatprep.subr.mxu1 %v8153_v12 }
 0x6e3   : > { %v7828_v30 = vpop.eup %7827  ;;  %v3676_v53 = vmul.f32 1.442695, %v3675_v49 }
 0x6e4   : > { %7351 = vmatmul.mubr.msk.f32.vlgmr.msra.gmra.mrb[20].mxu1 %vm1336_vm3, %v7828_v30  ;;  %v3166_v42 = vsel %vm1336_vm3, %v7828_v30, 0.0  ;;  %v3850_v57 = vpop.permute.xlu1 %3849 }
 0x6e5   : > { %7359 = vmatpush3.msra.mxu1 %v3338_v41  ;;  %3167 = vadd.xlane.f32.xlu0 %v3166_v42  ;;  %v2827_v42 = vld [vmem:[%s8622_s2 + $0x10] sm:$0xff] }
 0x6e6   : > { %7360 = vmatprep.mubr.msk.f32.mxu1 %vm8154_vm2, %v8153_v12  ;;  %7368 = vmatprep.subr.mxu1 %v8153_v12 }
 0x705   : > { %v3328_v43 = vpop.xlane.xlu0 %3327 }
 0x706   : > { %v3329_v45 = vsub.f32 %v3322_v13, %v3328_v43  ;;  %v2828_v43 = vld [vmem:[%s8622_s2 + $0x18] sm:$0xff]  ;;  %s9576_s2 = scalar_lea.vmem [#allocation2], %s8557_s25 }
 0x707   : > { %v7625_v44 = vpack.c.bf16 %v2828_v43, %v2827_v42 }
 0x708   : > { %v3330_v47 = vmul.f32 1.442695, %v3329_v45 }
 0x709   : > { %v3494_v50 = vpop.xlane.xlu0 %3493  ;;  %7626 = vmatprep.subr.bf16.mxu0 %v7625_v44 }
 0x70a   : > { %7829 = vpow2.f32 %v3330_v47  ;;  %v3495_v51 = vsub.f32 %v3488_v15, %v3494_v50  ;;  %7628 = vmatpush3.bf16.msra.mxu0 %v7625_v44 }
 0x70c   : > { %v3496_v52 = vmul.f32 1.442695, %v3495_v51 }
 0x70d   : > { %v3840_v54 = vpop.xlane.xlu0 %3839 }
 0x70e   : > { %7831 = vpow2.f32 %v3496_v52  ;;  %v3841_v55 = vsub.f32 %v3834_v20, %v3840_v54 }
 0x70f   : > { %7833 = vpow2.f32 %v3676_v53 }
 0x710   : > { %v3842_v56 = vmul.f32 1.442695, %v3841_v55 }
 0x711   : > { %v3684_v0 = vpop.permute.xlu0 %3683 }
 0x712   : > { %7835 = vpow2.f32 %v3842_v56 }
 0x714   : > { %v7830_v58 = vpop.eup %7829 }
 0x715   : > { %v4006_v59 = vpop.xlane.xlu1 %4005  ;;  %7361 = vmatmul.mubr.msk.f32.vlgmr.msra.gmra.mrb[22].mxu1 %vm1336_vm3, %v7830_v58  ;;  %v3332_v60 = vsel %vm1336_vm3, %v7830_v58, 0.0  ;;  %v4016_v11 = vpop.permute.xlu0 %4015 }
 0x716   : > { %v4007_v61 = vsub.f32 %v9005_v22, %v4006_v59  ;;  %7369 = vmatpush3.msra.mxu1 %v3504_v33  ;;  %3333 = vadd.xlane.f32.xlu1 %v3332_v60 }
 0x717   : > { %7370 = vmatprep.mubr.msk.f32.mxu1 %vm8154_vm2, %v8153_v12  ;;  %7378 = vmatprep.subr.mxu1 %v8153_v12 }
 0x718   : > { %v7832_v62 = vpop.eup %7831  ;;  %v4008_v63 = vmul.f32 1.442695, %v4007_v61 }
 0x719   : > { %v4172_v1 = vpop.xlane.xlu1 %4171  ;;  %7371 = vmatmul.mubr.msk.f32.vlgmr.msra.gmra.mrb[24].mxu1 %vm1336_vm3, %v7832_v62  ;;  %v3498_v3 = vsel %vm1336_vm3, %v7832_v62, 0.0  ;;  %v7834_v7 = vpop.eup %7833  ;;  %v2771_v62 = vadd.f32 %v8993_v2, %v8998_v5 }
 0x71a   : > { %7837 = vpow2.f32 %v4008_v63  ;;  %v4173_v6 = vsub.f32 %v9007_v24, %v4172_v1  ;;  %7379 = vmatpush3.msra.mxu1 %v3684_v0  ;;  %3499 = vadd.xlane.f32.xlu0 %v3498_v3  ;;  %v3678_v19 = vsel %vm1336_vm3, %v7834_v7, 0.0  ;;  %v7913_v63 = vld [vmem:[%s9565_s6] sm:$0xff] }
 0x71b   : > { %7380 = vmatprep.mubr.msk.f32.mxu1 %vm8154_vm2, %v8153_v12  ;;  %7388 = vmatprep.subr.mxu1 %v8153_v12  ;;  %v2779_v0 = vadd.f32 %v7913_v63, %v2771_v62  ;;  %v4400_v63 = vld [vmem:[%s8631_s0] sm:$0xff] }
 0x71c   : > { %v7836_v8 = vpop.eup %7835  ;;  %v4174_v9 = vmul.f32 1.442695, %v4173_v6 }
 0x71d   : > { %7381 = vmatmul.mubr.msk.f32.vlgmr.msra.gmra.mrb[26].mxu1 %vm1336_vm3, %v7834_v7  ;;  %v3844_v10 = vsel %vm1336_vm3, %v7836_v8, 0.0  ;;  %v4182_v14 = vpop.permute.xlu1 %4181  ;;  %v2781_v1 = vsel %vm1251_vm1, %v2779_v0, 0.0 }
 0x71e   : > { %7839 = vpow2.f32 %v4174_v9  ;;  %7389 = vmatpush3.msra.mxu1 %v3850_v57  ;;  %3845 = vadd.xlane.f32.xlu0 %v3844_v10 }
 0x71f   : > { %7390 = vmatprep.mubr.msk.f32.mxu1 %vm8154_vm2, %v8153_v12  ;;  %7398 = vmatprep.subr.mxu1 %v8153_v12 }
 0x721   : > { %7391 = vmatmul.mubr.msk.f32.vlgmr.msra.gmra.mrb[28].mxu1 %vm1336_vm3, %v7836_v8 }
 0x722   : > { %7399 = vmatpush3.msra.mxu1 %v4016_v11  ;;  %7400 = vmatprep.mubr.msk.f32.mxu1 %vm8154_vm2, %v8153_v12 }
 0x723   : > { %7408 = vmatprep.subr.mxu1 %v8153_v12 }
 0x724   : > { %v7838_v13 = vpop.eup %7837 }
 0x725   : > { %7401 = vmatmul.mubr.msk.f32.vlgmr.msra.gmra.mrb[30].mxu1 %vm1336_vm3, %v7838_v13  ;;  %v4010_v15 = vsel %vm1336_vm3, %v7838_v13, 0.0 }
 0x726   : > { %7409 = vmatpush3.msra.mxu1 %v4182_v14  ;;  %4011 = vadd.xlane.f32.xlu1 %v4010_v15 }
 0x727   : > { %7410 = vmatprep.mubr.msk.f32.mxu1 %vm8154_vm2, %v8153_v12 }
 0x728   : > { %v7840_v16 = vpop.eup %7839 }
 0x729   : > { %7411 = vmatmul.mubr.msk.f32.vlgmr.msra.gmra.mrb[32].mxu1 %vm1336_vm3, %v7840_v16  ;;  %v4176_v18 = vsel %vm1336_vm3, %v7840_v16, 0.0 }
 0x72a   : > { %3001 = vadd.xlane.f32.xlu1 %v3000_v17  ;;  %4177 = vadd.xlane.f32.xlu0 %v4176_v18 }
 0x72e   : > { %3679 = vadd.xlane.f32.xlu0 %v3678_v19 }
 0x772   : > { %v3168_v20 = vpop.xlane.xlu0 %3167 }
 0x773   : > { %7841 = vrcp.f32 %v3168_v20 }
 0x77d   : > { %v7842_v23 = vpop.eup %7841 }
 0x7a3   : > { %v3334_v27 = vpop.xlane.xlu1 %3333 }
 0x7a4   : > { %7843 = vrcp.f32 %v3334_v27 }
 0x7a7   : > { %v3500_v28 = vpop.xlane.xlu0 %3499 }
 0x7a8   : > { %7845 = vrcp.f32 %v3500_v28 }
 0x7ab   : > { %v3846_v29 = vpop.xlane.xlu0 %3845 }
 0x7ac   : > { %7847 = vrcp.f32 %v3846_v29 }
 0x7ae   : > { %v7844_v31 = vpop.eup %7843 }
 0x7b2   : > { %v7846_v39 = vpop.eup %7845 }
 0x7b3   : > { %v9066_v21 = vpop.f32.mrb[18].mxu1  ;;  %v4012_v38 = vpop.xlane.xlu1 %4011 }
 0x7b4   : > { %v7342_v22 = vpop.f32.mrb[19].mxu1  ;;  %7849 = vrcp.f32 %v4012_v38 }
 0x7b6   : > { %v7848_v50 = vpop.eup %7847 }
 0x7b7   : > { %v3243_v24 = vpop.f32.mrb[20].mxu1  ;;  %v4178_v45 = vpop.xlane.xlu0 %4177 }
 0x7b8   : > { %v3247_v25 = vmul.f32 %v7842_v23, %v3243_v24  ;;  %v7352_v26 = vpop.f32.mrb[21].mxu1  ;;  %7851 = vrcp.f32 %v4178_v45  ;;  %v3002_v3 = vpop.xlane.xlu1 %3001  ;;  %v6991_v24 = vld [vmem:[%s9575_s30] ss:$0 sm:$0xff] }
 0x7b9   : > { %7853 = vrcp.f32 %v3002_v3 }
 0x7ba   : > { %3581 = vrot.lane.b32.xlu1 %v3247_v25, %s8166_s3 }
 0x7bb   : > { %v3680_v6 = vpop.xlane.xlu0 %3679 }
 0x7bc   : > { %7855 = vrcp.f32 %v3680_v6 }
 0x7be   : > { %v7850_v54 = vpop.eup %7849 }
 0x7c2   : > { %v7852_v58 = vpop.eup %7851 }
 0x7c3   : > { %v7854_v7 = vpop.eup %7853 }
 0x7c4   : > { %v3081_v9 = vmul.f32 %v7854_v7, %v9066_v21 }
 0x7c6   : > { %v7856_v14 = vpop.eup %7855 }
 0x7e8   : > { %v3409_v32 = vpop.f32.mrb[22].mxu1 }
 0x7e9   : > { %v3413_v33 = vmul.f32 %v7844_v31, %v3409_v32  ;;  %v7362_v34 = vpop.f32.mrb[23].mxu1 }
 0x7eb   : > { %3585 = vrot.lane.b32.xlu0 %v3413_v33, %s8167_s23 }
 0x7ec   : > { %v3575_v40 = vpop.f32.mrb[24].mxu1 }
 0x7ed   : > { %v3579_v30 = vmul.f32 %v7846_v39, %v3575_v40  ;;  %v7372_v41 = vpop.f32.mrb[25].mxu1 }
 0x7ef   : > { %3589 = vrot.lane.b32.xlu1 %v3579_v30, %s8168_s28 }
 0x7f0   : > { %v3755_v47 = vpop.f32.mrb[26].mxu1 }
 0x7f1   : > { %v7382_v49 = vpop.f32.mrb[27].mxu1  ;;  %v3759_v16 = vmul.f32 %v7856_v14, %v3755_v47  ;;  %v2808_v47 = vlaneseq }
 0x7f4   : > { %v3921_v51 = vpop.f32.mrb[28].mxu1 }
 0x7f5   : > { %v3925_v52 = vmul.f32 %v7848_v50, %v3921_v51  ;;  %v7392_v53 = vpop.f32.mrb[29].mxu1 }
 0x7f7   : > { %4259 = vrot.lane.b32.xlu1 %v3925_v52, %s8166_s3 }
 0x7f8   : > { %v4087_v55 = vpop.f32.mrb[30].mxu1 }
 0x7f9   : > { %v4091_v56 = vmul.f32 %v7850_v54, %v4087_v55  ;;  %v7402_v57 = vpop.f32.mrb[31].mxu1  ;;  %v9119_v54 = vshrl.u32 %v2808_v47, 7 }
 0x7fb   : > { %4263 = vrot.lane.b32.xlu0 %v4091_v56, %s8167_s23  ;;  %v2810_v57 = vsub.s32 0, %v9119_v54 }
 0x7fc   : > { %v4253_v59 = vpop.f32.mrb[32].mxu1 }
 0x7fd   : > { %v4257_v60 = vmul.f32 %v7852_v58, %v4253_v59  ;;  %v7412_v61 = vpop.f32.mrb[33].mxu1  ;;  %v9126_v58 = vld [vmem:[%s8661_s24] sm:$0x3f] }
 0x7fe   : > { %v2811_v61 = vrot.slane %v9126_v58, %v2810_v57 }
 0x7ff   : > { %4267 = vrot.lane.b32.xlu1 %v4257_v60, %s8168_s28  ;;  %v9130_v60 = vld [vmem:[%s8666_s13] sm:$0x3f] }
 0x800   : > { %v2817_v3 = vrot.slane %v9130_v60, %v2810_v57 }
 0x81a   : > { %2782 = vadd.xlane.f32.xlu0 %v2781_v1 }
 0x82c   : > { %v3582_v8 = vpop.permute.xlu1 %3581 }
 0x82d   : > { %v3592_v11 = vsel %vm1336_vm3, %v3081_v9, %v3582_v8  ;;  %v4402_v9 = vld [vmem:[%s8631_s0 + $0x10] sm:$0xff] }
 0x85d   : > { %v3586_v10 = vpop.permute.xlu0 %3585 }
 0x85e   : > { %v3593_v2 = vsel %vm2010_vm4, %v3592_v11, %v3586_v10  ;;  %v4403_v10 = vld [vmem:[%s8631_s0 + $0x18] sm:$0xff] }
 0x85f   : > { %v7788_v11 = vpack.i.bf16 %v4403_v10, %v4402_v9 }
 0x861   : > { %v3590_v5 = vpop.permute.xlu1 %3589 }
 0x862   : > { %v3594_v13 = vsel %vm2012_vm5, %v3593_v2, %v3590_v5  ;;  %v7633_v5 = vpack.c.bf16 %v4403_v10, %v4402_v9 }
 0x863   : > { %7421 = vmatprep.mubr.msk.f32.mxu0 %vm1251_vm1, %v3594_v13  ;;  %v9147_v13 = vld [vmem:[%s9576_s2] ss:$0 sm:$0xff] }
 0x869   : > { %v4260_v15 = vpop.permute.xlu1 %4259 }
 0x86a   : > { %v4270_v18 = vsel %vm1336_vm3, %v3759_v16, %v4260_v15 }
 0x86d   : > { %v4264_v17 = vpop.permute.xlu0 %4263 }
 0x86e   : > { %v4271_v19 = vsel %vm2010_vm4, %v4270_v18, %v4264_v17 }
 0x871   : > { %v4268_v20 = vpop.permute.xlu1 %4267 }
 0x872   : > { %v4272_v21 = vsel %vm2012_vm5, %v4271_v19, %v4268_v20 }
 0x873   : > { %7422 = vmatmul.mubr.msk.f32.vlgmr.msra.gmra.mrb[36].mxu0 %vm1251_vm1, %v4272_v21 }
 0x8a7   : > { %v2783_v22 = vpop.xlane.xlu0 %2782 }
 0x8a8   : > { %v2788_v23 = vmul.f32 0.03125, %v2783_v22 }
 0x8aa   : > { %v2790_v26 = vsub.f32 %v2779_v0, %v2788_v23  ;;  %v4401_v0 = vld [vmem:[%s8631_s0 + $0x8] sm:$0xff]  ;;  %s9577_s0 = scalar_lea.vmem [#allocation4], %s8557_s25 }
 0x8ab   : > { %v7783_v7 = vpack.i.bf16 %v4401_v0, %v4400_v63  ;;  %v7629_v2 = vpack.c.bf16 %v4401_v0, %v4400_v63 }
 0x8ac   : > { %v2792_v34 = vmul.f32 %v2790_v26, %v2790_v26 }
 0x8ad   : > { %7630 = vmatprep.subr.bf16.mxu1 %v7629_v2 }
 0x8ae   : > { %v2794_v38 = vsel %vm1251_vm1, %v2792_v34, 0.0  ;;  %7632 = vmatpush3.bf16.msra.mxu1 %v7629_v2 }
 0x8af   : > { %7634 = vmatprep.subr.bf16.mxu1 %v7633_v5 }
 0x8b2   : > { %7636 = vmatpush3.bf16.msra.mxu1 %v7633_v5 }
 0x8b3   : > { %7446 = vmatprep.subr.mxu1 %v8153_v12 }
 0x946   : > { %v7423_v25 = vpop.f32.mrb[36].mxu0 }
 0x947   : > { %v4357_v27 = vadd.f32 %v7423_v25, %v6991_v24  ;;  %v4351_v28 = vpop.f32.mrb[37].mxu0 }
 0x948   : > { %v4352_v29 = vadd.f32 %v6991_v24, %v4351_v28 }
 0x949   : > { %v4361_v31 = vadd.f32 %v4357_v27, %v8874_v48  ;;  %v2784_v48 = vsel %vm1251_vm1, %v2780_v37, 0.0 }
 0x94a   : > { %v4360_v32 = vadd.f32 %v4352_v29, %v8866_v46 }
 0x94b   : > { %v4365_v33 = vsel %vm1251_vm1, %v4361_v31, 0.0 }
 0x94c   : > { %4366 = vadd.xlane.f32.xlu1 %v4365_v33  ;;  %v4362_v35 = vsel %vm1251_vm1, %v4360_v32, 0.0 }
 0x94d   : > { %4363 = vadd.xlane.f32.xlu0 %v4362_v35 }
 0x950   : > { %2795 = vadd.xlane.f32.xlu1 %v2794_v38 }
 0x951   : > { %2785 = vadd.xlane.f32.xlu0 %v2784_v48 }
 0x9d9   : > { %v4367_v46 = vpop.xlane.xlu1 %4366 }
 0x9da   : > { %v4364_v39 = vpop.xlane.xlu0 %4363  ;;  %v4369_v30 = vmul.f32 0.03125, %v4367_v46 }
 0x9db   : > { %v4368_v40 = vmul.f32 0.03125, %v4364_v39 }
 0x9dc   : > { %v9112_v50 = vsub.f32 %v4361_v31, %v4369_v30 }
 0x9dd   : > { %v9108_v41 = vsub.f32 %v4360_v32, %v4368_v40  ;;  %v2796_v42 = vpop.xlane.xlu1 %2795 }
 0x9de   : > { %v2800_v43 = vmul.f32 0.03125, %v2796_v42  ;;  %v2786_v44 = vpop.xlane.xlu0 %2785  ;;  %v4373_v56 = vmul.f32 %v9112_v50, %v9112_v50 }
 0x9df   : > { %v2789_v45 = vmul.f32 0.03125, %v2786_v44  ;;  %v4372_v4 = vmul.f32 %v9108_v41, %v9108_v41 }
 0x9e0   : > { %v2802_v49 = vadd.f32 1e-05, %v2800_v43  ;;  %v4377_v59 = vsel %vm1251_vm1, %v4373_v56, 0.0 }
 0x9e1   : > { %v9114_v51 = vsub.f32 %v2780_v37, %v2789_v45  ;;  %v4374_v52 = vsel %vm1251_vm1, %v4372_v4, 0.0 }
 0x9e2   : > { %7857 = vrsqrt.f32 %v2802_v49  ;;  %4375 = vadd.xlane.f32.xlu1 %v4374_v52 }
 0x9e3   : > { %v2793_v53 = vmul.f32 %v9114_v51, %v9114_v51 }
 0x9e5   : > { %v2797_v55 = vsel %vm1251_vm1, %v2793_v53, 0.0 }
 0x9e6   : > { %2798 = vadd.xlane.f32.xlu0 %v2797_v55 }
 0x9ea   : > { %4378 = vadd.xlane.f32.xlu0 %v4377_v59 }
 0x9ec   : > { %v7858_v62 = vpop.eup %7857 }
 0x9ed   : > { %v2806_v1 = vmul.f32 %v7858_v62, %v2790_v26  ;;  %v4390_v26 = vsub.s32 1, %v9119_v54 }
 0x9ef   : > { %v2812_v6 = vmul.f32 %v2811_v61, %v2806_v1  ;;  %v4391_v32 = vrot.slane %v9126_v58, %v4390_v26  ;;  %v4397_v36 = vrot.slane %v9130_v60, %v4390_v26 }
 0x9f1   : > { %v9136_v8 = vadd.f32 %v2817_v3, %v2812_v6 }
 0x9f3   : > { %7432 = vmatprep.mubr.msk.f32.mxu1 %vm1251_vm1, %v9136_v8  ;;  %7784 = vrot.lane.b32.xlu1 %v7783_v7, %s8156_s21 }
 0x9f7   : > { %4513 = vrot.lane.b32.xlu1 %v9147_v13, %s8156_s21 }
 0xa00   : > { %7789 = vrot.lane.b32.xlu0 %v7788_v11, %s8156_s21 }
 0xa6f   : > { %v4376_v14 = vpop.xlane.xlu1 %4375 }
 0xa70   : > { %v4380_v15 = vmul.f32 0.03125, %v4376_v14 }
 0xa72   : > { %v4382_v16 = vadd.f32 1e-05, %v4380_v15 }
 0xa73   : > { %v2799_v17 = vpop.xlane.xlu0 %2798  ;;  %v7785_v18 = vpop.permute.xlu1 %7784 }
 0xa74   : > { %7859 = vrsqrt.f32 %v4382_v16  ;;  %v2801_v19 = vmul.f32 0.03125, %v2799_v17  ;;  %v7787_v20 = vunpack.i.h.bf16 %v7785_v18  ;;  %v7786_v21 = vunpack.i.l.bf16 %v7785_v18 }
 0xa76   : > { %v2803_v22 = vadd.f32 1e-05, %v2801_v19  ;;  %v7637_v23 = vpack.c.bf16 %v7787_v20, %v7786_v21 }
 0xa77   : > { %v4379_v24 = vpop.xlane.xlu0 %4378  ;;  %v4514_v47 = vpop.permute.xlu1 %4513 }
 0xa78   : > { %7861 = vrsqrt.f32 %v2803_v22  ;;  %v4381_v25 = vmul.f32 0.03125, %v4379_v24  ;;  %7638 = vmatprep.subr.bf16.mxu0 %v7637_v23 }
 0xa79   : > { %7640 = vmatpush3.bf16.msra.mxu0 %v7637_v23 }
 0xa7a   : > { %v4383_v27 = vadd.f32 1e-05, %v4381_v25 }
 0xa7b   : > { %v7790_v28 = vpop.permute.xlu0 %7789 }
 0xa7c   : > { %7863 = vrsqrt.f32 %v4383_v27  ;;  %v7792_v29 = vunpack.i.h.bf16 %v7790_v28  ;;  %v7791_v31 = vunpack.i.l.bf16 %v7790_v28 }
 0xa7e   : > { %v7860_v33 = vpop.eup %7859  ;;  %v7641_v34 = vpack.c.bf16 %v7792_v29, %v7791_v31 }
 0xa7f   : > { %v4386_v35 = vmul.f32 %v7860_v33, %v9108_v41 }
 0xa80   : > { %7642 = vmatprep.subr.bf16.mxu0 %v7641_v34 }
 0xa81   : > { %v4392_v37 = vmul.f32 %v4391_v32, %v4386_v35  ;;  %7644 = vmatpush3.bf16.msra.mxu0 %v7641_v34 }
 0xa82   : > { %v7862_v38 = vpop.eup %7861  ;;  %7456 = vmatprep.subr.mxu0 %v8153_v12 }
 0xa83   : > { %v2807_v48 = vmul.f32 %v7862_v38, %v9114_v51  ;;  %v9157_v46 = vadd.f32 %v4397_v36, %v4392_v37 }
 0xa85   : > { %7443 = vmatprep.mubr.msk.f32.mxu0 %vm1251_vm1, %v9157_v46  ;;  %v2813_v39 = vmul.f32 %v2811_v61, %v2807_v48 }
 0xa86   : > { %v7864_v40 = vpop.eup %7863 }
 0xa87   : > { %v4387_v30 = vmul.f32 %v7864_v40, %v9112_v50  ;;  %v9162_v41 = vadd.f32 %v2817_v3, %v2813_v39 }
 0xa89   : > { %v4393_v42 = vmul.f32 %v4391_v32, %v4387_v30  ;;  %7433 = vmatmul.mubr.msk.f32.vlgmr.msra.gmra.mrb[34].mxu1 %vm1251_vm1, %v9162_v41 }
 0xa8a   : > { %7448 = vmatprep.mubr.msk.f32.mxu1 %vm8154_vm2, %v8153_v12 }
 0xa8b   : > { %v9168_v43 = vadd.f32 %v4397_v36, %v4393_v42 }
 0xa8d   : > { %7444 = vmatmul.mubr.msk.f32.vlgmr.msra.gmra.mrb[38].mxu0 %vm1251_vm1, %v9168_v43 }
 0xa8e   : > { %7458 = vmatprep.mubr.msk.f32.mxu0 %vm8154_vm2, %v8153_v12 }
 0xb5c   : > { %v7434_v44 = vpop.f32.mrb[34].mxu1 }
 0xb5d   : > { %v4488_v45 = vpop.f32.mrb[35].mxu1  ;;  %v4494_v52 = vadd.f32 %v7434_v44, %v9147_v13 }
 0xb5e   : > { %v4489_v4 = vadd.f32 %v9147_v13, %v4488_v45 }
 0xb60   : > { %4761 = vrot.lane.b32.xlu0 %v4489_v4, %s8155_s14  ;;  %v7445_v49 = vpop.f32.mrb[38].mxu0 }
 0xb61   : > { %v4588_v50 = vpop.f32.mrb[39].mxu0  ;;  %v9188_v53 = vadd.f32 %v7445_v49, %v4514_v47 }
 0xb62   : > { %v4589_v51 = vadd.f32 %v4588_v50, %v4514_v47 }
 0xb64   : > { %4927 = vrot.lane.b32.xlu0 %v4489_v4, %s8160_s8  ;;  %4763 = vrot.lane.b32.xlu1 %v4589_v51, %s8155_s14 }
 0xb65   : > { %7447 = vmatpush3.xpose.msk.msra.mxu1 %vm1336_vm3, %v4589_v51 }
 0xb66   : > { %7451 = vmatprep.subr.mxu1 %v8153_v12 }
 0xb68   : > { %7449 = vmatmul.mubr.msk.f32.vlgmr.msra.gmra.mrb[36].mxu1 %vm1336_vm3, %v4489_v4  ;;  %5093 = vrot.lane.b32.xlu0 %v4489_v4, %s8161_s10 }
 0xb69   : > { %4929 = vrot.lane.b32.xlu1 %v4589_v51, %s8160_s8  ;;  %7453 = vmatprep.mubr.msk.f32.mxu1 %vm8154_vm2, %v8153_v12 }
 0xb6c   : > { %5438 = vrot.lane.b32.xlu0 %v4494_v52, %s8155_s14 }
 0xb6d   : > { %5095 = vrot.lane.b32.xlu1 %v4589_v51, %s8161_s10 }
 0xb70   : > { %5604 = vrot.lane.b32.xlu0 %v4494_v52, %s8160_s8 }
 0xb71   : > { %5440 = vrot.lane.b32.xlu1 %v9188_v53, %s8155_s14  ;;  %s9579_s14 = sld [smem:[#allocation21_spill]] }
 0xb74   : > { %5770 = vrot.lane.b32.xlu0 %v4494_v52, %s8161_s10 }
 0xb75   : > { %5606 = vrot.lane.b32.xlu1 %v9188_v53, %s8160_s8 }
 0xb78   : > { %4850 = vrot.lane.b32.xlu0 %v4589_v51, %s8158_s15 }
 0xb79   : > { %5772 = vrot.lane.b32.xlu1 %v9188_v53, %s8161_s10  ;;  %s9583_s10 = sld [smem:[#allocation42_spill]] }
 0xb7d   : > { %4684 = vrot.lane.b32.xlu1 %v4589_v51, %s8156_s21 }
 0xb81   : > { %5016 = vrot.lane.b32.xlu1 %v4589_v51, %s8157_s27 }
 0xb85   : > { %5182 = vrot.lane.b32.xlu1 %v4589_v51, %s8159_s5 }
 0xbd2   : > { %v4762_v55 = vpop.permute.xlu0 %4761 }
 0xbd6   : > { %v4764_v56 = vpop.permute.xlu1 %4763  ;;  %v4928_v57 = vpop.permute.xlu0 %4927 }
 0xbd7   : > { %7457 = vmatpush3.xpose.msk.msra.mxu0 %vm1336_vm3, %v4764_v56 }
 0xbd8   : > { %7466 = vmatprep.subr.mxu0 %v8153_v12 }
 0xbda   : > { %7459 = vmatmul.mubr.msk.f32.vlgmr.msra.gmra.mrb[40].mxu0 %vm1336_vm3, %v4762_v55  ;;  %v5094_v62 = vpop.permute.xlu0 %5093 }
 0xbdb   : > { %v4930_v59 = vpop.permute.xlu1 %4929  ;;  %7468 = vmatprep.mubr.msk.f32.mxu0 %vm8154_vm2, %v8153_v12 }
 0xbdc   : > { %7467 = vmatpush3.xpose.msk.msra.mxu0 %vm1336_vm3, %v4930_v59 }
 0xbdd   : > { %7476 = vmatprep.subr.mxu0 %v8153_v12 }
 0xbde   : > { %v5439_v0 = vpop.permute.xlu0 %5438 }
 0xbdf   : > { %7469 = vmatmul.mubr.msk.f32.vlgmr.msra.gmra.mrb[42].mxu0 %vm1336_vm3, %v4928_v57  ;;  %v5096_v61 = vpop.permute.xlu1 %5095 }
 0xbe0   : > { %7477 = vmatpush3.xpose.msk.msra.mxu0 %vm1336_vm3, %v5096_v61  ;;  %7478 = vmatprep.mubr.msk.f32.mxu0 %vm8154_vm2, %v8153_v12 }
 0xbe1   : > { %7486 = vmatprep.subr.mxu0 %v8153_v12 }
 0xbe2   : > { %v5605_v6 = vpop.permute.xlu0 %5604 }
 0xbe3   : > { %7479 = vmatmul.mubr.msk.f32.vlgmr.msra.gmra.mrb[44].mxu0 %vm1336_vm3, %v5094_v62  ;;  %v5441_v63 = vpop.permute.xlu1 %5440 }
 0xbe4   : > { %7487 = vmatpush3.xpose.msk.msra.mxu0 %vm1336_vm3, %v9188_v53  ;;  %7488 = vmatprep.mubr.msk.f32.mxu0 %vm8154_vm2, %v8153_v12 }
 0xbe5   : > { %7496 = vmatprep.subr.mxu0 %v8153_v12 }
 0xbe6   : > { %v5771_v9 = vpop.permute.xlu0 %5770 }
 0xbe7   : > { %7489 = vmatmul.mubr.msk.f32.vlgmr.msra.gmra.mrb[46].mxu0 %vm1336_vm3, %v4494_v52  ;;  %v5607_v1 = vpop.permute.xlu1 %5606 }
 0xbe8   : > { %7497 = vmatpush3.xpose.msk.msra.mxu0 %vm1336_vm3, %v5441_v63  ;;  %7498 = vmatprep.mubr.msk.f32.mxu0 %vm8154_vm2, %v8153_v12 }
 0xbe9   : > { %7506 = vmatprep.subr.mxu0 %v8153_v12 }
 0xbea   : > { %v4851_v38 = vpop.permute.xlu0 %4850 }
 0xbeb   : > { %7499 = vmatmul.mubr.msk.f32.vlgmr.msra.gmra.mrb[48].mxu0 %vm1336_vm3, %v5439_v0  ;;  %v5773_v3 = vpop.permute.xlu1 %5772 }
 0xbec   : > { %7507 = vmatpush3.xpose.msk.msra.mxu0 %vm1336_vm3, %v5607_v1  ;;  %7508 = vmatprep.mubr.msk.f32.mxu0 %vm8154_vm2, %v8153_v12 }
 0xbed   : > { %7516 = vmatprep.subr.mxu0 %v8153_v12 }
 0xbef   : > { %7509 = vmatmul.mubr.msk.f32.vlgmr.msra.gmra.mrb[50].mxu0 %vm1336_vm3, %v5605_v6  ;;  %v4685_v7 = vpop.permute.xlu1 %4684 }
 0xbf0   : > { %7452 = vmatpush3.msra.mxu1 %v4685_v7  ;;  %7517 = vmatpush3.xpose.msk.msra.mxu0 %vm1336_vm3, %v5773_v3 }
 0xbf1   : > { %7518 = vmatprep.mubr.msk.f32.mxu0 %vm8154_vm2, %v8153_v12  ;;  %7461 = vmatprep.subr.mxu1 %v8153_v12 }
 0xbf3   : > { %7519 = vmatmul.mubr.msk.f32.vlgmr.msra.gmra.mrb[52].mxu0 %vm1336_vm3, %v5771_v9  ;;  %v5017_v27 = vpop.permute.xlu1 %5016 }
 0xbf7   : > { %v5183_v31 = vpop.permute.xlu1 %5182 }
 0xc3b   : > { %v4669_v10 = vpop.f32.mrb[36].mxu1 }
 0xc3c   : > { %v7450_v11 = vpop.f32.mrb[37].mxu1  ;;  %v4673_v2 = vsel %vm1336_vm3, %v4669_v10, -inf }
 0xc3d   : > { %4674 = vmax.xlane.f32.xlu1 %v4673_v2 }
 0xc4e   : > { %5361 = vrot.lane.b32.xlu1 %v9188_v53, %s8156_s21 }
 0xcad   : > { %v4835_v5 = vpop.f32.mrb[40].mxu0 }
 0xcae   : > { %v7460_v13 = vpop.f32.mrb[41].mxu0  ;;  %v4839_v14 = vsel %vm1336_vm3, %v4835_v5, -inf }
 0xcaf   : > { %4840 = vmax.xlane.f32.xlu0 %v4839_v14 }
 0xcb2   : > { %v5001_v15 = vpop.f32.mrb[42].mxu0 }
 0xcb3   : > { %v7470_v16 = vpop.f32.mrb[43].mxu0  ;;  %v5005_v17 = vsel %vm1336_vm3, %v5001_v15, -inf }
 0xcb4   : > { %5006 = vmax.xlane.f32.xlu0 %v5005_v17 }
 0xcb6   : > { %v5167_v18 = vpop.f32.mrb[44].mxu0 }
 0xcb7   : > { %v7480_v19 = vpop.f32.mrb[45].mxu0  ;;  %v5171_v20 = vsel %vm1336_vm3, %v5167_v18, -inf }
 0xcb8   : > { %5172 = vmax.xlane.f32.xlu1 %v5171_v20 }
 0xcba   : > { %v5346_v21 = vpop.f32.mrb[46].mxu0 }
 0xcbb   : > { %v7490_v22 = vpop.f32.mrb[47].mxu0  ;;  %v5350_v23 = vsel %vm1336_vm3, %v5346_v21, -inf }
 0xcbc   : > { %5351 = vmax.xlane.f32.xlu0 %v5350_v23 }
 0xcbe   : > { %v5512_v24 = vpop.f32.mrb[48].mxu0 }
 0xcbf   : > { %v7500_v25 = vpop.f32.mrb[49].mxu0  ;;  %v5516_v26 = vsel %vm1336_vm3, %v5512_v24, -inf }
 0xcc0   : > { %5517 = vmax.xlane.f32.xlu1 %v5516_v26 }
 0xcc2   : > { %v9244_v28 = vpop.f32.mrb[50].mxu0 }
 0xcc3   : > { %v7510_v29 = vpop.f32.mrb[51].mxu0  ;;  %v5682_v48 = vsel %vm1336_vm3, %v9244_v28, -inf }
 0xcc6   : > { %v9246_v32 = vpop.f32.mrb[52].mxu0 }
 0xcc7   : > { %v7520_v33 = vpop.f32.mrb[53].mxu0  ;;  %v5848_v39 = vsel %vm1336_vm3, %v9246_v32, -inf }
 0xcca   : > { %v4675_v34 = vpop.xlane.xlu1 %4674 }
 0xccb   : > { %v4676_v35 = vsub.f32 %v4669_v10, %v4675_v34 }
 0xccd   : > { %v4677_v36 = vmul.f32 1.442695, %v4676_v35 }
 0xcce   : > { %v5362_v44 = vpop.permute.xlu1 %5361 }
 0xccf   : > { %7865 = vpow2.f32 %v4677_v36 }
 0xcd1   : > { %5693 = vrot.lane.b32.xlu1 %v9188_v53, %s8157_s27 }
 0xcd2   : > { %5527 = vrot.lane.b32.xlu0 %v9188_v53, %s8158_s15  ;;  %s9581_s15 = scalar_lea.vmem %s9468_s19, %s8589_s29 }
 0xcd9   : > { %v9252_v37 = vpop.eup %7865 }
 0xcda   : > { %7454 = vmatmul.mubr.msk.f32.vlgmr.msra.gmra.mrb[38].mxu1 %vm1336_vm3, %v9252_v37  ;;  %v4679_v22 = vsel %vm1336_vm3, %v9252_v37, 0.0 }
 0xcdb   : > { %7462 = vmatpush3.msra.mxu1 %v4851_v38  ;;  %7463 = vmatprep.mubr.msk.f32.mxu1 %vm8154_vm2, %v8153_v12  ;;  %v4405_v38 = vld [vmem:[%s8636_s17] sm:$0xff] }
 0xcdc   : > { %7471 = vmatprep.subr.mxu1 %v8153_v12 }
 0xcf1   : > { %5683 = vmax.xlane.f32.xlu0 %v5682_v48  ;;  %v4406_v48 = vld [vmem:[%s8636_s17 + $0x8] sm:$0xff] }
 0xcf5   : > { %5849 = vmax.xlane.f32.xlu0 %v5848_v39  ;;  %v7645_v39 = vpack.c.bf16 %v4406_v48, %v4405_v38 }
 0xcf7   : > { %7646 = vmatprep.subr.bf16.mxu0 %v7645_v39 }
 0xcf8   : > { %7648 = vmatpush3.bf16.msra.mxu0 %v7645_v39 }
 0xd0b   : > { %5859 = vrot.lane.b32.xlu0 %v9188_v53, %s8159_s5 }
 0xd3c   : > { %v4841_v40 = vpop.xlane.xlu0 %4840 }
 0xd3d   : > { %v4842_v30 = vsub.f32 %v4835_v5, %v4841_v40 }
 0xd3f   : > { %v4843_v42 = vmul.f32 1.442695, %v4842_v30 }
 0xd41   : > { %7867 = vpow2.f32 %v4843_v42  ;;  %v5007_v45 = vpop.xlane.xlu0 %5006 }
 0xd42   : > { %v5008_v4 = vsub.f32 %v5001_v15, %v5007_v45 }
 0xd44   : > { %v5009_v47 = vmul.f32 1.442695, %v5008_v4 }
 0xd45   : > { %v5173_v49 = vpop.xlane.xlu1 %5172 }
 0xd46   : > { %7869 = vpow2.f32 %v5009_v47  ;;  %v5174_v50 = vsub.f32 %v5167_v18, %v5173_v49 }
 0xd48   : > { %v5175_v51 = vmul.f32 1.442695, %v5174_v50 }
 0xd49   : > { %v5352_v52 = vpop.xlane.xlu0 %5351 }
 0xd4a   : > { %7871 = vpow2.f32 %v5175_v51  ;;  %v5353_v55 = vsub.f32 %v5346_v21, %v5352_v52 }
 0xd4b   : > { %v7868_v56 = vpop.eup %7867 }
 0xd4c   : > { %v5354_v57 = vmul.f32 1.442695, %v5353_v55  ;;  %7464 = vmatmul.mubr.msk.f32.vlgmr.msra.gmra.mrb[40].mxu1 %vm1336_vm3, %v7868_v56  ;;  %v4845_v53 = vsel %vm1336_vm3, %v7868_v56, 0.0  ;;  %v4407_v55 = vld [vmem:[%s8636_s17 + $0x10] sm:$0xff]  ;;  %v4408_v56 = vld [vmem:[%s8636_s17 + $0x18] sm:$0xff]  ;;  %s9578_s17 = sld [smem:[#allocation20_spill]] }
 0xd4d   : > { %7472 = vmatpush3.msra.mxu1 %v5017_v27  ;;  %v5518_v59 = vpop.xlane.xlu1 %5517  ;;  %4846 = vadd.xlane.f32.xlu1 %v4845_v53  ;;  %v5528_v7 = vpop.permute.xlu0 %5527 }
 0xd4e   : > { %7873 = vpow2.f32 %v5354_v57  ;;  %v5519_v61 = vsub.f32 %v5512_v24, %v5518_v59  ;;  %7473 = vmatprep.mubr.msk.f32.mxu1 %vm8154_vm2, %v8153_v12  ;;  %7481 = vmatprep.subr.mxu1 %v8153_v12  ;;  %v7649_v57 = vpack.c.bf16 %v4408_v56, %v4407_v55 }
 0xd50   : > { %v7870_v62 = vpop.eup %7869  ;;  %v5520_v63 = vmul.f32 1.442695, %v5519_v61  ;;  %7650 = vmatprep.subr.bf16.mxu0 %v7649_v57 }
 0xd51   : > { %7474 = vmatmul.mubr.msk.f32.vlgmr.msra.gmra.mrb[42].mxu1 %vm1336_vm3, %v7870_v62  ;;  %v5011_v0 = vsel %vm1336_vm3, %v7870_v62, 0.0  ;;  %v5694_v10 = vpop.permute.xlu1 %5693  ;;  %7652 = vmatpush3.bf16.msra.mxu0 %v7649_v57  ;;  %v6078_v57 = vld [vmem:[%s8572_s26] sm:$0xff] }
 0xd52   : > { %7875 = vpow2.f32 %v5520_v63  ;;  %7482 = vmatpush3.msra.mxu1 %v5183_v31  ;;  %5012 = vadd.xlane.f32.xlu0 %v5011_v0 }
 0xd53   : > { %7483 = vmatprep.mubr.msk.f32.mxu1 %vm8154_vm2, %v8153_v12  ;;  %7491 = vmatprep.subr.mxu1 %v8153_v12 }
 0xd54   : > { %v7872_v1 = vpop.eup %7871 }
 0xd55   : > { %7484 = vmatmul.mubr.msk.f32.vlgmr.msra.gmra.mrb[44].mxu1 %vm1336_vm3, %v7872_v1  ;;  %v5177_v3 = vsel %vm1336_vm3, %v7872_v1, 0.0 }
 0xd56   : > { %7492 = vmatpush3.msra.mxu1 %v5362_v44  ;;  %5178 = vadd.xlane.f32.xlu1 %v5177_v3 }
 0xd57   : > { %7493 = vmatprep.mubr.msk.f32.mxu1 %vm8154_vm2, %v8153_v12  ;;  %7501 = vmatprep.subr.mxu1 %v8153_v12 }
 0xd58   : > { %v7874_v6 = vpop.eup %7873 }
 0xd59   : > { %7494 = vmatmul.mubr.msk.f32.vlgmr.msra.gmra.mrb[46].mxu1 %vm1336_vm3, %v7874_v6  ;;  %v5356_v23 = vsel %vm1336_vm3, %v7874_v6, 0.0 }
 0xd5a   : > { %7502 = vmatpush3.msra.mxu1 %v5528_v7  ;;  %7503 = vmatprep.mubr.msk.f32.mxu1 %vm8154_vm2, %v8153_v12 }
 0xd5b   : > { %7511 = vmatprep.subr.mxu1 %v8153_v12 }
 0xd5c   : > { %v7876_v9 = vpop.eup %7875 }
 0xd5d   : > { %7504 = vmatmul.mubr.msk.f32.vlgmr.msra.gmra.mrb[48].mxu1 %vm1336_vm3, %v7876_v9  ;;  %v5522_v11 = vsel %vm1336_vm3, %v7876_v9, 0.0 }
 0xd5e   : > { %7512 = vmatpush3.msra.mxu1 %v5694_v10  ;;  %5523 = vadd.xlane.f32.xlu0 %v5522_v11 }
 0xd5f   : > { %7513 = vmatprep.mubr.msk.f32.mxu1 %vm8154_vm2, %v8153_v12  ;;  %7521 = vmatprep.subr.mxu1 %v8153_v12 }
 0xd7e   : > { %v5684_v2 = vpop.xlane.xlu0 %5683 }
 0xd7f   : > { %v5685_v5 = vsub.f32 %v9244_v28, %v5684_v2 }
 0xd81   : > { %v5686_v13 = vmul.f32 1.442695, %v5685_v5 }
 0xd82   : > { %v5850_v14 = vpop.xlane.xlu0 %5849 }
 0xd83   : > { %7877 = vpow2.f32 %v5686_v13  ;;  %v5851_v15 = vsub.f32 %v9246_v32, %v5850_v14 }
 0xd85   : > { %v5852_v16 = vmul.f32 1.442695, %v5851_v15 }
 0xd86   : > { %v5860_v18 = vpop.permute.xlu0 %5859 }
 0xd87   : > { %7879 = vpow2.f32 %v5852_v16 }
 0xd8d   : > { %v7878_v17 = vpop.eup %7877 }
 0xd8e   : > { %7514 = vmatmul.mubr.msk.f32.vlgmr.msra.gmra.mrb[50].mxu1 %vm1336_vm3, %v7878_v17  ;;  %v5688_v19 = vsel %vm1336_vm3, %v7878_v17, 0.0 }
 0xd8f   : > { %7522 = vmatpush3.msra.mxu1 %v5860_v18  ;;  %5689 = vadd.xlane.f32.xlu0 %v5688_v19 }
 0xd90   : > { %7523 = vmatprep.mubr.msk.f32.mxu1 %vm8154_vm2, %v8153_v12 }
 0xd91   : > { %v7880_v20 = vpop.eup %7879 }
 0xd92   : > { %7524 = vmatmul.mubr.msk.f32.vlgmr.msra.gmra.mrb[52].mxu1 %vm1336_vm3, %v7880_v20  ;;  %v5854_v21 = vsel %vm1336_vm3, %v7880_v20, 0.0 }
 0xd93   : > { %5855 = vadd.xlane.f32.xlu1 %v5854_v21  ;;  %4680 = vadd.xlane.f32.xlu0 %v4679_v22 }
 0xd97   : > { %5357 = vadd.xlane.f32.xlu1 %v5356_v23 }
 0xdad   : > { %v4756_v24 = vpop.f32.mrb[38].mxu1 }
 0xdae   : > { %v7455_v25 = vpop.f32.mrb[39].mxu1 }
 0xdaf   : > { %v7023_v25 = vld [vmem:[%s9577_s0] ss:$0 sm:$0xff] }
 0xdda   : > { %v4847_v26 = vpop.xlane.xlu1 %4846 }
 0xddb   : > { %7881 = vrcp.f32 %v4847_v26 }
 0xddf   : > { %v5013_v27 = vpop.xlane.xlu0 %5012 }
 0xde0   : > { %7883 = vrcp.f32 %v5013_v27 }
 0xde3   : > { %v5179_v12 = vpop.xlane.xlu1 %5178 }
 0xde4   : > { %7885 = vrcp.f32 %v5179_v12 }
 0xde5   : > { %v7882_v28 = vpop.eup %7881 }
 0xdea   : > { %v7884_v34 = vpop.eup %7883 }
 0xdeb   : > { %v5524_v33 = vpop.xlane.xlu0 %5523 }
 0xdec   : > { %7887 = vrcp.f32 %v5524_v33 }
 0xdee   : > { %v7886_v40 = vpop.eup %7885 }
 0xdf6   : > { %v7888_v47 = vpop.eup %7887 }
 0xe1c   : > { %v5690_v52 = vpop.xlane.xlu0 %5689 }
 0xe1d   : > { %7889 = vrcp.f32 %v5690_v52 }
 0xe1f   : > { %v4922_v29 = vpop.f32.mrb[40].mxu1 }
 0xe20   : > { %v4926_v31 = vmul.f32 %v7882_v28, %v4922_v29  ;;  %v7465_v32 = vpop.f32.mrb[41].mxu1  ;;  %v5856_v53 = vpop.xlane.xlu1 %5855 }
 0xe21   : > { %7891 = vrcp.f32 %v5856_v53  ;;  %v4681_v7 = vpop.xlane.xlu0 %4680  ;;  %v6079_v53 = vld [vmem:[%s8572_s26 + $0x8] sm:$0xff] }
 0xe22   : > { %5260 = vrot.lane.b32.xlu0 %v4926_v31, %s8166_s3  ;;  %7893 = vrcp.f32 %v4681_v7  ;;  %v6084_v7 = vld [vmem:[%s9579_s14 + $0x8] sm:$0xff] }
 0xe24   : > { %v5088_v35 = vpop.f32.mrb[42].mxu1  ;;  %v5358_v9 = vpop.xlane.xlu1 %5357 }
 0xe25   : > { %v5092_v36 = vmul.f32 %v7884_v34, %v5088_v35  ;;  %v7475_v37 = vpop.f32.mrb[43].mxu1  ;;  %7895 = vrcp.f32 %v5358_v9  ;;  %v6085_v9 = vld [vmem:[%s9579_s14 + $0x10] sm:$0xff] }
 0xe27   : > { %5264 = vrot.lane.b32.xlu1 %v5092_v36, %s8167_s23  ;;  %v7890_v59 = vpop.eup %7889 }
 0xe28   : > { %v5254_v30 = vpop.f32.mrb[44].mxu1 }
 0xe29   : > { %v5258_v42 = vmul.f32 %v7886_v40, %v5254_v30  ;;  %v7485_v44 = vpop.f32.mrb[45].mxu1 }
 0xe2b   : > { %5268 = vrot.lane.b32.xlu0 %v5258_v42, %s8168_s28  ;;  %v7892_v0 = vpop.eup %7891 }
 0xe2c   : > { %v5433_v45 = vpop.f32.mrb[46].mxu1  ;;  %v7894_v10 = vpop.eup %7893 }
 0xe2d   : > { %v7495_v4 = vpop.f32.mrb[47].mxu1  ;;  %v4760_v2 = vmul.f32 %v7894_v10, %v4756_v24 }
 0xe2f   : > { %v7896_v18 = vpop.eup %7895 }
 0xe30   : > { %v5599_v49 = vpop.f32.mrb[48].mxu1  ;;  %v5437_v19 = vmul.f32 %v7896_v18, %v5433_v45 }
 0xe31   : > { %v5603_v50 = vmul.f32 %v7888_v47, %v5599_v49  ;;  %v7505_v51 = vpop.f32.mrb[49].mxu1 }
 0xe33   : > { %5937 = vrot.lane.b32.xlu1 %v5603_v50, %s8166_s3  ;;  %s9584_s3 = scalar_lea.vmem %s9583_s10, %s8589_s29 }
 0xe61   : > { %v5765_v61 = vpop.f32.mrb[50].mxu1 }
 0xe62   : > { %v5769_v62 = vmul.f32 %v7890_v59, %v5765_v61  ;;  %v7515_v63 = vpop.f32.mrb[51].mxu1  ;;  %v7653_v59 = vpack.c.bf16 %v6079_v53, %v6078_v57  ;;  %v6080_v61 = vld [vmem:[%s8572_s26 + $0x10] sm:$0xff]  ;;  %v6358_v53 = vld [vmem:[%s8651_s1 + $0x20] sm:$0xff] }
 0xe64   : > { %5941 = vrot.lane.b32.xlu1 %v5769_v62, %s8167_s23  ;;  %7654 = vmatprep.subr.bf16.mxu1 %v7653_v59  ;;  %v6081_v62 = vld [vmem:[%s8572_s26 + $0x18] sm:$0xff]  ;;  %s9580_s26 = scalar_lea.vmem [#allocation7], %s8557_s25 }
 0xe65   : > { %v5931_v1 = vpop.f32.mrb[52].mxu1  ;;  %7656 = vmatpush3.bf16.msra.mxu1 %v7653_v59  ;;  %v7657_v63 = vpack.c.bf16 %v6081_v62, %v6080_v61  ;;  %v6359_v59 = vld [vmem:[%s8651_s1 + $0x28] sm:$0xff]  ;;  %v6360_v62 = vld [vmem:[%s8651_s1 + $0x30] sm:$0xff] }
 0xe66   : > { %v5935_v3 = vmul.f32 %v7892_v0, %v5931_v1  ;;  %v7525_v6 = vpop.f32.mrb[53].mxu1  ;;  %v6349_v0 = vld [vmem:[%s9578_s17] sm:$0xff]  ;;  %v6350_v1 = vld [vmem:[%s9578_s17 + $0x8] sm:$0xff]  ;;  %v7693_v61 = vpack.c.bf16 %v6359_v59, %v6358_v53 }
 0xe67   : > { %7658 = vmatprep.subr.bf16.mxu1 %v7657_v63  ;;  %v6083_v6 = vld [vmem:[%s9579_s14] sm:$0xff] }
 0xe68   : > { %5945 = vrot.lane.b32.xlu0 %v5935_v3, %s8168_s28  ;;  %v7677_v3 = vpack.c.bf16 %v6350_v1, %v6349_v0  ;;  %v7661_v10 = vpack.c.bf16 %v6084_v7, %v6083_v6  ;;  %v7026_v1 = vld [vmem:[%s9580_s26] ss:$0 sm:$0xff] }
 0xe69   : > { %7660 = vmatpush3.bf16.msra.mxu1 %v7657_v63  ;;  %v6361_v63 = vld [vmem:[%s8651_s1 + $0x38] sm:$0xff] }
 0xe6a   : > { %7678 = vmatprep.subr.bf16.mxu1 %v7677_v3  ;;  %7662 = vmatprep.subr.bf16.mxu0 %v7661_v10  ;;  %v7697_v0 = vpack.c.bf16 %v6361_v63, %v6360_v62  ;;  %v6299_v63 = vsub.s32 3, %v9119_v54 }
 0xe94   : > { %v5261_v11 = vpop.permute.xlu0 %5260 }
 0xe95   : > { %v5271_v13 = vsel %vm1336_vm3, %v4760_v2, %v5261_v11  ;;  %v6086_v11 = vld [vmem:[%s9579_s14 + $0x18] sm:$0xff] }
 0xe96   : > { %v7665_v2 = vpack.c.bf16 %v6086_v11, %v6085_v9 }
 0xe99   : > { %v5265_v5 = vpop.permute.xlu1 %5264 }
 0xe9a   : > { %v5272_v14 = vsel %vm2010_vm4, %v5271_v13, %v5265_v5  ;;  %v6087_v5 = vld [vmem:[%s9579_s14 + $0x20] sm:$0xff]  ;;  %v6088_v13 = vld [vmem:[%s9579_s14 + $0x28] sm:$0xff] }
 0xe9d   : > { %v5269_v15 = vpop.permute.xlu0 %5268 }
 0xe9e   : > { %v5273_v16 = vsel %vm2012_vm5, %v5272_v14, %v5269_v15  ;;  %v7669_v14 = vpack.c.bf16 %v6088_v13, %v6087_v5 }
 0xe9f   : > { %7534 = vmatprep.mubr.msk.f32.mxu0 %vm1251_vm1, %v5273_v16 }
 0xea5   : > { %v5938_v17 = vpop.permute.xlu1 %5937 }
 0xea6   : > { %v5948_v21 = vsel %vm1336_vm3, %v5437_v19, %v5938_v17 }
 0xed6   : > { %v5942_v20 = vpop.permute.xlu1 %5941 }
 0xed7   : > { %v5949_v22 = vsel %vm2010_vm4, %v5948_v21, %v5942_v20 }
 0xeda   : > { %v5946_v23 = vpop.permute.xlu0 %5945 }
 0xedb   : > { %v5950_v24 = vsel %vm2012_vm5, %v5949_v22, %v5946_v23 }
 0xedc   : > { %7535 = vmatmul.mubr.msk.f32.vlgmr.msra.gmra.mrb[54].mxu0 %vm1251_vm1, %v5950_v24 }
 0xedd   : > { %7664 = vmatpush3.bf16.msra.mxu0 %v7661_v10 }
 0xede   : > { %7666 = vmatprep.subr.bf16.mxu0 %v7665_v2 }
 0xee1   : > { %7668 = vmatpush3.bf16.msra.mxu0 %v7665_v2  ;;  %v7032_v2 = vld [vmem:[%s9581_s15] ss:$0 sm:$0xff] }
 0xee2   : > { %7670 = vmatprep.subr.bf16.mxu0 %v7669_v14 }
 0xee5   : > { %7672 = vmatpush3.bf16.msra.mxu0 %v7669_v14 }
 0xfaf   : > { %v7536_v26 = vpop.f32.mrb[54].mxu0 }
 0xfb0   : > { %v6035_v27 = vadd.f32 %v7536_v26, %v7023_v25  ;;  %v6029_v12 = vpop.f32.mrb[55].mxu0 }
 0xfb1   : > { %v6030_v28 = vadd.f32 %v7023_v25, %v6029_v12 }
 0xfb2   : > { %v6039_v29 = vadd.f32 %v6035_v27, %v9162_v41  ;;  %v6310_v34 = vadd.f32 %v6035_v27, %v9168_v43  ;;  %v6068_v27 = vsub.s32 2, %v9119_v54 }
 0xfb3   : > { %v6038_v31 = vadd.f32 %v6030_v28, %v9136_v8  ;;  %v6309_v32 = vadd.f32 %v6030_v28, %v9157_v46 }
 0xfb4   : > { %v6043_v33 = vsel %vm1251_vm1, %v6039_v29, 0.0  ;;  %v6314_v37 = vsel %vm1251_vm1, %v6310_v34, 0.0  ;;  %v6069_v12 = vrot.slane %v9126_v58, %v6068_v27 }
 0xfb5   : > { %6044 = vadd.xlane.f32.xlu0 %v6043_v33  ;;  %v6040_v35 = vsel %vm1251_vm1, %v6038_v31, 0.0  ;;  %v6311_v36 = vsel %vm1251_vm1, %v6309_v32, 0.0 }
 0xfb6   : > { %6041 = vadd.xlane.f32.xlu1 %v6040_v35 }
 0xfb9   : > { %6312 = vadd.xlane.f32.xlu0 %v6311_v36 }
 0xfba   : > { %6315 = vadd.xlane.f32.xlu1 %v6314_v37  ;;  %v6351_v37 = vld [vmem:[%s9578_s17 + $0x10] sm:$0xff] }
0x1042   : > { %v6045_v38 = vpop.xlane.xlu0 %6044 }
0x1043   : > { %v6047_v41 = vmul.f32 0.03125, %v6045_v38  ;;  %v6042_v48 = vpop.xlane.xlu1 %6041  ;;  %v6352_v38 = vld [vmem:[%s9578_s17 + $0x18] sm:$0xff] }
0x1044   : > { %v6046_v8 = vmul.f32 0.03125, %v6042_v48 }
0x1045   : > { %v9328_v39 = vsub.f32 %v6039_v29, %v6047_v41  ;;  %v6339_v29 = vsub.s32 4, %v9119_v54 }
0x1046   : > { %v9330_v46 = vsub.f32 %v6038_v31, %v6046_v8  ;;  %v6313_v40 = vpop.xlane.xlu0 %6312 }
0x1047   : > { %v6317_v43 = vmul.f32 0.03125, %v6313_v40  ;;  %v6316_v30 = vpop.xlane.xlu1 %6315  ;;  %v6051_v42 = vmul.f32 %v9328_v39, %v9328_v39  ;;  %v6340_v41 = vrot.slane %v9126_v58, %v6339_v29  ;;  %v6355_v58 = vld [vmem:[%s8651_s1 + $0x8] sm:$0xff] }
0x1048   : > { %v6318_v44 = vmul.f32 0.03125, %v6316_v30  ;;  %v6050_v45 = vmul.f32 %v9330_v46, %v9330_v46 }
0x1049   : > { %v9336_v4 = vsub.f32 %v6309_v32, %v6317_v43  ;;  %v6055_v47 = vsel %vm1251_vm1, %v6051_v42, 0.0  ;;  %v7681_v42 = vpack.c.bf16 %v6352_v38, %v6351_v37 }
0x104a   : > { %v9339_v49 = vsub.f32 %v6310_v34, %v6318_v44  ;;  %6056 = vadd.xlane.f32.xlu1 %v6055_v47  ;;  %v6052_v50 = vsel %vm1251_vm1, %v6050_v45, 0.0  ;;  %v6075_v34 = vrot.slane %v9130_v60, %v6068_v27  ;;  %v6354_v45 = vld [vmem:[%s8651_s1] sm:$0xff] }
0x104b   : > { %6053 = vadd.xlane.f32.xlu0 %v6052_v50  ;;  %v6321_v51 = vmul.f32 %v9336_v4, %v9336_v4  ;;  %v7685_v47 = vpack.c.bf16 %v6355_v58, %v6354_v45  ;;  %v6356_v50 = vld [vmem:[%s8651_s1 + $0x10] sm:$0xff] }
0x104c   : > { %v6322_v52 = vmul.f32 %v9339_v49, %v9339_v49 }
0x104d   : > { %v6323_v55 = vsel %vm1251_vm1, %v6321_v51, 0.0  ;;  %v6357_v51 = vld [vmem:[%s8651_s1 + $0x18] sm:$0xff]  ;;  %s9582_s1 = scalar_lea.vmem [#allocation9], %s8557_s25 }
0x104e   : > { %v6326_v56 = vsel %vm1251_vm1, %v6322_v52, 0.0  ;;  %v7689_v52 = vpack.c.bf16 %v6357_v51, %v6356_v50 }
0x104f   : > { %6324 = vadd.xlane.f32.xlu0 %v6323_v55  ;;  %6327 = vadd.xlane.f32.xlu1 %v6326_v56  ;;  %v6089_v55 = vld [vmem:[%s9579_s14 + $0x30] sm:$0xff]  ;;  %v6090_v56 = vld [vmem:[%s9579_s14 + $0x38] sm:$0xff] }
0x1050   : > { %v7673_v57 = vpack.c.bf16 %v6090_v56, %v6089_v55 }
0x1052   : > { %7674 = vmatprep.subr.bf16.mxu0 %v7673_v57 }
0x1053   : > { %7676 = vmatpush3.bf16.msra.mxu0 %v7673_v57 }
0x10d7   : > { %v6057_v15 = vpop.xlane.xlu1 %6056 }
0x10d8   : > { %v6059_v16 = vmul.f32 0.03125, %v6057_v15  ;;  %v6054_v17 = vpop.xlane.xlu0 %6053 }
0x10d9   : > { %v6058_v18 = vmul.f32 0.03125, %v6054_v17 }
0x10da   : > { %v6061_v19 = vadd.f32 1e-05, %v6059_v16 }
0x10db   : > { %v6060_v20 = vadd.f32 1e-05, %v6058_v18  ;;  %v7029_v18 = vld [vmem:[%s9582_s1] ss:$0 sm:$0xff] }
0x10dc   : > { %7897 = vrsqrt.f32 %v6061_v19  ;;  %v6325_v21 = vpop.xlane.xlu0 %6324  ;;  %v6328_v22 = vpop.xlane.xlu1 %6327 }
0x10dd   : > { %7899 = vrsqrt.f32 %v6060_v20  ;;  %v6329_v23 = vmul.f32 0.03125, %v6325_v21  ;;  %v6330_v24 = vmul.f32 0.03125, %v6328_v22 }
0x10df   : > { %v6331_v25 = vadd.f32 1e-05, %v6329_v23  ;;  %v6332_v26 = vadd.f32 1e-05, %v6330_v24 }
0x10e1   : > { %7901 = vrsqrt.f32 %v6331_v25 }
0x10e2   : > { %7903 = vrsqrt.f32 %v6332_v26  ;;  %v7035_v26 = vld [vmem:[%s9584_s3] ss:$0 sm:$0xff] }
0x10e6   : > { %v7898_v28 = vpop.eup %7897 }
0x10e7   : > { %v7900_v31 = vpop.eup %7899  ;;  %v6065_v32 = vmul.f32 %v7898_v28, %v9328_v39  ;;  %v6346_v39 = vrot.slane %v9130_v60, %v6339_v29 }
0x10e8   : > { %v6064_v33 = vmul.f32 %v7900_v31, %v9330_v46 }
0x10e9   : > { %v6071_v35 = vmul.f32 %v6069_v12, %v6065_v32 }
0x10ea   : > { %v6070_v36 = vmul.f32 %v6069_v12, %v6064_v33 }
0x10eb   : > { %v7902_v48 = vpop.eup %7901  ;;  %v6077_v30 = vadd.f32 %v6075_v34, %v6071_v35 }
0x10ec   : > { %v7904_v8 = vpop.eup %7903  ;;  %v9369_v40 = vadd.f32 %v6075_v34, %v6070_v36  ;;  %v6335_v43 = vmul.f32 %v7902_v48, %v9336_v4 }
0x10ed   : > { %v6336_v46 = vmul.f32 %v7904_v8, %v9339_v49 }
0x10ee   : > { %7545 = vmatprep.mubr.msk.f32.mxu1 %vm1251_vm1, %v9369_v40  ;;  %v6341_v44 = vmul.f32 %v6340_v41, %v6335_v43 }
0x10ef   : > { %7546 = vmatmul.mubr.msk.f32.vlgmr.msra.gmra.mrb[54].mxu1 %vm1251_vm1, %v6077_v30  ;;  %v6342_v60 = vmul.f32 %v6340_v41, %v6336_v46 }
0x10f0   : > { %7680 = vmatpush3.bf16.msra.mxu1 %v7677_v3  ;;  %v9379_v4 = vadd.f32 %v6346_v39, %v6341_v44 }
0x10f1   : > { %7682 = vmatprep.subr.bf16.mxu1 %v7681_v42  ;;  %v6348_v49 = vadd.f32 %v6346_v39, %v6342_v60 }
0x10f2   : > { %7575 = vmatprep.mubr.msk.f32.mxu1 %vm1251_vm1, %v9379_v4 }
0x10f4   : > { %7684 = vmatpush3.bf16.msra.mxu1 %v7681_v42 }
0x10f5   : > { %7686 = vmatprep.subr.bf16.mxu1 %v7685_v47 }
0x10f7   : > { %7576 = vmatmul.mubr.msk.f32.vlgmr.msra.gmra.mrb[56].mxu1 %vm1251_vm1, %v6348_v49 }
0x10f8   : > { %7688 = vmatpush3.bf16.msra.mxu1 %v7685_v47 }
0x10f9   : > { %7690 = vmatprep.subr.bf16.mxu1 %v7689_v52 }
0x10fc   : > { %7692 = vmatpush3.bf16.msra.mxu1 %v7689_v52 }
0x10fd   : > { %7694 = vmatprep.subr.bf16.mxu1 %v7693_v61 }
0x1100   : > { %7696 = vmatpush3.bf16.msra.mxu1 %v7693_v61 }
0x1101   : > { %7698 = vmatprep.subr.bf16.mxu1 %v7697_v0 }
0x1104   : > { %7700 = vmatpush3.bf16.msra.mxu1 %v7697_v0 }
0x11c2   : > { %v7547_v3 = vpop.f32.mrb[54].mxu1 }
0x11c3   : > { %v6176_v6 = vadd.f32 %v7547_v3, %v7026_v1  ;;  %v6170_v7 = vpop.f32.mrb[55].mxu1 }
0x11c4   : > { %v6171_v9 = vadd.f32 %v7026_v1, %v6170_v7 }
0x11c5   : > { %v6180_v11 = vmax.f32 %v6176_v6, 0.0  ;;  %v7915_v6 = vld [vmem:[%s8661_s24] sm:$0x3f] }
0x11c6   : > { %v6179_v10 = vmax.f32 %v6171_v9, 0.0  ;;  %v6300_v7 = vrot.slane %v7915_v6, %v6299_v63 }
0x11c8   : > { %7564 = vmatprep.mubr.msk.f32.mxu0 %vm6187_vm6, %v6179_v10 }
0x11c9   : > { %7565 = vmatmul.mubr.msk.f32.vlgmr.msra.gmra.mrb[56].mxu0 %vm6187_vm6, %v6180_v11  ;;  %v7916_v11 = vld [vmem:[%s8666_s13] sm:$0x3f] }
0x11ca   : > { %v7577_v5 = vpop.f32.mrb[56].mxu1 }
0x11cb   : > { %v6447_v13 = vadd.f32 %v7577_v5, %v7032_v2  ;;  %v6441_v14 = vpop.f32.mrb[57].mxu1 }
0x11cc   : > { %v6442_v15 = vadd.f32 %v7032_v2, %v6441_v14  ;;  %v6306_v2 = vrot.slane %v7916_v11, %v6299_v63 }
0x11cd   : > { %v6451_v17 = vmax.f32 %v6447_v13, 0.0 }
0x11ce   : > { %v6450_v16 = vmax.f32 %v6442_v15, 0.0  ;;  %v6569_v15 = vsub.s32 5, %v9119_v54 }
0x11d0   : > { %7594 = vmatprep.mubr.msk.f32.mxu1 %vm6187_vm6, %v6450_v16 }
0x11d1   : > { %7595 = vmatmul.mubr.msk.f32.vlgmr.msra.gmra.mrb[58].mxu1 %vm6187_vm6, %v6451_v17 }
0x129c   : > { %v7566_v19 = vpop.f32.mrb[56].mxu0 }
0x129d   : > { %v6266_v20 = vadd.f32 %v7566_v19, %v7029_v18  ;;  %v6260_v21 = vpop.f32.mrb[57].mxu0  ;;  %v6570_v19 = vrot.slane %v7915_v6, %v6569_v15 }
0x129e   : > { %v6261_v22 = vadd.f32 %v7029_v18, %v6260_v21 }
0x129f   : > { %v6270_v23 = vadd.f32 %v6266_v20, %v6077_v30 }
0x12a0   : > { %v6269_v24 = vadd.f32 %v6261_v22, %v9369_v40  ;;  %v6576_v22 = vrot.slane %v7916_v11, %v6569_v15 }
0x12a1   : > { %v6274_v25 = vsel %vm1251_vm1, %v6270_v23, 0.0 }
0x12a2   : > { %6275 = vadd.xlane.f32.xlu1 %v6274_v25  ;;  %v6271_v27 = vsel %vm1251_vm1, %v6269_v24, 0.0 }
0x12a3   : > { %6272 = vadd.xlane.f32.xlu0 %v6271_v27 }
0x12a4   : > { %v7596_v12 = vpop.f32.mrb[58].mxu1 }
0x12a5   : > { %v6536_v28 = vadd.f32 %v7596_v12, %v7035_v26  ;;  %v6530_v29 = vpop.f32.mrb[59].mxu1 }
0x12a6   : > { %v6531_v31 = vadd.f32 %v7035_v26, %v6530_v29 }
0x12a7   : > { %v6540_v32 = vadd.f32 %v6536_v28, %v6348_v49 }
0x12a8   : > { %v6539_v33 = vadd.f32 %v6531_v31, %v9379_v4 }
0x12a9   : > { %v6544_v34 = vsel %vm1251_vm1, %v6540_v32, 0.0 }
0x12aa   : > { %6545 = vadd.xlane.f32.xlu1 %v6544_v34  ;;  %v6541_v35 = vsel %vm1251_vm1, %v6539_v33, 0.0 }
0x12ab   : > { %6542 = vadd.xlane.f32.xlu0 %v6541_v35 }
0x132f   : > { %v6276_v36 = vpop.xlane.xlu1 %6275 }
0x1330   : > { %v6278_v37 = vmul.f32 0.03125, %v6276_v36  ;;  %v6273_v38 = vpop.xlane.xlu0 %6272 }
0x1331   : > { %v6277_v41 = vmul.f32 0.03125, %v6273_v38 }
0x1332   : > { %v6280_v48 = vsub.f32 %v6270_v23, %v6278_v37 }
0x1333   : > { %v6279_v8 = vsub.f32 %v6269_v24, %v6277_v41 }
0x1334   : > { %v6282_v40 = vmul.f32 %v6280_v48, %v6280_v48 }
0x1335   : > { %v6281_v43 = vmul.f32 %v6279_v8, %v6279_v8 }
0x1336   : > { %v6286_v39 = vsel %vm1251_vm1, %v6282_v40, 0.0 }
0x1337   : > { %v6546_v46 = vpop.xlane.xlu1 %6545  ;;  %6287 = vadd.xlane.f32.xlu1 %v6286_v39  ;;  %v6283_v30 = vsel %vm1251_vm1, %v6281_v43, 0.0 }
0x1338   : > { %v6548_v42 = vmul.f32 0.03125, %v6546_v46  ;;  %v6543_v44 = vpop.xlane.xlu0 %6542  ;;  %6284 = vadd.xlane.f32.xlu0 %v6283_v30 }
0x1339   : > { %v6547_v45 = vmul.f32 0.03125, %v6543_v44 }
0x133a   : > { %v6550_v58 = vsub.f32 %v6540_v32, %v6548_v42 }
0x133b   : > { %v6549_v4 = vsub.f32 %v6539_v33, %v6547_v45 }
0x133c   : > { %v6552_v60 = vmul.f32 %v6550_v58, %v6550_v58 }
0x133d   : > { %v6551_v47 = vmul.f32 %v6549_v4, %v6549_v4 }
0x133e   : > { %v6556_v49 = vsel %vm1251_vm1, %v6552_v60, 0.0 }
0x133f   : > { %6557 = vadd.xlane.f32.xlu1 %v6556_v49  ;;  %v6553_v50 = vsel %vm1251_vm1, %v6551_v47, 0.0 }
0x1340   : > { %6554 = vadd.xlane.f32.xlu0 %v6553_v50 }
0x13c4   : > { %v6288_v51 = vpop.xlane.xlu1 %6287 }
0x13c5   : > { %v6290_v52 = vmul.f32 0.03125, %v6288_v51  ;;  %v6285_v55 = vpop.xlane.xlu0 %6284 }
0x13c6   : > { %v6289_v56 = vmul.f32 0.03125, %v6285_v55 }
0x13c7   : > { %v6292_v57 = vadd.f32 1e-05, %v6290_v52 }
0x13c8   : > { %v6291_v53 = vadd.f32 1e-05, %v6289_v56 }
0x13c9   : > { %7905 = vrsqrt.f32 %v6292_v57 }
0x13ca   : > { %7907 = vrsqrt.f32 %v6291_v53 }
0x13cc   : > { %v6558_v59 = vpop.xlane.xlu1 %6557 }
0x13cd   : > { %v6560_v61 = vmul.f32 0.03125, %v6558_v59  ;;  %v6555_v62 = vpop.xlane.xlu0 %6554 }
0x13ce   : > { %v6559_v0 = vmul.f32 0.03125, %v6555_v62 }
0x13cf   : > { %v6562_v1 = vadd.f32 1e-05, %v6560_v61 }
0x13d0   : > { %v6561_v3 = vadd.f32 1e-05, %v6559_v0 }
0x13d1   : > { %7909 = vrsqrt.f32 %v6562_v1 }
0x13d2   : > { %7911 = vrsqrt.f32 %v6561_v3 }
0x13d3   : > { %v7906_v9 = vpop.eup %7905 }
0x13d4   : > { %v7908_v10 = vpop.eup %7907  ;;  %v6296_v5 = vmul.f32 %v7906_v9, %v6280_v48 }
0x13d5   : > { %v6295_v13 = vmul.f32 %v7908_v10, %v6279_v8 }
0x13d6   : > { %v6302_v14 = vmul.f32 %v6300_v7, %v6296_v5 }
0x13d7   : > { %v6301_v16 = vmul.f32 %v6300_v7, %v6295_v13 }
0x13d8   : > { %v6308_v17 = vadd.f32 %v6306_v2, %v6302_v14 }
0x13d9   : > { %v6307_v18 = vadd.f32 %v6306_v2, %v6301_v16 }
0x13da   : > { %6580 = vst.msk [vmem:[%s9565_s6 + $0x8] sm:$0xff] %vm1251_vm1, %v6308_v17 }
0x13db   : > { %v7910_v20 = vpop.eup %7909  ;;  %6579 = vst.msk [vmem:[%s9565_s6] sm:$0xff] %vm1251_vm1, %v6307_v18 }
0x13dc   : > { %v7912_v21 = vpop.eup %7911  ;;  %v6566_v23 = vmul.f32 %v7910_v20, %v6550_v58 }
0x13dd   : > { %v6565_v24 = vmul.f32 %v7912_v21, %v6549_v4 }
0x13de   : > { %v6572_v54 = vmul.f32 %v6570_v19, %v6566_v23 }
0x13df   : > { %v6571_v25 = vmul.f32 %v6570_v19, %v6565_v24 }
0x13e0   : > { %v6578_v26 = vadd.f32 %v6576_v22, %v6572_v54 }
0x13e1   : > { %v6577_v27 = vadd.f32 %v6576_v22, %v6571_v25 }
0x13e2   : > { %6582 = vst.msk [vmem:[%s9568_s7 + $0x8] sm:$0xff] %vm1251_vm1, %v6578_v26 }
0x13e3   : > { %6581 = vst.msk [vmem:[%s9568_s7] sm:$0xff] %vm1251_vm1, %v6577_v27 }
0x13e4 PF: > { %s9585_s30 = sld [smem:[#allocation18_spill]]  ;;  %s9586_s29 = sld [smem:[#allocation16_spill]] }
0x13e5   : > { %s9587_s2 = sld [smem:[#allocation17_spill]]  ;;  %s9588_s6 = sld [smem:[#allocation19_spill]] }
0x13ea   : > { %p45_p4 = scmp.ge.s32.totalorder %s9585_s30, 4  }
0x13ec   :  { %47 = sbr.rel (!%p45_p4) target bundleno = 35 (0x23), region = 273 }
0x13f3   :  { %6600 = vsyncpa [#allocation3], 1 }
0x13f4   :  { %6602 = vsyncpa [#allocation3 + $0x1], 1 }
0x13f5   :  { %6603 = vsyncpa [#allocation5], 1 }
0x13f6   :  { %6605 = vsyncpa [#allocation5 + $0x1], 1 }
0x13f7   :  { %6606 = vsyncpa [#allocation8], 1 }
0x13f8   :  { %6608 = vsyncpa [#allocation8 + $0x1], 1 }
0x13f9   :  { %6609 = vsyncpa [#allocation11], 1 }
0x13fa   :  { %6611 = vsyncpa [#allocation11 + $0x1], 1 }

</bundles_post_ra>
